<compile_context>
chip_gen: v6e
topology: v6e:2x2x1
jax: 0.10.0
libtpu: 0.0.40
codegen_flags: <defaults>
</compile_context>

<pallas_src>
import jax
import jax.numpy as jnp
import numpy as np
from jax import lax
from jax.experimental import pallas as pl
from jax.experimental.pallas import tpu as pltpu


HP1, WP1 = 24, 128          # after Conv1 + MaxPool(k=2, s=8)
HP2, WP2 = 10, 62           # after Conv2 + MaxPool(k=2, s=2)
Q1 = HP1 * WP1              # 3072  (lane-dense stage-1 spatial)
Q2 = HP2 * WP2              # 620   (lane-dense stage-2 spatial)


# ---------------------------------------------------------------------------
# Stage 1: Conv2d(1->6, k=11, s=1, p=5) + ReLU + MaxPool2d(k=2, s=8)
#   res[phase*8 + co, q] = sum_t w1e[phase*8+co, t] * patches1[t, q]
#   t = a*12 + b indexes a 12x12 patch (11x11 conv window + 2x2 pool - 1)
#   taken at stride 8; phase = 2*r + s is the pooling phase.
# ---------------------------------------------------------------------------
def _conv1_kernel(w_ref, b_ref, p_ref, o_ref):
    # w_ref: (32, 144)   b_ref: (8, 1)   p_ref: (144, 3072)   o_ref: (6, 3072)
    res = jnp.dot(w_ref[...], p_ref[...], preferred_element_type=jnp.float32)
    m = jnp.maximum(jnp.maximum(res[0:8], res[8:16]),
                    jnp.maximum(res[16:24], res[24:32]))      # 2x2 pool (phases)
    b = b_ref[...]
    o_ref[...] = jnp.maximum(m[0:6] + b[0:6], 0.0)            # bias + ReLU


# ---------------------------------------------------------------------------
# Stage 2: Conv2d(6->16, k=5, valid) + ReLU + MaxPool2d(k=2, s=2)
#   patches2 columns are (ci, a, b) over a 6x6 patch at stride 2.
# ---------------------------------------------------------------------------
def _conv2_kernel(w_ref, b_ref, p_ref, o_ref):
    # w_ref: (64, 216)   b_ref: (16, 1)   p_ref: (216, 620)   o_ref: (16, 620)
    res = jnp.dot(w_ref[...], p_ref[...], preferred_element_type=jnp.float32)
    m = jnp.maximum(jnp.maximum(res[0:16], res[16:32]),
                    jnp.maximum(res[32:48], res[48:64]))      # 2x2 pool (phases)
    o_ref[...] = jnp.maximum(m + b_ref[...], 0.0)             # bias + ReLU


# ---------------------------------------------------------------------------
# Stage 3: BatchNorm2d(16) [training-mode batch stats] + Flatten + Linear(->2)
# ---------------------------------------------------------------------------
def _bn_fc_kernel(x_ref, w_ref, gamma_ref, beta_ref, fcb_ref, o_ref):
    # x_ref: (N,16,620)  w_ref: (2,16,620)  gamma/beta: (16,1)  fcb: SMEM (2,)
    n, _, q = x_ref.shape
    inv_cnt = 1.0 / float(n * q)
    x = x_ref[...]
    s = jnp.sum(x, axis=-1, keepdims=True)              # (N,16,1)
    s = jnp.sum(s, axis=0, keepdims=True)               # (1,16,1)
    mean = s * inv_cnt
    d = x - mean
    v = jnp.sum(d * d, axis=-1, keepdims=True)
    v = jnp.sum(v, axis=0, keepdims=True) * inv_cnt     # biased batch variance
    scale = gamma_ref[...][None] * lax.rsqrt(v + 1e-5)  # (1,16,1)
    y = d * scale + beta_ref[...][None]                 # BatchNorm output
    t0 = y * w_ref[0][None]                             # FC row 0
    l0 = jnp.sum(jnp.sum(t0, axis=-1, keepdims=True), axis=1, keepdims=True)
    t1 = y * w_ref[1][None]                             # FC row 1
    l1 = jnp.sum(jnp.sum(t1, axis=-1, keepdims=True), axis=1, keepdims=True)
    o_ref[:, 0:1] = l0[:, 0, :] + fcb_ref[0]
    o_ref[:, 1:2] = l1[:, 0, :] + fcb_ref[1]


# ---------------------------------------------------------------------------
# Host-side weight expansion (tiny, runs inside jit)
# ---------------------------------------------------------------------------
def _expand_conv1_weights(w1, b1):
    # (6,1,11,11) -> (32,144): row = phase*8 + co (rows 6,7 per phase are zero)
    w1e = jnp.zeros((4, 8, 12, 12), jnp.float32)
    for r in range(2):
        for s in range(2):
            w1e = w1e.at[2 * r + s, :6, r:r + 11, s:s + 11].set(w1[:, 0])
    b1p = jnp.zeros((8, 1), jnp.float32).at[:6, 0].set(b1)
    return w1e.reshape(32, 144), b1p


def _expand_conv2_weights(w2):
    # (16,6,5,5) -> (64,216): row = phase*16 + co, col = ci*36 + a*6 + b
    w2e = jnp.zeros((4, 16, 6, 6, 6), jnp.float32)
    for r in range(2):
        for s in range(2):
            w2e = w2e.at[2 * r + s, :, :, r:r + 5, s:s + 5].set(w2)
    return w2e.reshape(64, 216)


@jax.jit
def conv2d_layer1_forward(x, params):
    w1, b1, w2, b2, gamma, beta, fc_w, fc_b = params
    n = x.shape[0]

    # ---- stage 1: single im2col op + Pallas MXU matmul ---------------------
    p1 = lax.conv_general_dilated_patches(
        x, (12, 12), (8, 8), ((5, 5), (5, 5)),
        dimension_numbers=("NCHW", "OIHW", "NCHW"),
        precision=lax.Precision.HIGHEST)                # (N, 144, 24, 128)
    p1 = p1.reshape(n, 144, Q1)
    w1e, b1p = _expand_conv1_weights(w1, b1)

    h1 = pl.pallas_call(
        _conv1_kernel,
        out_shape=jax.ShapeDtypeStruct((n, 6, Q1), jnp.float32),
        grid=(n,),
        in_specs=[
            pl.BlockSpec((32, 144), lambda b: (0, 0)),
            pl.BlockSpec((8, 1), lambda b: (0, 0)),
            pl.BlockSpec((None, 144, Q1), lambda b: (b, 0, 0)),
        ],
        out_specs=pl.BlockSpec((None, 6, Q1), lambda b: (b, 0, 0)),
        compiler_params=pltpu.CompilerParams(dimension_semantics=("parallel",)),
    )(w1e, b1p, p1)

    # ---- stage 2 ------------------------------------------------------------
    p2 = lax.conv_general_dilated_patches(
        h1.reshape(n, 6, HP1, WP1), (6, 6), (2, 2), "VALID",
        dimension_numbers=("NCHW", "OIHW", "NCHW"),
        precision=lax.Precision.HIGHEST)                # (N, 216, 10, 62)
    p2 = p2.reshape(n, 216, Q2)
    w2e = _expand_conv2_weights(w2)

    h2 = pl.pallas_call(
        _conv2_kernel,
        out_shape=jax.ShapeDtypeStruct((n, 16, Q2), jnp.float32),
        grid=(n,),
        in_specs=[
            pl.BlockSpec((64, 216), lambda b: (0, 0)),
            pl.BlockSpec((16, 1), lambda b: (0, 0)),
            pl.BlockSpec((None, 216, Q2), lambda b: (b, 0, 0)),
        ],
        out_specs=pl.BlockSpec((None, 16, Q2), lambda b: (b, 0, 0)),
        compiler_params=pltpu.CompilerParams(dimension_semantics=("parallel",)),
    )(w2e, b2.reshape(16, 1), p2)

    # ---- stage 3: BN (batch stats) + Flatten + Linear(9920 -> 2) -----------
    logits = pl.pallas_call(
        _bn_fc_kernel,
        out_shape=jax.ShapeDtypeStruct((n, 2), jnp.float32),
        in_specs=[
            pl.BlockSpec(memory_space=pltpu.MemorySpace.VMEM),   # h2
            pl.BlockSpec(memory_space=pltpu.MemorySpace.VMEM),   # fc_w (2,16,620)
            pl.BlockSpec(memory_space=pltpu.MemorySpace.VMEM),   # gamma (16,1)
            pl.BlockSpec(memory_space=pltpu.MemorySpace.VMEM),   # beta  (16,1)
            pl.BlockSpec(memory_space=pltpu.MemorySpace.SMEM),   # fc_b  (2,)
        ],
        out_specs=pl.BlockSpec(memory_space=pltpu.MemorySpace.VMEM),
    )(h2, fc_w.reshape(2, 16, Q2), gamma.reshape(16, 1), beta.reshape(16, 1), fc_b)
    return logits


# Pure-JAX reference (mirrors the PyTorch forward in training mode).
def reference_forward(x, params):
    w1, b1, w2, b2, gamma, beta, fc_w, fc_b = params
    dn = ("NCHW", "OIHW", "NCHW")
    y = lax.conv_general_dilated(x, w1, (1, 1), ((5, 5), (5, 5)),
                                 dimension_numbers=dn,
                                 precision=lax.Precision.HIGHEST)
    y = jnp.maximum(y + b1[None, :, None, None], 0.0)
    y = lax.reduce_window(y, -jnp.inf, lax.max, (1, 1, 2, 2), (1, 1, 8, 8), "VALID")
    y = lax.conv_general_dilated(y, w2, (1, 1), "VALID", dimension_numbers=dn,
                                 precision=lax.Precision.HIGHEST)
    y = jnp.maximum(y + b2[None, :, None, None], 0.0)
    y = lax.reduce_window(y, -jnp.inf, lax.max, (1, 1, 2, 2), (1, 1, 2, 2), "VALID")
    mean = jnp.mean(y, axis=(0, 2, 3), keepdims=True)
    var = jnp.mean((y - mean) ** 2, axis=(0, 2, 3), keepdims=True)
    y = (y - mean) / jnp.sqrt(var + 1e-5)
    y = y * gamma[None, :, None, None] + beta[None, :, None, None]
    flat = y.reshape(y.shape[0], -1)
    return flat @ fc_w.T + fc_b


if __name__ == "__main__":
    key = jax.random.PRNGKey(0)
    keys = jax.random.split(key, 9)
    # Smallest input consistent with Linear(in_features = 16*10*62):
    N, H, W = 2, 186, 1018
    x = jax.random.normal(keys[0], (N, 1, H, W), jnp.float32)

    w1 = jax.random.normal(keys[1], (6, 1, 11, 11), jnp.float32) * 0.05
    b1 = jax.random.normal(keys[2], (6,), jnp.float32) * 0.05
    w2 = jax.random.normal(keys[3], (16, 6, 5, 5), jnp.float32) * 0.05
    b2 = jax.random.normal(keys[4], (16,), jnp.float32) * 0.05
    gamma = 1.0 + 0.1 * jax.random.normal(keys[5], (16,), jnp.float32)
    beta = 0.1 * jax.random.normal(keys[6], (16,), jnp.float32)
    fc_w = jax.random.normal(keys[7], (2, 16 * 10 * 62), jnp.float32) * 0.01
    fc_b = jax.random.normal(keys[8], (2,), jnp.float32) * 0.01
    params = (w1, b1, w2, b2, gamma, beta, fc_w, fc_b)

    logits = conv2d_layer1_forward(x, params)
    logits = jax.block_until_ready(logits)

    ref = reference_forward(x, params)
    np.testing.assert_allclose(np.asarray(logits), np.asarray(ref),
                               rtol=1e-3, atol=1e-3)
    print("KERNEL_OK")
</pallas_src>

<mosaic_0001>
module attributes {stable_mosaic.version = 11 : i64} {
  func.func @_conv1_kernel(%arg0: i32, %arg1: memref<32x144xf32, #tpu.memory_space<vmem>>, %arg2: memref<8x1xf32, #tpu.memory_space<vmem>>, %arg3: memref<1x144x3072xf32, #tpu.memory_space<vmem>>, %arg4: memref<1x6x3072xf32, #tpu.memory_space<vmem>>) attributes {dimension_semantics = [#tpu.dimension_semantics<parallel>], iteration_bounds = array<i64: 2>, scalar_prefetch = 0 : i64, scratch_operands = 0 : i64, tpu.core_type = #tpu.core_type<tc>, window_params = [{pipeline_mode = #tpu.pipeline_mode<synchronous>, transform_indices = @transform_0, window_bounds = array<i64: 32, 144>}, {pipeline_mode = #tpu.pipeline_mode<synchronous>, transform_indices = @transform_1, window_bounds = array<i64: 8, 1>}, {transform_indices = @transform_2, window_bounds = array<i64: 1, 144, 3072>}, {transform_indices = @transform_3, window_bounds = array<i64: 1, 6, 3072>}]} {
    %c0 = arith.constant 0 : index
    %c0_0 = arith.constant 0 : index
    %0 = vector.load %arg1[%c0, %c0_0] : memref<32x144xf32, #tpu.memory_space<vmem>>, vector<32x144xf32>
    %c0_1 = arith.constant 0 : index
    %c0_2 = arith.constant 0 : index
    %c0_3 = arith.constant 0 : index
    %1 = vector.load %arg3[%c0_1, %c0_2, %c0_3] : memref<1x144x3072xf32, #tpu.memory_space<vmem>>, vector<1x144x3072xf32>
    %2 = vector.shape_cast %1 : vector<1x144x3072xf32> to vector<144x3072xf32>
    %cst = arith.constant dense<0.000000e+00> : vector<32x3072xf32>
    %3 = tpu.matmul %0, %2, %cst {dimension_numbers = #tpu.dot_dimension_numbers<[1], [0], [0], [1], [0, 0, 1, 1], [], []>} : vector<32x144xf32>, vector<144x3072xf32>, vector<32x3072xf32> -> vector<32x3072xf32>
    %4 = vector.extract_strided_slice %3 {offsets = [0, 0], sizes = [8, 3072], strides = [1, 1]} : vector<32x3072xf32> to vector<8x3072xf32>
    %5 = vector.extract_strided_slice %3 {offsets = [8, 0], sizes = [8, 3072], strides = [1, 1]} : vector<32x3072xf32> to vector<8x3072xf32>
    %6 = arith.maximumf %4, %5 : vector<8x3072xf32>
    %7 = vector.extract_strided_slice %3 {offsets = [16, 0], sizes = [8, 3072], strides = [1, 1]} : vector<32x3072xf32> to vector<8x3072xf32>
    %8 = vector.extract_strided_slice %3 {offsets = [24, 0], sizes = [8, 3072], strides = [1, 1]} : vector<32x3072xf32> to vector<8x3072xf32>
    %9 = arith.maximumf %7, %8 : vector<8x3072xf32>
    %10 = arith.maximumf %6, %9 : vector<8x3072xf32>
    %c0_4 = arith.constant 0 : index
    %c0_5 = arith.constant 0 : index
    %11 = vector.load %arg2[%c0_4, %c0_5] : memref<8x1xf32, #tpu.memory_space<vmem>>, vector<8x1xf32>
    %12 = vector.extract_strided_slice %10 {offsets = [0, 0], sizes = [6, 3072], strides = [1, 1]} : vector<8x3072xf32> to vector<6x3072xf32>
    %13 = vector.extract_strided_slice %11 {offsets = [0, 0], sizes = [6, 1], strides = [1, 1]} : vector<8x1xf32> to vector<6x1xf32>
    %14 = vector.broadcast %13 : vector<6x1xf32> to vector<6x3072xf32>
    %15 = arith.addf %12, %14 : vector<6x3072xf32>
    %cst_6 = arith.constant 0.000000e+00 : f32
    %16 = vector.broadcast %cst_6 : f32 to vector<6x3072xf32>
    %17 = arith.maximumf %15, %16 : vector<6x3072xf32>
    %c0_7 = arith.constant 0 : index
    %c0_8 = arith.constant 0 : index
    %c0_9 = arith.constant 0 : index
    %18 = vector.load %arg4[%c0_7, %c0_8, %c0_9] : memref<1x6x3072xf32, #tpu.memory_space<vmem>>, vector<1x6x3072xf32>
    %19 = vector.shape_cast %18 : vector<1x6x3072xf32> to vector<6x3072xf32>
    %20 = vector.shape_cast %17 : vector<6x3072xf32> to vector<1x6x3072xf32>
    tpu.vector_store %arg4[%c0_7, %c0_8, %c0_9], %20 {strides = array<i32>} : memref<1x6x3072xf32, #tpu.memory_space<vmem>>, vector<1x6x3072xf32>,
    return
  }
  func.func @transform_0(%arg0: i32) -> (i32, i32) {
    %c0_i32 = arith.constant 0 : i32
    %c0_i32_0 = arith.constant 0 : i32
    %c0_i32_1 = arith.constant 0 : i32
    return %c0_i32, %c0_i32_0 : i32, i32
  }
  func.func @transform_1(%arg0: i32) -> (i32, i32) {
    %c0_i32 = arith.constant 0 : i32
    %c0_i32_0 = arith.constant 0 : i32
    %c0_i32_1 = arith.constant 0 : i32
    return %c0_i32, %c0_i32_0 : i32, i32
  }
  func.func @transform_2(%arg0: i32) -> (i32, i32, i32) {
    %c0_i32 = arith.constant 0 : i32
    %c0_i32_0 = arith.constant 0 : i32
    %c0_i32_1 = arith.constant 0 : i32
    return %arg0, %c0_i32, %c0_i32_0 : i32, i32, i32
  }
  func.func @transform_3(%arg0: i32) -> (i32, i32, i32) {
    %c0_i32 = arith.constant 0 : i32
    %c0_i32_0 = arith.constant 0 : i32
    %c0_i32_1 = arith.constant 0 : i32
    return %arg0, %c0_i32, %c0_i32_0 : i32, i32, i32
  }
}

module attributes {stable_mosaic.version = 11 : i64} {
  func.func @_conv2_kernel(%arg0: i32, %arg1: memref<64x216xf32, #tpu.memory_space<vmem>>, %arg2: memref<16x1xf32, #tpu.memory_space<vmem>>, %arg3: memref<1x216x620xf32, #tpu.memory_space<vmem>>, %arg4: memref<1x16x620xf32, #tpu.memory_space<vmem>>) attributes {dimension_semantics = [#tpu.dimension_semantics<parallel>], iteration_bounds = array<i64: 2>, scalar_prefetch = 0 : i64, scratch_operands = 0 : i64, tpu.core_type = #tpu.core_type<tc>, window_params = [{pipeline_mode = #tpu.pipeline_mode<synchronous>, transform_indices = @transform_0, window_bounds = array<i64: 64, 216>}, {pipeline_mode = #tpu.pipeline_mode<synchronous>, transform_indices = @transform_1, window_bounds = array<i64: 16, 1>}, {transform_indices = @transform_2, window_bounds = array<i64: 1, 216, 620>}, {transform_indices = @transform_3, window_bounds = array<i64: 1, 16, 620>}]} {
    %c0 = arith.constant 0 : index
    %c0_0 = arith.constant 0 : index
    %0 = vector.load %arg1[%c0, %c0_0] : memref<64x216xf32, #tpu.memory_space<vmem>>, vector<64x216xf32>
    %c0_1 = arith.constant 0 : index
    %c0_2 = arith.constant 0 : index
    %c0_3 = arith.constant 0 : index
    %1 = vector.load %arg3[%c0_1, %c0_2, %c0_3] : memref<1x216x620xf32, #tpu.memory_space<vmem>>, vector<1x216x620xf32>
    %2 = vector.shape_cast %1 : vector<1x216x620xf32> to vector<216x620xf32>
    %cst = arith.constant dense<0.000000e+00> : vector<64x620xf32>
    %3 = tpu.matmul %0, %2, %cst {dimension_numbers = #tpu.dot_dimension_numbers<[1], [0], [0], [1], [0, 0, 1, 1], [], []>} : vector<64x216xf32>, vector<216x620xf32>, vector<64x620xf32> -> vector<64x620xf32>
    %4 = vector.extract_strided_slice %3 {offsets = [0, 0], sizes = [16, 620], strides = [1, 1]} : vector<64x620xf32> to vector<16x620xf32>
    %5 = vector.extract_strided_slice %3 {offsets = [16, 0], sizes = [16, 620], strides = [1, 1]} : vector<64x620xf32> to vector<16x620xf32>
    %6 = arith.maximumf %4, %5 : vector<16x620xf32>
    %7 = vector.extract_strided_slice %3 {offsets = [32, 0], sizes = [16, 620], strides = [1, 1]} : vector<64x620xf32> to vector<16x620xf32>
    %8 = vector.extract_strided_slice %3 {offsets = [48, 0], sizes = [16, 620], strides = [1, 1]} : vector<64x620xf32> to vector<16x620xf32>
    %9 = arith.maximumf %7, %8 : vector<16x620xf32>
    %10 = arith.maximumf %6, %9 : vector<16x620xf32>
    %c0_4 = arith.constant 0 : index
    %c0_5 = arith.constant 0 : index
    %11 = vector.load %arg2[%c0_4, %c0_5] : memref<16x1xf32, #tpu.memory_space<vmem>>, vector<16x1xf32>
    %12 = vector.broadcast %11 : vector<16x1xf32> to vector<16x620xf32>
    %13 = arith.addf %10, %12 : vector<16x620xf32>
    %cst_6 = arith.constant 0.000000e+00 : f32
    %14 = vector.broadcast %cst_6 : f32 to vector<16x620xf32>
    %15 = arith.maximumf %13, %14 : vector<16x620xf32>
    %c0_7 = arith.constant 0 : index
    %c0_8 = arith.constant 0 : index
    %c0_9 = arith.constant 0 : index
    %16 = vector.load %arg4[%c0_7, %c0_8, %c0_9] : memref<1x16x620xf32, #tpu.memory_space<vmem>>, vector<1x16x620xf32>
    %17 = vector.shape_cast %16 : vector<1x16x620xf32> to vector<16x620xf32>
    %18 = vector.shape_cast %15 : vector<16x620xf32> to vector<1x16x620xf32>
    tpu.vector_store %arg4[%c0_7, %c0_8, %c0_9], %18 {strides = array<i32>} : memref<1x16x620xf32, #tpu.memory_space<vmem>>, vector<1x16x620xf32>,
    return
  }
  func.func @transform_0(%arg0: i32) -> (i32, i32) {
    %c0_i32 = arith.constant 0 : i32
    %c0_i32_0 = arith.constant 0 : i32
    %c0_i32_1 = arith.constant 0 : i32
    return %c0_i32, %c0_i32_0 : i32, i32
  }
  func.func @transform_1(%arg0: i32) -> (i32, i32) {
    %c0_i32 = arith.constant 0 : i32
    %c0_i32_0 = arith.constant 0 : i32
    %c0_i32_1 = arith.constant 0 : i32
    return %c0_i32, %c0_i32_0 : i32, i32
  }
  func.func @transform_2(%arg0: i32) -> (i32, i32, i32) {
    %c0_i32 = arith.constant 0 : i32
    %c0_i32_0 = arith.constant 0 : i32
    %c0_i32_1 = arith.constant 0 : i32
    return %arg0, %c0_i32, %c0_i32_0 : i32, i32, i32
  }
  func.func @transform_3(%arg0: i32) -> (i32, i32, i32) {
    %c0_i32 = arith.constant 0 : i32
    %c0_i32_0 = arith.constant 0 : i32
    %c0_i32_1 = arith.constant 0 : i32
    return %arg0, %c0_i32, %c0_i32_0 : i32, i32, i32
  }
}

module attributes {stable_mosaic.version = 11 : i64} {
  func.func @_bn_fc_kernel(%arg0: memref<2x16x620xf32, #tpu.memory_space<vmem>>, %arg1: memref<2x16x620xf32, #tpu.memory_space<vmem>>, %arg2: memref<16x1xf32, #tpu.memory_space<vmem>>, %arg3: memref<16x1xf32, #tpu.memory_space<vmem>>, %arg4: memref<2xf32, #tpu.memory_space<smem>>, %arg5: memref<2x2xf32, #tpu.memory_space<vmem>>) attributes {dimension_semantics = [], scalar_prefetch = 0 : i64, scratch_operands = 0 : i64, tpu.core_type = #tpu.core_type<tc>} {
    %c0 = arith.constant 0 : index
    %c0_0 = arith.constant 0 : index
    %c0_1 = arith.constant 0 : index
    %0 = vector.load %arg0[%c0, %c0_0, %c0_1] : memref<2x16x620xf32, #tpu.memory_space<vmem>>, vector<2x16x620xf32>
    %cst = arith.constant dense<0.000000e+00> : vector<2x16xf32>
    %1 = vector.multi_reduction <add>, %0, %cst [2] : vector<2x16x620xf32> to vector<2x16xf32>
    %2 = vector.shape_cast %1 : vector<2x16xf32> to vector<2x16x1xf32>
    %cst_2 = arith.constant dense<0.000000e+00> : vector<16x1xf32>
    %3 = vector.multi_reduction <add>, %2, %cst_2 [0] : vector<2x16x1xf32> to vector<16x1xf32>
    %4 = vector.shape_cast %3 : vector<16x1xf32> to vector<1x16x1xf32>
    %cst_3 = arith.constant 8.06451601E-4 : f32
    %5 = vector.broadcast %cst_3 : f32 to vector<1x16x1xf32>
    %6 = arith.mulf %4, %5 : vector<1x16x1xf32>
    %7 = vector.broadcast %6 : vector<1x16x1xf32> to vector<2x16x620xf32>
    %8 = arith.subf %0, %7 : vector<2x16x620xf32>
    %9 = arith.mulf %8, %8 : vector<2x16x620xf32>
    %cst_4 = arith.constant dense<0.000000e+00> : vector<2x16xf32>
    %10 = vector.multi_reduction <add>, %9, %cst_4 [2] : vector<2x16x620xf32> to vector<2x16xf32>
    %11 = vector.shape_cast %10 : vector<2x16xf32> to vector<2x16x1xf32>
    %cst_5 = arith.constant dense<0.000000e+00> : vector<16x1xf32>
    %12 = vector.multi_reduction <add>, %11, %cst_5 [0] : vector<2x16x1xf32> to vector<16x1xf32>
    %13 = vector.shape_cast %12 : vector<16x1xf32> to vector<1x16x1xf32>
    %cst_6 = arith.constant 8.06451601E-4 : f32
    %14 = vector.broadcast %cst_6 : f32 to vector<1x16x1xf32>
    %15 = arith.mulf %13, %14 : vector<1x16x1xf32>
    %c0_7 = arith.constant 0 : index
    %c0_8 = arith.constant 0 : index
    %16 = vector.load %arg2[%c0_7, %c0_8] : memref<16x1xf32, #tpu.memory_space<vmem>>, vector<16x1xf32>
    %17 = vector.shape_cast %16 : vector<16x1xf32> to vector<1x16x1xf32>
    %cst_9 = arith.constant 9.99999974E-6 : f32
    %18 = vector.broadcast %cst_9 : f32 to vector<1x16x1xf32>
    %19 = arith.addf %15, %18 : vector<1x16x1xf32>
    %20 = math.rsqrt %19 : vector<1x16x1xf32>
    %21 = arith.mulf %17, %20 : vector<1x16x1xf32>
    %22 = vector.broadcast %21 : vector<1x16x1xf32> to vector<2x16x620xf32>
    %23 = arith.mulf %8, %22 : vector<2x16x620xf32>
    %c0_10 = arith.constant 0 : index
    %c0_11 = arith.constant 0 : index
    %24 = vector.load %arg3[%c0_10, %c0_11] : memref<16x1xf32, #tpu.memory_space<vmem>>, vector<16x1xf32>
    %25 = vector.shape_cast %24 : vector<16x1xf32> to vector<1x16x1xf32>
    %26 = vector.broadcast %25 : vector<1x16x1xf32> to vector<2x16x620xf32>
    %27 = arith.addf %23, %26 : vector<2x16x620xf32>
    %c0_12 = arith.constant 0 : index
    %c0_13 = arith.constant 0 : index
    %c0_14 = arith.constant 0 : index
    %28 = vector.load %arg1[%c0_12, %c0_13, %c0_14] : memref<2x16x620xf32, #tpu.memory_space<vmem>>, vector<1x16x620xf32>
    %29 = vector.shape_cast %28 : vector<1x16x620xf32> to vector<16x620xf32>
    %30 = vector.shape_cast %29 : vector<16x620xf32> to vector<1x16x620xf32>
    %31 = vector.broadcast %30 : vector<1x16x620xf32> to vector<2x16x620xf32>
    %32 = arith.mulf %27, %31 : vector<2x16x620xf32>
    %cst_15 = arith.constant dense<0.000000e+00> : vector<2x16xf32>
    %33 = vector.multi_reduction <add>, %32, %cst_15 [2] : vector<2x16x620xf32> to vector<2x16xf32>
    %34 = vector.shape_cast %33 : vector<2x16xf32> to vector<2x16x1xf32>
    %cst_16 = arith.constant dense<0.000000e+00> : vector<2x1xf32>
    %35 = vector.multi_reduction <add>, %34, %cst_16 [1] : vector<2x16x1xf32> to vector<2x1xf32>
    %36 = vector.shape_cast %35 : vector<2x1xf32> to vector<2x1x1xf32>
    %c1 = arith.constant 1 : index
    %c0_17 = arith.constant 0 : index
    %c0_18 = arith.constant 0 : index
    %37 = vector.load %arg1[%c1, %c0_17, %c0_18] : memref<2x16x620xf32, #tpu.memory_space<vmem>>, vector<1x16x620xf32>
    %38 = vector.shape_cast %37 : vector<1x16x620xf32> to vector<16x620xf32>
    %39 = vector.shape_cast %38 : vector<16x620xf32> to vector<1x16x620xf32>
    %40 = vector.broadcast %39 : vector<1x16x620xf32> to vector<2x16x620xf32>
    %41 = arith.mulf %27, %40 : vector<2x16x620xf32>
    %cst_19 = arith.constant dense<0.000000e+00> : vector<2x16xf32>
    %42 = vector.multi_reduction <add>, %41, %cst_19 [2] : vector<2x16x620xf32> to vector<2x16xf32>
    %43 = vector.shape_cast %42 : vector<2x16xf32> to vector<2x16x1xf32>
    %cst_20 = arith.constant dense<0.000000e+00> : vector<2x1xf32>
    %44 = vector.multi_reduction <add>, %43, %cst_20 [1] : vector<2x16x1xf32> to vector<2x1xf32>
    %45 = vector.shape_cast %44 : vector<2x1xf32> to vector<2x1x1xf32>
    %46 = vector.shape_cast %36 : vector<2x1x1xf32> to vector<2x1xf32>
    %c0_21 = arith.constant 0 : index
    %47 = memref.load %arg4[%c0_21] : memref<2xf32, #tpu.memory_space<smem>>
    %48 = vector.broadcast %47 : f32 to vector<2x1xf32>
    %49 = arith.addf %46, %48 : vector<2x1xf32>
    %c0_22 = arith.constant 0 : index
    %c0_23 = arith.constant 0 : index
    %50 = vector.load %arg5[%c0_22, %c0_23] : memref<2x2xf32, #tpu.memory_space<vmem>>, vector<2x1xf32>
    tpu.vector_store %arg5[%c0_22, %c0_23], %49 {strides = array<i32>} : memref<2x2xf32, #tpu.memory_space<vmem>>, vector<2x1xf32>,
    %51 = vector.shape_cast %45 : vector<2x1x1xf32> to vector<2x1xf32>
    %c1_24 = arith.constant 1 : index
    %52 = memref.load %arg4[%c1_24] : memref<2xf32, #tpu.memory_space<smem>>
    %53 = vector.broadcast %52 : f32 to vector<2x1xf32>
    %54 = arith.addf %51, %53 : vector<2x1xf32>
    %c0_25 = arith.constant 0 : index
    %c1_26 = arith.constant 1 : index
    %55 = vector.load %arg5[%c0_25, %c1_26] : memref<2x2xf32, #tpu.memory_space<vmem>>, vector<2x1xf32>
    tpu.vector_store %arg5[%c0_25, %c1_26], %54 {strides = array<i32>} : memref<2x2xf32, #tpu.memory_space<vmem>>, vector<2x1xf32>,
    return
  }
}

</mosaic_0001>

<bundles_post_ra>
// kernel: conv2d_layer1_forward.3
= control target key start
LH: loop header
LB: loop body
LE: loop exit
PB: predicated region body
PF: predicated region fallthrough
CT: control target
= control target key end

     0   :  { %s2003_s12 = smov 0   ;;  %s2761_s0 = inlined_call_operand.vmem [shape: f32[32,144], index: 0, kind: input, shape index: {}]   ;;  %s2762_s1 = inlined_call_operand.vmem [shape: f32[8,1], index: 1, kind: input, shape index: {}]   ;;  %s2763_s2 = inlined_call_operand.vmem [shape: f32[2,144,3072], index: 2, kind: input, shape index: {}]   ;;  %s2764_s3 = inlined_call_operand.vmem [shape: f32[2,6,3072], index: 3, kind: output, shape index: {}]  }
   0x1 LB: > { %s1897_s13 = sadd.s32 4294967295, %s1980_s12   ;;  %p1901_p0 = scmp.ge.s32.totalorder %s1980_s12, 1  ;;  %s1980_s12 = sphi %s2003_s12, %s13_s12  }
   0x2   : > { %p137_p1 = scmp.lt.s32.totalorder %s1980_s12, 3 }
   0x4   : > { %p138_p2 = pnand %p1901_p0, %p137_p1 }
   0x5   : > { %p161_p3 = scmp.lt.s32.totalorder (!%p138_p2), %s1897_s13, 1 }
   0x6   : > { %141 = sbr.rel (%p138_p2) target bundleno = 489 (0x1e9), region = 32 }
   0xb   : > { %v2014_v0 = vld [vmem:[%s2761_s0 + $0x8] sm:$0xff]  ;;  %vm611_vm0 = vcmask 130048   ;;  %s2766_s13 = smov (!%p161_p3, %s1897_s13), 1 }
   0xc   : > { %1904 = vmatprep.mubr.msk.f32.mxu0 %vm611_vm0, %v2014_v0  ;;  %1908 = vmatprep.mubr.msk.f32.mxu1 %vm611_vm0, %v2014_v0  ;;  %s1954_s16 = smul.u32 3456, %s2766_s13 }
   0xe   : > { %s2026_s19 = scalar_lea.vmem %s2763_s2, %s1954_s16 }
   0xf   : > { %v540_v1 = vld [vmem:[%s2026_s19 + $0xb48] sm:$0xff]  ;;  %v542_v2 = vld [vmem:[%s2026_s19 + $0xb58] sm:$0xff]  ;;  %v539_v3 = vld [vmem:[%s2026_s19 + $0xb40] sm:$0xff] }
  0x10   : > { %624 = vmatprep.subr.mxu0 %v540_v1  ;;  %713 = vmatprep.subr.mxu1 %v542_v2  ;;  %v541_v4 = vld [vmem:[%s2026_s19 + $0xb50] sm:$0xff]  ;;  %v516_v5 = vld [vmem:[%s2026_s19 + $0xa88] sm:$0xff]  ;;  %v518_v6 = vld [vmem:[%s2026_s19 + $0xa98] sm:$0xff] }
  0x11   : > { %625 = vmatpush1.msra.mxu0 %v539_v3  ;;  %714 = vmatpush1.msra.mxu1 %v541_v4  ;;  %v515_v7 = vld [vmem:[%s2026_s19 + $0xa80] sm:$0xff]  ;;  %v517_v8 = vld [vmem:[%s2026_s19 + $0xa90] sm:$0xff]  ;;  %v492_v9 = vld [vmem:[%s2026_s19 + $0x9c8] sm:$0xff] }
  0x12   : > { %626 = vmatprep.subr.mxu0 %v516_v5  ;;  %715 = vmatprep.subr.mxu1 %v518_v6  ;;  %v494_v10 = vld [vmem:[%s2026_s19 + $0x9d8] sm:$0xff]  ;;  %v491_v11 = vld [vmem:[%s2026_s19 + $0x9c0] sm:$0xff]  ;;  %v493_v12 = vld [vmem:[%s2026_s19 + $0x9d0] sm:$0xff] }
  0x13   : > { %627 = vmatpush1.msra.mxu0 %v515_v7  ;;  %716 = vmatpush1.msra.mxu1 %v517_v8  ;;  %v468_v13 = vld [vmem:[%s2026_s19 + $0x908] sm:$0xff]  ;;  %v470_v14 = vld [vmem:[%s2026_s19 + $0x918] sm:$0xff]  ;;  %v467_v15 = vld [vmem:[%s2026_s19 + $0x900] sm:$0xff] }
  0x14   : > { %628 = vmatprep.subr.mxu0 %v492_v9  ;;  %717 = vmatprep.subr.mxu1 %v494_v10  ;;  %v469_v16 = vld [vmem:[%s2026_s19 + $0x910] sm:$0xff]  ;;  %v444_v17 = vld [vmem:[%s2026_s19 + $0x848] sm:$0xff]  ;;  %v446_v18 = vld [vmem:[%s2026_s19 + $0x858] sm:$0xff] }
  0x15   : > { %629 = vmatpush1.msra.mxu0 %v491_v11  ;;  %718 = vmatpush1.msra.mxu1 %v493_v12  ;;  %v443_v19 = vld [vmem:[%s2026_s19 + $0x840] sm:$0xff]  ;;  %v445_v20 = vld [vmem:[%s2026_s19 + $0x850] sm:$0xff]  ;;  %v420_v21 = vld [vmem:[%s2026_s19 + $0x788] sm:$0xff] }
  0x16   : > { %630 = vmatprep.subr.mxu0 %v468_v13  ;;  %719 = vmatprep.subr.mxu1 %v470_v14  ;;  %v422_v22 = vld [vmem:[%s2026_s19 + $0x798] sm:$0xff]  ;;  %v419_v23 = vld [vmem:[%s2026_s19 + $0x780] sm:$0xff]  ;;  %v421_v24 = vld [vmem:[%s2026_s19 + $0x790] sm:$0xff] }
  0x17   : > { %631 = vmatpush1.msra.mxu0 %v467_v15  ;;  %720 = vmatpush1.msra.mxu1 %v469_v16  ;;  %v396_v25 = vld [vmem:[%s2026_s19 + $0x6c8] sm:$0xff]  ;;  %v398_v26 = vld [vmem:[%s2026_s19 + $0x6d8] sm:$0xff]  ;;  %v395_v27 = vld [vmem:[%s2026_s19 + $0x6c0] sm:$0xff] }
  0x18   : > { %632 = vmatprep.subr.mxu0 %v444_v17  ;;  %721 = vmatprep.subr.mxu1 %v446_v18  ;;  %v397_v28 = vld [vmem:[%s2026_s19 + $0x6d0] sm:$0xff]  ;;  %v372_v29 = vld [vmem:[%s2026_s19 + $0x608] sm:$0xff]  ;;  %v374_v30 = vld [vmem:[%s2026_s19 + $0x618] sm:$0xff] }
  0x19   : > { %633 = vmatpush1.msra.mxu0 %v443_v19  ;;  %722 = vmatpush1.msra.mxu1 %v445_v20  ;;  %v371_v31 = vld [vmem:[%s2026_s19 + $0x600] sm:$0xff]  ;;  %v373_v32 = vld [vmem:[%s2026_s19 + $0x610] sm:$0xff]  ;;  %v348_v33 = vld [vmem:[%s2026_s19 + $0x548] sm:$0xff] }
  0x1a   : > { %634 = vmatprep.subr.mxu0 %v420_v21  ;;  %723 = vmatprep.subr.mxu1 %v422_v22  ;;  %v350_v34 = vld [vmem:[%s2026_s19 + $0x558] sm:$0xff]  ;;  %v347_v35 = vld [vmem:[%s2026_s19 + $0x540] sm:$0xff]  ;;  %v349_v36 = vld [vmem:[%s2026_s19 + $0x550] sm:$0xff] }
  0x1b   : > { %635 = vmatpush1.msra.mxu0 %v419_v23  ;;  %724 = vmatpush1.msra.mxu1 %v421_v24  ;;  %v324_v37 = vld [vmem:[%s2026_s19 + $0x488] sm:$0xff]  ;;  %v326_v38 = vld [vmem:[%s2026_s19 + $0x498] sm:$0xff]  ;;  %v323_v39 = vld [vmem:[%s2026_s19 + $0x480] sm:$0xff] }
  0x1c   : > { %636 = vmatprep.subr.mxu0 %v396_v25  ;;  %725 = vmatprep.subr.mxu1 %v398_v26  ;;  %v325_v40 = vld [vmem:[%s2026_s19 + $0x490] sm:$0xff]  ;;  %v300_v41 = vld [vmem:[%s2026_s19 + $0x3c8] sm:$0xff]  ;;  %v302_v42 = vld [vmem:[%s2026_s19 + $0x3d8] sm:$0xff] }
  0x1d   : > { %637 = vmatpush1.msra.mxu0 %v395_v27  ;;  %726 = vmatpush1.msra.mxu1 %v397_v28  ;;  %v299_v43 = vld [vmem:[%s2026_s19 + $0x3c0] sm:$0xff]  ;;  %v301_v44 = vld [vmem:[%s2026_s19 + $0x3d0] sm:$0xff]  ;;  %v276_v45 = vld [vmem:[%s2026_s19 + $0x308] sm:$0xff] }
  0x1e   : > { %638 = vmatprep.subr.mxu0 %v372_v29  ;;  %727 = vmatprep.subr.mxu1 %v374_v30  ;;  %v278_v46 = vld [vmem:[%s2026_s19 + $0x318] sm:$0xff]  ;;  %v275_v47 = vld [vmem:[%s2026_s19 + $0x300] sm:$0xff]  ;;  %v277_v48 = vld [vmem:[%s2026_s19 + $0x310] sm:$0xff] }
  0x1f   : > { %639 = vmatpush1.msra.mxu0 %v371_v31  ;;  %728 = vmatpush1.msra.mxu1 %v373_v32  ;;  %v252_v49 = vld [vmem:[%s2026_s19 + $0x248] sm:$0xff]  ;;  %v254_v50 = vld [vmem:[%s2026_s19 + $0x258] sm:$0xff]  ;;  %v251_v51 = vld [vmem:[%s2026_s19 + $0x240] sm:$0xff] }
  0x20   : > { %640 = vmatprep.subr.mxu0 %v348_v33  ;;  %729 = vmatprep.subr.mxu1 %v350_v34  ;;  %v253_v52 = vld [vmem:[%s2026_s19 + $0x250] sm:$0xff]  ;;  %v228_v53 = vld [vmem:[%s2026_s19 + $0x188] sm:$0xff]  ;;  %v230_v54 = vld [vmem:[%s2026_s19 + $0x198] sm:$0xff] }
  0x21   : > { %641 = vmatpush1.msra.mxu0 %v347_v35  ;;  %730 = vmatpush1.msra.mxu1 %v349_v36  ;;  %v227_v55 = vld [vmem:[%s2026_s19 + $0x180] sm:$0xff]  ;;  %v229_v56 = vld [vmem:[%s2026_s19 + $0x190] sm:$0xff]  ;;  %v204_v57 = vld [vmem:[%s2026_s19 + $0xc8] sm:$0xff] }
  0x22   : > { %642 = vmatprep.subr.mxu0 %v324_v37  ;;  %731 = vmatprep.subr.mxu1 %v326_v38  ;;  %v206_v58 = vld [vmem:[%s2026_s19 + $0xd8] sm:$0xff]  ;;  %v203_v59 = vld [vmem:[%s2026_s19 + $0xc0] sm:$0xff]  ;;  %v205_v60 = vld [vmem:[%s2026_s19 + $0xd0] sm:$0xff] }
  0x23   : > { %643 = vmatpush1.msra.mxu0 %v323_v39  ;;  %732 = vmatpush1.msra.mxu1 %v325_v40  ;;  %v180_v61 = vld [vmem:[%s2026_s19 + $0x8] sm:$0xff]  ;;  %v182_v62 = vld [vmem:[%s2026_s19 + $0x18] sm:$0xff]  ;;  %v179_v63 = vld [vmem:[%s2026_s19] sm:$0xff] }
  0x24   : > { %644 = vmatprep.subr.mxu0 %v300_v41  ;;  %733 = vmatprep.subr.mxu1 %v302_v42  ;;  %v181_v1 = vld [vmem:[%s2026_s19 + $0x10] sm:$0xff]  ;;  %v588_v2 = vld [vmem:[%s2026_s19 + $0xcc8] sm:$0xff]  ;;  %v590_v3 = vld [vmem:[%s2026_s19 + $0xcd8] sm:$0xff] }
  0x25   : > { %645 = vmatpush1.msra.mxu0 %v299_v43  ;;  %734 = vmatpush1.msra.mxu1 %v301_v44  ;;  %v587_v4 = vld [vmem:[%s2026_s19 + $0xcc0] sm:$0xff]  ;;  %v589_v5 = vld [vmem:[%s2026_s19 + $0xcd0] sm:$0xff]  ;;  %v564_v6 = vld [vmem:[%s2026_s19 + $0xc08] sm:$0xff] }
  0x26   : > { %646 = vmatprep.subr.mxu0 %v276_v45  ;;  %735 = vmatprep.subr.mxu1 %v278_v46  ;;  %v566_v7 = vld [vmem:[%s2026_s19 + $0xc18] sm:$0xff]  ;;  %v563_v8 = vld [vmem:[%s2026_s19 + $0xc00] sm:$0xff]  ;;  %v565_v9 = vld [vmem:[%s2026_s19 + $0xc10] sm:$0xff] }
  0x27   : > { %647 = vmatpush1.msra.mxu0 %v275_v47  ;;  %736 = vmatpush1.msra.mxu1 %v277_v48  ;;  %v2103_v10 = vld [vmem:[%s2761_s0] sm:$0xff]  ;;  %v544_v11 = vld [vmem:[%s2026_s19 + $0xb68] sm:$0xff]  ;;  %v546_v12 = vld [vmem:[%s2026_s19 + $0xb78] sm:$0xff] }
  0x28   : > { %648 = vmatprep.subr.mxu0 %v252_v49  ;;  %737 = vmatprep.subr.mxu1 %v254_v50  ;;  %v543_v13 = vld [vmem:[%s2026_s19 + $0xb60] sm:$0xff]  ;;  %v545_v14 = vld [vmem:[%s2026_s19 + $0xb70] sm:$0xff]  ;;  %v520_v15 = vld [vmem:[%s2026_s19 + $0xaa8] sm:$0xff] }
  0x29   : > { %649 = vmatpush1.msra.mxu0 %v251_v51  ;;  %738 = vmatpush1.msra.mxu1 %v253_v52  ;;  %v522_v16 = vld [vmem:[%s2026_s19 + $0xab8] sm:$0xff]  ;;  %v519_v18 = vld [vmem:[%s2026_s19 + $0xaa0] sm:$0xff]  ;;  %v521_v19 = vld [vmem:[%s2026_s19 + $0xab0] sm:$0xff] }
  0x2a   : > { %650 = vmatprep.subr.mxu0 %v228_v53  ;;  %739 = vmatprep.subr.mxu1 %v230_v54  ;;  %v2116_v17 = vld [vmem:[%s2761_s0 + $0x18] sm:$0xff]  ;;  %v2123_v20 = vld [vmem:[%s2761_s0 + $0x10] sm:$0xff]  ;;  %v496_v21 = vld [vmem:[%s2026_s19 + $0x9e8] sm:$0xff] }
  0x2b   : > { %651 = vmatpush1.msra.mxu0 %v227_v55  ;;  %740 = vmatpush1.msra.mxu1 %v229_v56  ;;  %v498_v22 = vld [vmem:[%s2026_s19 + $0x9f8] sm:$0xff]  ;;  %v495_v23 = vld [vmem:[%s2026_s19 + $0x9e0] sm:$0xff]  ;;  %v497_v24 = vld [vmem:[%s2026_s19 + $0x9f0] sm:$0xff] }
  0x2c   : > { %652 = vmatprep.subr.mxu0 %v204_v57  ;;  %741 = vmatprep.subr.mxu1 %v206_v58  ;;  %v472_v25 = vld [vmem:[%s2026_s19 + $0x928] sm:$0xff]  ;;  %v474_v26 = vld [vmem:[%s2026_s19 + $0x938] sm:$0xff]  ;;  %v471_v28 = vld [vmem:[%s2026_s19 + $0x920] sm:$0xff] }
  0x2d   : > { %653 = vmatpush1.msra.mxu0 %v203_v59  ;;  %742 = vmatpush1.msra.mxu1 %v205_v60  ;;  %v2140_v27 = vld [vmem:[%s2761_s0 + $0x28] sm:$0xff]  ;;  %v473_v29 = vld [vmem:[%s2026_s19 + $0x930] sm:$0xff]  ;;  %v2147_v30 = vld [vmem:[%s2761_s0 + $0x20] sm:$0xff] }
  0x2e   : > { %654 = vmatprep.subr.mxu0 %v180_v61  ;;  %743 = vmatprep.subr.mxu1 %v182_v62  ;;  %v448_v31 = vld [vmem:[%s2026_s19 + $0x868] sm:$0xff]  ;;  %v450_v32 = vld [vmem:[%s2026_s19 + $0x878] sm:$0xff]  ;;  %v447_v33 = vld [vmem:[%s2026_s19 + $0x860] sm:$0xff] }
  0x2f   : > { %655 = vmatpush1.msra.mxu0 %v179_v63  ;;  %744 = vmatpush1.msra.mxu1 %v181_v1  ;;  %v449_v34 = vld [vmem:[%s2026_s19 + $0x870] sm:$0xff]  ;;  %v424_v35 = vld [vmem:[%s2026_s19 + $0x7a8] sm:$0xff]  ;;  %v426_v36 = vld [vmem:[%s2026_s19 + $0x7b8] sm:$0xff] }
  0x30   : > { %684 = vmatprep.subr.mxu0 %v588_v2  ;;  %773 = vmatprep.subr.mxu1 %v590_v3  ;;  %v2164_v37 = vld [vmem:[%s2761_s0 + $0x38] sm:$0xff]  ;;  %v423_v38 = vld [vmem:[%s2026_s19 + $0x7a0] sm:$0xff]  ;;  %v425_v39 = vld [vmem:[%s2026_s19 + $0x7b0] sm:$0xff] }
  0x31   : > { %685 = vmatpush2.msra.mxu0 %v587_v4  ;;  %774 = vmatpush2.msra.mxu1 %v589_v5  ;;  %v2171_v40 = vld [vmem:[%s2761_s0 + $0x30] sm:$0xff]  ;;  %v400_v41 = vld [vmem:[%s2026_s19 + $0x6e8] sm:$0xff]  ;;  %v402_v42 = vld [vmem:[%s2026_s19 + $0x6f8] sm:$0xff] }
  0x32   : > { %686 = vmatprep.subr.mxu0 %v564_v6  ;;  %775 = vmatprep.subr.mxu1 %v566_v7  ;;  %v399_v43 = vld [vmem:[%s2026_s19 + $0x6e0] sm:$0xff]  ;;  %v401_v44 = vld [vmem:[%s2026_s19 + $0x6f0] sm:$0xff]  ;;  %v376_v45 = vld [vmem:[%s2026_s19 + $0x628] sm:$0xff] }
  0x33   : > { %687 = vmatpush2.msra.mxu0 %v563_v8  ;;  %776 = vmatpush2.msra.mxu1 %v565_v9  ;;  %v378_v46 = vld [vmem:[%s2026_s19 + $0x638] sm:$0xff]  ;;  %v375_v47 = vld [vmem:[%s2026_s19 + $0x620] sm:$0xff]  ;;  %v377_v48 = vld [vmem:[%s2026_s19 + $0x630] sm:$0xff] }
  0x34   : > { %689 = vmatmul.mubr.f32.vlgmr.msra.gmra.mxu0 %v2103_v10  ;;  %778 = vmatmul.mubr.f32.vlgmr.msra.gmra.mxu1 %v2103_v10  ;;  %v352_v49 = vld [vmem:[%s2026_s19 + $0x568] sm:$0xff]  ;;  %v354_v50 = vld [vmem:[%s2026_s19 + $0x578] sm:$0xff]  ;;  %v351_v51 = vld [vmem:[%s2026_s19 + $0x560] sm:$0xff] }
  0x35   : > { %802 = vmatprep.subr.mxu0 %v544_v11  ;;  %891 = vmatprep.subr.mxu1 %v546_v12  ;;  %v353_v52 = vld [vmem:[%s2026_s19 + $0x570] sm:$0xff]  ;;  %v328_v53 = vld [vmem:[%s2026_s19 + $0x4a8] sm:$0xff]  ;;  %v330_v54 = vld [vmem:[%s2026_s19 + $0x4b8] sm:$0xff] }
  0x36   : > { %803 = vmatpush1.msra.mxu0 %v543_v13  ;;  %892 = vmatpush1.msra.mxu1 %v545_v14  ;;  %v327_v55 = vld [vmem:[%s2026_s19 + $0x4a0] sm:$0xff]  ;;  %v329_v56 = vld [vmem:[%s2026_s19 + $0x4b0] sm:$0xff]  ;;  %v304_v57 = vld [vmem:[%s2026_s19 + $0x3e8] sm:$0xff] }
  0x37   : > { %804 = vmatprep.subr.mxu0 %v520_v15  ;;  %893 = vmatprep.subr.mxu1 %v522_v16  ;;  %v306_v58 = vld [vmem:[%s2026_s19 + $0x3f8] sm:$0xff]  ;;  %v303_v59 = vld [vmem:[%s2026_s19 + $0x3e0] sm:$0xff]  ;;  %v305_v60 = vld [vmem:[%s2026_s19 + $0x3f0] sm:$0xff] }
  0x38   : > { %1905 = vmatprep.mubr.msk.f32.mxu0 %vm611_vm0, %v2116_v17  ;;  %1909 = vmatprep.mubr.msk.f32.mxu1 %vm611_vm0, %v2116_v17  ;;  %v280_v61 = vld [vmem:[%s2026_s19 + $0x328] sm:$0xff]  ;;  %v282_v62 = vld [vmem:[%s2026_s19 + $0x338] sm:$0xff]  ;;  %v279_v63 = vld [vmem:[%s2026_s19 + $0x320] sm:$0xff] }
  0x39   : > { %805 = vmatpush1.msra.mxu0 %v519_v18  ;;  %894 = vmatpush1.msra.mxu1 %v521_v19  ;;  %v281_v1 = vld [vmem:[%s2026_s19 + $0x330] sm:$0xff]  ;;  %v256_v2 = vld [vmem:[%s2026_s19 + $0x268] sm:$0xff]  ;;  %v258_v3 = vld [vmem:[%s2026_s19 + $0x278] sm:$0xff] }
  0x3a   : > { %695 = vmatmul.mubr.f32.gmra.mxu0 %v2123_v20  ;;  %784 = vmatmul.mubr.f32.gmra.mxu1 %v2123_v20  ;;  %v255_v4 = vld [vmem:[%s2026_s19 + $0x260] sm:$0xff]  ;;  %v257_v5 = vld [vmem:[%s2026_s19 + $0x270] sm:$0xff]  ;;  %v232_v6 = vld [vmem:[%s2026_s19 + $0x1a8] sm:$0xff] }
  0x3b   : > { %806 = vmatprep.subr.mxu0 %v496_v21  ;;  %895 = vmatprep.subr.mxu1 %v498_v22  ;;  %v234_v7 = vld [vmem:[%s2026_s19 + $0x1b8] sm:$0xff]  ;;  %v231_v8 = vld [vmem:[%s2026_s19 + $0x1a0] sm:$0xff]  ;;  %v233_v9 = vld [vmem:[%s2026_s19 + $0x1b0] sm:$0xff] }
  0x3c   : > { %807 = vmatpush1.msra.mxu0 %v495_v23  ;;  %896 = vmatpush1.msra.mxu1 %v497_v24  ;;  %v208_v11 = vld [vmem:[%s2026_s19 + $0xe8] sm:$0xff]  ;;  %v210_v12 = vld [vmem:[%s2026_s19 + $0xf8] sm:$0xff]  ;;  %v207_v13 = vld [vmem:[%s2026_s19 + $0xe0] sm:$0xff] }
  0x3d   : > { %808 = vmatprep.subr.mxu0 %v472_v25  ;;  %897 = vmatprep.subr.mxu1 %v474_v26  ;;  %v209_v14 = vld [vmem:[%s2026_s19 + $0xf0] sm:$0xff]  ;;  %v184_v15 = vld [vmem:[%s2026_s19 + $0x28] sm:$0xff]  ;;  %v186_v16 = vld [vmem:[%s2026_s19 + $0x38] sm:$0xff] }
  0x3e   : > { %1906 = vmatprep.mubr.msk.f32.mxu0 %vm611_vm0, %v2140_v27  ;;  %1910 = vmatprep.mubr.msk.f32.mxu1 %vm611_vm0, %v2140_v27  ;;  %v183_v18 = vld [vmem:[%s2026_s19 + $0x20] sm:$0xff]  ;;  %v185_v19 = vld [vmem:[%s2026_s19 + $0x30] sm:$0xff]  ;;  %v592_v21 = vld [vmem:[%s2026_s19 + $0xce8] sm:$0xff] }
  0x3f   : > { %809 = vmatpush1.msra.mxu0 %v471_v28  ;;  %898 = vmatpush1.msra.mxu1 %v473_v29  ;;  %v594_v22 = vld [vmem:[%s2026_s19 + $0xcf8] sm:$0xff]  ;;  %v591_v23 = vld [vmem:[%s2026_s19 + $0xce0] sm:$0xff]  ;;  %v593_v24 = vld [vmem:[%s2026_s19 + $0xcf0] sm:$0xff] }
  0x40   : > { %701 = vmatmul.mubr.f32.gmra.mxu0 %v2147_v30  ;;  %790 = vmatmul.mubr.f32.gmra.mxu1 %v2147_v30  ;;  %v568_v25 = vld [vmem:[%s2026_s19 + $0xc28] sm:$0xff]  ;;  %v570_v26 = vld [vmem:[%s2026_s19 + $0xc38] sm:$0xff]  ;;  %v567_v28 = vld [vmem:[%s2026_s19 + $0xc20] sm:$0xff] }
  0x41   : > { %810 = vmatprep.subr.mxu0 %v448_v31  ;;  %899 = vmatprep.subr.mxu1 %v450_v32  ;;  %v569_v29 = vld [vmem:[%s2026_s19 + $0xc30] sm:$0xff]  ;;  %v548_v31 = vld [vmem:[%s2026_s19 + $0xb88] sm:$0xff]  ;;  %v550_v32 = vld [vmem:[%s2026_s19 + $0xb98] sm:$0xff] }
  0x42   : > { %811 = vmatpush1.msra.mxu0 %v447_v33  ;;  %900 = vmatpush1.msra.mxu1 %v449_v34  ;;  %v547_v33 = vld [vmem:[%s2026_s19 + $0xb80] sm:$0xff]  ;;  %v549_v34 = vld [vmem:[%s2026_s19 + $0xb90] sm:$0xff] }
  0x43   : > { %812 = vmatprep.subr.mxu0 %v424_v35  ;;  %901 = vmatprep.subr.mxu1 %v426_v36  ;;  %v524_v35 = vld [vmem:[%s2026_s19 + $0xac8] sm:$0xff]  ;;  %v526_v36 = vld [vmem:[%s2026_s19 + $0xad8] sm:$0xff] }
  0x44   : > { %1907 = vmatprep.mubr.msk.f32.mxu0 %vm611_vm0, %v2164_v37  ;;  %1911 = vmatprep.mubr.msk.f32.mxu1 %vm611_vm0, %v2164_v37 }
  0x45   : > { %813 = vmatpush1.msra.mxu0 %v423_v38  ;;  %902 = vmatpush1.msra.mxu1 %v425_v39  ;;  %v523_v38 = vld [vmem:[%s2026_s19 + $0xac0] sm:$0xff]  ;;  %v525_v39 = vld [vmem:[%s2026_s19 + $0xad0] sm:$0xff] }
  0x46   : > { %707 = vmatmul.mubr.f32.gmra.mxu0 %v2171_v40  ;;  %796 = vmatmul.mubr.f32.gmra.mxu1 %v2171_v40 }
  0x47   : > { %814 = vmatprep.subr.mxu0 %v400_v41  ;;  %903 = vmatprep.subr.mxu1 %v402_v42  ;;  %v500_v41 = vld [vmem:[%s2026_s19 + $0xa08] sm:$0xff]  ;;  %v502_v42 = vld [vmem:[%s2026_s19 + $0xa18] sm:$0xff] }
  0x48   : > { %815 = vmatpush1.msra.mxu0 %v399_v43  ;;  %904 = vmatpush1.msra.mxu1 %v401_v44  ;;  %v499_v43 = vld [vmem:[%s2026_s19 + $0xa00] sm:$0xff]  ;;  %v501_v44 = vld [vmem:[%s2026_s19 + $0xa10] sm:$0xff] }
  0x49   : > { %816 = vmatprep.subr.mxu0 %v376_v45  ;;  %905 = vmatprep.subr.mxu1 %v378_v46  ;;  %v476_v45 = vld [vmem:[%s2026_s19 + $0x948] sm:$0xff]  ;;  %v478_v46 = vld [vmem:[%s2026_s19 + $0x958] sm:$0xff] }
  0x4a   : > { %817 = vmatpush1.msra.mxu0 %v375_v47  ;;  %906 = vmatpush1.msra.mxu1 %v377_v48  ;;  %v475_v47 = vld [vmem:[%s2026_s19 + $0x940] sm:$0xff]  ;;  %v477_v48 = vld [vmem:[%s2026_s19 + $0x950] sm:$0xff] }
  0x4b   : > { %818 = vmatprep.subr.mxu0 %v352_v49  ;;  %907 = vmatprep.subr.mxu1 %v354_v50  ;;  %v452_v49 = vld [vmem:[%s2026_s19 + $0x888] sm:$0xff]  ;;  %v454_v50 = vld [vmem:[%s2026_s19 + $0x898] sm:$0xff] }
  0x4c   : > { %819 = vmatpush1.msra.mxu0 %v351_v51  ;;  %908 = vmatpush1.msra.mxu1 %v353_v52  ;;  %v451_v51 = vld [vmem:[%s2026_s19 + $0x880] sm:$0xff]  ;;  %v453_v52 = vld [vmem:[%s2026_s19 + $0x890] sm:$0xff] }
  0x4d   : > { %820 = vmatprep.subr.mxu0 %v328_v53  ;;  %909 = vmatprep.subr.mxu1 %v330_v54  ;;  %v428_v53 = vld [vmem:[%s2026_s19 + $0x7c8] sm:$0xff]  ;;  %v430_v54 = vld [vmem:[%s2026_s19 + $0x7d8] sm:$0xff] }
  0x4e   : > { %821 = vmatpush1.msra.mxu0 %v327_v55  ;;  %910 = vmatpush1.msra.mxu1 %v329_v56  ;;  %v427_v55 = vld [vmem:[%s2026_s19 + $0x7c0] sm:$0xff]  ;;  %v429_v56 = vld [vmem:[%s2026_s19 + $0x7d0] sm:$0xff] }
  0x4f   : > { %822 = vmatprep.subr.mxu0 %v304_v57  ;;  %911 = vmatprep.subr.mxu1 %v306_v58  ;;  %v404_v57 = vld [vmem:[%s2026_s19 + $0x708] sm:$0xff]  ;;  %v406_v58 = vld [vmem:[%s2026_s19 + $0x718] sm:$0xff] }
  0x50   : > { %823 = vmatpush1.msra.mxu0 %v303_v59  ;;  %912 = vmatpush1.msra.mxu1 %v305_v60  ;;  %v403_v59 = vld [vmem:[%s2026_s19 + $0x700] sm:$0xff]  ;;  %v405_v60 = vld [vmem:[%s2026_s19 + $0x710] sm:$0xff] }
  0x51   : > { %824 = vmatprep.subr.mxu0 %v280_v61  ;;  %913 = vmatprep.subr.mxu1 %v282_v62  ;;  %v380_v61 = vld [vmem:[%s2026_s19 + $0x648] sm:$0xff]  ;;  %v382_v62 = vld [vmem:[%s2026_s19 + $0x658] sm:$0xff] }
  0x52   : > { %825 = vmatpush1.msra.mxu0 %v279_v63  ;;  %914 = vmatpush1.msra.mxu1 %v281_v1  ;;  %v379_v63 = vld [vmem:[%s2026_s19 + $0x640] sm:$0xff]  ;;  %v381_v1 = vld [vmem:[%s2026_s19 + $0x650] sm:$0xff] }
  0x53   : > { %826 = vmatprep.subr.mxu0 %v256_v2  ;;  %915 = vmatprep.subr.mxu1 %v258_v3  ;;  %v356_v2 = vld [vmem:[%s2026_s19 + $0x588] sm:$0xff]  ;;  %v358_v3 = vld [vmem:[%s2026_s19 + $0x598] sm:$0xff] }
  0x54   : > { %827 = vmatpush1.msra.mxu0 %v255_v4  ;;  %916 = vmatpush1.msra.mxu1 %v257_v5  ;;  %v355_v4 = vld [vmem:[%s2026_s19 + $0x580] sm:$0xff]  ;;  %v357_v5 = vld [vmem:[%s2026_s19 + $0x590] sm:$0xff] }
  0x55   : > { %828 = vmatprep.subr.mxu0 %v232_v6  ;;  %917 = vmatprep.subr.mxu1 %v234_v7  ;;  %v332_v6 = vld [vmem:[%s2026_s19 + $0x4c8] sm:$0xff]  ;;  %v334_v7 = vld [vmem:[%s2026_s19 + $0x4d8] sm:$0xff] }
  0x56   : > { %829 = vmatpush1.msra.mxu0 %v231_v8  ;;  %918 = vmatpush1.msra.mxu1 %v233_v9  ;;  %v331_v8 = vld [vmem:[%s2026_s19 + $0x4c0] sm:$0xff]  ;;  %v333_v9 = vld [vmem:[%s2026_s19 + $0x4d0] sm:$0xff] }
  0x57   : > { %830 = vmatprep.subr.mxu0 %v208_v11  ;;  %919 = vmatprep.subr.mxu1 %v210_v12  ;;  %v308_v11 = vld [vmem:[%s2026_s19 + $0x408] sm:$0xff]  ;;  %v310_v12 = vld [vmem:[%s2026_s19 + $0x418] sm:$0xff] }
  0x58   : > { %831 = vmatpush1.msra.mxu0 %v207_v13  ;;  %920 = vmatpush1.msra.mxu1 %v209_v14  ;;  %v307_v13 = vld [vmem:[%s2026_s19 + $0x400] sm:$0xff]  ;;  %v309_v14 = vld [vmem:[%s2026_s19 + $0x410] sm:$0xff] }
  0x59   : > { %832 = vmatprep.subr.mxu0 %v184_v15  ;;  %921 = vmatprep.subr.mxu1 %v186_v16  ;;  %v284_v15 = vld [vmem:[%s2026_s19 + $0x348] sm:$0xff]  ;;  %v286_v16 = vld [vmem:[%s2026_s19 + $0x358] sm:$0xff] }
  0x5a   : > { %833 = vmatpush1.msra.mxu0 %v183_v18  ;;  %922 = vmatpush1.msra.mxu1 %v185_v19  ;;  %v283_v18 = vld [vmem:[%s2026_s19 + $0x340] sm:$0xff]  ;;  %v285_v19 = vld [vmem:[%s2026_s19 + $0x350] sm:$0xff] }
  0x5b   : > { %862 = vmatprep.subr.mxu0 %v592_v21  ;;  %951 = vmatprep.subr.mxu1 %v594_v22  ;;  %v260_v21 = vld [vmem:[%s2026_s19 + $0x288] sm:$0xff]  ;;  %v262_v22 = vld [vmem:[%s2026_s19 + $0x298] sm:$0xff] }
  0x5c   : > { %863 = vmatpush2.msra.mxu0 %v591_v23  ;;  %952 = vmatpush2.msra.mxu1 %v593_v24  ;;  %v259_v23 = vld [vmem:[%s2026_s19 + $0x280] sm:$0xff]  ;;  %v261_v24 = vld [vmem:[%s2026_s19 + $0x290] sm:$0xff] }
  0x5d   : > { %864 = vmatprep.subr.mxu0 %v568_v25  ;;  %953 = vmatprep.subr.mxu1 %v570_v26  ;;  %v236_v25 = vld [vmem:[%s2026_s19 + $0x1c8] sm:$0xff]  ;;  %v238_v26 = vld [vmem:[%s2026_s19 + $0x1d8] sm:$0xff] }
  0x5e   : > { %865 = vmatpush2.msra.mxu0 %v567_v28  ;;  %1912 = vmatprep.mubr.msk.f32.mxu0 %vm611_vm0, %v2014_v0  ;;  %v235_v28 = vld [vmem:[%s2026_s19 + $0x1c0] sm:$0xff] }
  0x5f   : > { %954 = vmatpush2.msra.mxu1 %v569_v29  ;;  %1916 = vmatprep.mubr.msk.f32.mxu1 %vm611_vm0, %v2014_v0  ;;  %v237_v29 = vld [vmem:[%s2026_s19 + $0x1d0] sm:$0xff] }
  0x60   : > { %867 = vmatmul.mubr.f32.vlgmr.msra.gmra.mxu0 %v2103_v10  ;;  %956 = vmatmul.mubr.f32.vlgmr.msra.gmra.mxu1 %v2103_v10 }
  0x61   : > { %980 = vmatprep.subr.mxu0 %v548_v31  ;;  %1069 = vmatprep.subr.mxu1 %v550_v32  ;;  %v212_v31 = vld [vmem:[%s2026_s19 + $0x108] sm:$0xff]  ;;  %v214_v32 = vld [vmem:[%s2026_s19 + $0x118] sm:$0xff] }
  0x62   : > { %981 = vmatpush1.msra.mxu0 %v547_v33  ;;  %1070 = vmatpush1.msra.mxu1 %v549_v34  ;;  %v211_v33 = vld [vmem:[%s2026_s19 + $0x100] sm:$0xff]  ;;  %v213_v34 = vld [vmem:[%s2026_s19 + $0x110] sm:$0xff] }
  0x63   : > { %982 = vmatprep.subr.mxu0 %v524_v35  ;;  %1071 = vmatprep.subr.mxu1 %v526_v36  ;;  %v188_v35 = vld [vmem:[%s2026_s19 + $0x48] sm:$0xff]  ;;  %v190_v36 = vld [vmem:[%s2026_s19 + $0x58] sm:$0xff] }
  0x64   : > { %1913 = vmatprep.mubr.msk.f32.mxu0 %vm611_vm0, %v2116_v17  ;;  %1917 = vmatprep.mubr.msk.f32.mxu1 %vm611_vm0, %v2116_v17 }
  0x65   : > { %983 = vmatpush1.msra.mxu0 %v523_v38  ;;  %1072 = vmatpush1.msra.mxu1 %v525_v39  ;;  %v187_v38 = vld [vmem:[%s2026_s19 + $0x40] sm:$0xff]  ;;  %v189_v39 = vld [vmem:[%s2026_s19 + $0x50] sm:$0xff] }
  0x66   : > { %873 = vmatmul.mubr.f32.gmra.mxu0 %v2123_v20  ;;  %962 = vmatmul.mubr.f32.gmra.mxu1 %v2123_v20 }
  0x67   : > { %984 = vmatprep.subr.mxu0 %v500_v41  ;;  %1073 = vmatprep.subr.mxu1 %v502_v42  ;;  %v596_v41 = vld [vmem:[%s2026_s19 + $0xd08] sm:$0xff]  ;;  %v598_v42 = vld [vmem:[%s2026_s19 + $0xd18] sm:$0xff] }
  0x68   : > { %985 = vmatpush1.msra.mxu0 %v499_v43  ;;  %1074 = vmatpush1.msra.mxu1 %v501_v44  ;;  %v595_v43 = vld [vmem:[%s2026_s19 + $0xd00] sm:$0xff]  ;;  %v597_v44 = vld [vmem:[%s2026_s19 + $0xd10] sm:$0xff] }
  0x69   : > { %986 = vmatprep.subr.mxu0 %v476_v45  ;;  %1075 = vmatprep.subr.mxu1 %v478_v46  ;;  %v572_v45 = vld [vmem:[%s2026_s19 + $0xc48] sm:$0xff]  ;;  %v574_v46 = vld [vmem:[%s2026_s19 + $0xc58] sm:$0xff] }
  0x6a   : > { %1914 = vmatprep.mubr.msk.f32.mxu0 %vm611_vm0, %v2140_v27  ;;  %1918 = vmatprep.mubr.msk.f32.mxu1 %vm611_vm0, %v2140_v27 }
  0x6b   : > { %987 = vmatpush1.msra.mxu0 %v475_v47  ;;  %1076 = vmatpush1.msra.mxu1 %v477_v48  ;;  %v571_v47 = vld [vmem:[%s2026_s19 + $0xc40] sm:$0xff]  ;;  %v573_v48 = vld [vmem:[%s2026_s19 + $0xc50] sm:$0xff] }
  0x6c   : > { %879 = vmatmul.mubr.f32.gmra.mxu0 %v2147_v30  ;;  %968 = vmatmul.mubr.f32.gmra.mxu1 %v2147_v30 }
  0x6d   : > { %988 = vmatprep.subr.mxu0 %v452_v49  ;;  %1077 = vmatprep.subr.mxu1 %v454_v50  ;;  %v552_v49 = vld [vmem:[%s2026_s19 + $0xba8] sm:$0xff]  ;;  %v554_v50 = vld [vmem:[%s2026_s19 + $0xbb8] sm:$0xff] }
  0x6e   : > { %989 = vmatpush1.msra.mxu0 %v451_v51  ;;  %1078 = vmatpush1.msra.mxu1 %v453_v52  ;;  %v551_v51 = vld [vmem:[%s2026_s19 + $0xba0] sm:$0xff]  ;;  %v553_v52 = vld [vmem:[%s2026_s19 + $0xbb0] sm:$0xff] }
  0x6f   : > { %990 = vmatprep.subr.mxu0 %v428_v53  ;;  %1079 = vmatprep.subr.mxu1 %v430_v54  ;;  %v528_v53 = vld [vmem:[%s2026_s19 + $0xae8] sm:$0xff]  ;;  %v530_v54 = vld [vmem:[%s2026_s19 + $0xaf8] sm:$0xff] }
  0x70   : > { %1915 = vmatprep.mubr.msk.f32.mxu0 %vm611_vm0, %v2164_v37  ;;  %1919 = vmatprep.mubr.msk.f32.mxu1 %vm611_vm0, %v2164_v37 }
  0x71   : > { %991 = vmatpush1.msra.mxu0 %v427_v55  ;;  %1080 = vmatpush1.msra.mxu1 %v429_v56  ;;  %v527_v55 = vld [vmem:[%s2026_s19 + $0xae0] sm:$0xff]  ;;  %v504_v56 = vld [vmem:[%s2026_s19 + $0xa28] sm:$0xff] }
  0x72   : > { %885 = vmatmul.mubr.f32.gmra.mxu0 %v2171_v40  ;;  %974 = vmatmul.mubr.f32.gmra.mxu1 %v2171_v40 }
  0x73   : > { %992 = vmatprep.subr.mxu0 %v404_v57  ;;  %1081 = vmatprep.subr.mxu1 %v406_v58  ;;  %v506_v57 = vld [vmem:[%s2026_s19 + $0xa38] sm:$0xff]  ;;  %v503_v58 = vld [vmem:[%s2026_s19 + $0xa20] sm:$0xff] }
  0x74   : > { %993 = vmatpush1.msra.mxu0 %v403_v59  ;;  %1082 = vmatpush1.msra.mxu1 %v405_v60  ;;  %v505_v59 = vld [vmem:[%s2026_s19 + $0xa30] sm:$0xff]  ;;  %v480_v60 = vld [vmem:[%s2026_s19 + $0x968] sm:$0xff] }
  0x75   : > { %994 = vmatprep.subr.mxu0 %v380_v61  ;;  %1083 = vmatprep.subr.mxu1 %v382_v62  ;;  %v482_v61 = vld [vmem:[%s2026_s19 + $0x978] sm:$0xff]  ;;  %v479_v62 = vld [vmem:[%s2026_s19 + $0x960] sm:$0xff] }
  0x76   : > { %995 = vmatpush1.msra.mxu0 %v379_v63  ;;  %1084 = vmatpush1.msra.mxu1 %v381_v1  ;;  %v481_v63 = vld [vmem:[%s2026_s19 + $0x970] sm:$0xff]  ;;  %v456_v1 = vld [vmem:[%s2026_s19 + $0x8a8] sm:$0xff] }
  0x77   : > { %996 = vmatprep.subr.mxu0 %v356_v2  ;;  %1085 = vmatprep.subr.mxu1 %v358_v3  ;;  %v458_v2 = vld [vmem:[%s2026_s19 + $0x8b8] sm:$0xff]  ;;  %v455_v3 = vld [vmem:[%s2026_s19 + $0x8a0] sm:$0xff] }
  0x78   : > { %997 = vmatpush1.msra.mxu0 %v355_v4  ;;  %1086 = vmatpush1.msra.mxu1 %v357_v5  ;;  %v457_v4 = vld [vmem:[%s2026_s19 + $0x8b0] sm:$0xff]  ;;  %v432_v5 = vld [vmem:[%s2026_s19 + $0x7e8] sm:$0xff] }
  0x79   : > { %998 = vmatprep.subr.mxu0 %v332_v6  ;;  %1087 = vmatprep.subr.mxu1 %v334_v7  ;;  %v434_v6 = vld [vmem:[%s2026_s19 + $0x7f8] sm:$0xff]  ;;  %v431_v7 = vld [vmem:[%s2026_s19 + $0x7e0] sm:$0xff] }
  0x7a   : > { %999 = vmatpush1.msra.mxu0 %v331_v8  ;;  %1088 = vmatpush1.msra.mxu1 %v333_v9  ;;  %v433_v8 = vld [vmem:[%s2026_s19 + $0x7f0] sm:$0xff]  ;;  %v408_v9 = vld [vmem:[%s2026_s19 + $0x728] sm:$0xff] }
  0x7b   : > { %1000 = vmatprep.subr.mxu0 %v308_v11  ;;  %1089 = vmatprep.subr.mxu1 %v310_v12  ;;  %v410_v11 = vld [vmem:[%s2026_s19 + $0x738] sm:$0xff]  ;;  %v1764_v12 = vld [vmem:[%s2762_s1] sm:$0xff] }
  0x7c   : > { %1001 = vmatpush1.msra.mxu0 %v307_v13  ;;  %1090 = vmatpush1.msra.mxu1 %v309_v14  ;;  %v1982_v13 = vmov 0   ;;  %v407_v14 = vld [vmem:[%s2026_s19 + $0x720] sm:$0xff] }
  0x7d   : > { %1002 = vmatprep.subr.mxu0 %v284_v15  ;;  %1091 = vmatprep.subr.mxu1 %v286_v16  ;;  %v409_v15 = vld [vmem:[%s2026_s19 + $0x730] sm:$0xff]  ;;  %v384_v16 = vld [vmem:[%s2026_s19 + $0x668] sm:$0xff] }
  0x7e   : > { %1003 = vmatpush1.msra.mxu0 %v283_v18  ;;  %1092 = vmatpush1.msra.mxu1 %v285_v19  ;;  %v386_v18 = vld [vmem:[%s2026_s19 + $0x678] sm:$0xff]  ;;  %v383_v19 = vld [vmem:[%s2026_s19 + $0x660] sm:$0xff] }
  0x7f   : > { %1004 = vmatprep.subr.mxu0 %v260_v21  ;;  %1093 = vmatprep.subr.mxu1 %v262_v22  ;;  %v385_v21 = vld [vmem:[%s2026_s19 + $0x670] sm:$0xff]  ;;  %v360_v22 = vld [vmem:[%s2026_s19 + $0x5a8] sm:$0xff] }
  0x80   : > { %1005 = vmatpush1.msra.mxu0 %v259_v23  ;;  %1094 = vmatpush1.msra.mxu1 %v261_v24  ;;  %v362_v23 = vld [vmem:[%s2026_s19 + $0x5b8] sm:$0xff]  ;;  %v359_v24 = vld [vmem:[%s2026_s19 + $0x5a0] sm:$0xff] }
  0x81   : > { %1006 = vmatprep.subr.mxu0 %v236_v25  ;;  %1095 = vmatprep.subr.mxu1 %v238_v26  ;;  %v361_v25 = vld [vmem:[%s2026_s19 + $0x5b0] sm:$0xff]  ;;  %v336_v26 = vld [vmem:[%s2026_s19 + $0x4e8] sm:$0xff] }
  0x82   : > { %1007 = vmatpush1.msra.mxu0 %v235_v28  ;;  %1096 = vmatpush1.msra.mxu1 %v237_v29  ;;  %v338_v28 = vld [vmem:[%s2026_s19 + $0x4f8] sm:$0xff]  ;;  %v335_v29 = vld [vmem:[%s2026_s19 + $0x4e0] sm:$0xff] }
  0x83   : > { %1008 = vmatprep.subr.mxu0 %v212_v31  ;;  %1097 = vmatprep.subr.mxu1 %v214_v32  ;;  %v337_v31 = vld [vmem:[%s2026_s19 + $0x4f0] sm:$0xff]  ;;  %v312_v32 = vld [vmem:[%s2026_s19 + $0x428] sm:$0xff] }
  0x84   : > { %1009 = vmatpush1.msra.mxu0 %v211_v33  ;;  %1098 = vmatpush1.msra.mxu1 %v213_v34  ;;  %v314_v33 = vld [vmem:[%s2026_s19 + $0x438] sm:$0xff]  ;;  %v311_v34 = vld [vmem:[%s2026_s19 + $0x420] sm:$0xff] }
  0x85   : > { %1010 = vmatprep.subr.mxu0 %v188_v35  ;;  %1099 = vmatprep.subr.mxu1 %v190_v36  ;;  %v313_v35 = vld [vmem:[%s2026_s19 + $0x430] sm:$0xff]  ;;  %v288_v36 = vld [vmem:[%s2026_s19 + $0x368] sm:$0xff] }
  0x86   : > { %1011 = vmatpush1.msra.mxu0 %v187_v38  ;;  %1100 = vmatpush1.msra.mxu1 %v189_v39  ;;  %v290_v38 = vld [vmem:[%s2026_s19 + $0x378] sm:$0xff]  ;;  %v287_v39 = vld [vmem:[%s2026_s19 + $0x360] sm:$0xff] }
  0x87   : > { %1040 = vmatprep.subr.mxu0 %v596_v41  ;;  %1129 = vmatprep.subr.mxu1 %v598_v42  ;;  %v289_v41 = vld [vmem:[%s2026_s19 + $0x370] sm:$0xff]  ;;  %v264_v42 = vld [vmem:[%s2026_s19 + $0x2a8] sm:$0xff] }
  0x88   : > { %1041 = vmatpush2.msra.mxu0 %v595_v43  ;;  %1130 = vmatpush2.msra.mxu1 %v597_v44  ;;  %v266_v43 = vld [vmem:[%s2026_s19 + $0x2b8] sm:$0xff]  ;;  %v263_v44 = vld [vmem:[%s2026_s19 + $0x2a0] sm:$0xff] }
  0x89   : > { %1042 = vmatprep.subr.mxu0 %v572_v45  ;;  %1131 = vmatprep.subr.mxu1 %v574_v46  ;;  %v265_v45 = vld [vmem:[%s2026_s19 + $0x2b0] sm:$0xff]  ;;  %v240_v46 = vld [vmem:[%s2026_s19 + $0x1e8] sm:$0xff] }
  0x8a   : > { %1043 = vmatpush2.msra.mxu0 %v571_v47  ;;  %1920 = vmatprep.mubr.msk.f32.mxu0 %vm611_vm0, %v2014_v0  ;;  %v242_v47 = vld [vmem:[%s2026_s19 + $0x1f8] sm:$0xff] }
  0x8b   : > { %1132 = vmatpush2.msra.mxu1 %v573_v48  ;;  %1924 = vmatprep.mubr.msk.f32.mxu1 %vm611_vm0, %v2014_v0  ;;  %v529_v0 = vld [vmem:[%s2026_s19 + $0xaf0] sm:$0xff]  ;;  %v239_v48 = vld [vmem:[%s2026_s19 + $0x1e0] sm:$0xff] }
  0x8c   : > { %1045 = vmatmul.mubr.f32.vlgmr.msra.gmra.mxu0 %v2103_v10  ;;  %1134 = vmatmul.mubr.f32.vlgmr.msra.gmra.mxu1 %v2103_v10 }
  0x8d   : > { %1158 = vmatprep.subr.mxu0 %v552_v49  ;;  %1247 = vmatprep.subr.mxu1 %v554_v50  ;;  %v241_v49 = vld [vmem:[%s2026_s19 + $0x1f0] sm:$0xff]  ;;  %v216_v50 = vld [vmem:[%s2026_s19 + $0x128] sm:$0xff] }
  0x8e   : > { %1159 = vmatpush1.msra.mxu0 %v551_v51  ;;  %1248 = vmatpush1.msra.mxu1 %v553_v52  ;;  %v218_v51 = vld [vmem:[%s2026_s19 + $0x138] sm:$0xff]  ;;  %v215_v52 = vld [vmem:[%s2026_s19 + $0x120] sm:$0xff] }
  0x8f   : > { %1160 = vmatprep.subr.mxu0 %v528_v53  ;;  %1249 = vmatprep.subr.mxu1 %v530_v54  ;;  %v217_v53 = vld [vmem:[%s2026_s19 + $0x130] sm:$0xff]  ;;  %v192_v54 = vld [vmem:[%s2026_s19 + $0x68] sm:$0xff] }
  0x90   : > { %1921 = vmatprep.mubr.msk.f32.mxu0 %vm611_vm0, %v2116_v17  ;;  %1925 = vmatprep.mubr.msk.f32.mxu1 %vm611_vm0, %v2116_v17 }
  0x91   : > { %1161 = vmatpush1.msra.mxu0 %v527_v55  ;;  %1250 = vmatpush1.msra.mxu1 %v529_v0  ;;  %v194_v55 = vld [vmem:[%s2026_s19 + $0x78] sm:$0xff]  ;;  %v191_v0 = vld [vmem:[%s2026_s19 + $0x60] sm:$0xff] }
  0x92   : > { %1051 = vmatmul.mubr.f32.gmra.mxu0 %v2123_v20  ;;  %1140 = vmatmul.mubr.f32.gmra.mxu1 %v2123_v20 }
  0x93   : > { %1162 = vmatprep.subr.mxu0 %v504_v56  ;;  %1251 = vmatprep.subr.mxu1 %v506_v57  ;;  %v193_v56 = vld [vmem:[%s2026_s19 + $0x70] sm:$0xff]  ;;  %v600_v57 = vld [vmem:[%s2026_s19 + $0xd28] sm:$0xff] }
  0x94   : > { %1163 = vmatpush1.msra.mxu0 %v503_v58  ;;  %1252 = vmatpush1.msra.mxu1 %v505_v59  ;;  %v602_v58 = vld [vmem:[%s2026_s19 + $0xd38] sm:$0xff]  ;;  %v599_v59 = vld [vmem:[%s2026_s19 + $0xd20] sm:$0xff] }
  0x95   : > { %1164 = vmatprep.subr.mxu0 %v480_v60  ;;  %1253 = vmatprep.subr.mxu1 %v482_v61  ;;  %v601_v60 = vld [vmem:[%s2026_s19 + $0xd30] sm:$0xff]  ;;  %v576_v61 = vld [vmem:[%s2026_s19 + $0xc68] sm:$0xff] }
  0x96   : > { %1922 = vmatprep.mubr.msk.f32.mxu0 %vm611_vm0, %v2140_v27  ;;  %1926 = vmatprep.mubr.msk.f32.mxu1 %vm611_vm0, %v2140_v27 }
  0x97   : > { %1165 = vmatpush1.msra.mxu0 %v479_v62  ;;  %1254 = vmatpush1.msra.mxu1 %v481_v63  ;;  %v578_v62 = vld [vmem:[%s2026_s19 + $0xc78] sm:$0xff]  ;;  %v575_v63 = vld [vmem:[%s2026_s19 + $0xc60] sm:$0xff] }
  0x98   : > { %1057 = vmatmul.mubr.f32.gmra.mxu0 %v2147_v30  ;;  %1146 = vmatmul.mubr.f32.gmra.mxu1 %v2147_v30 }
  0x99   : > { %1166 = vmatprep.subr.mxu0 %v456_v1  ;;  %1255 = vmatprep.subr.mxu1 %v458_v2  ;;  %v577_v1 = vld [vmem:[%s2026_s19 + $0xc70] sm:$0xff]  ;;  %v2425_v2 = vld [vmem:[%s2761_s0 + $0x8] sm:$0xff] }
  0x9a   : > { %1167 = vmatpush1.msra.mxu0 %v455_v3  ;;  %1256 = vmatpush1.msra.mxu1 %v457_v4  ;;  %v556_v3 = vld [vmem:[%s2026_s19 + $0xbc8] sm:$0xff]  ;;  %v558_v4 = vld [vmem:[%s2026_s19 + $0xbd8] sm:$0xff] }
  0x9b   : > { %1168 = vmatprep.subr.mxu0 %v432_v5  ;;  %1257 = vmatprep.subr.mxu1 %v434_v6  ;;  %v555_v5 = vld [vmem:[%s2026_s19 + $0xbc0] sm:$0xff]  ;;  %v557_v6 = vld [vmem:[%s2026_s19 + $0xbd0] sm:$0xff] }
  0x9c   : > { %1923 = vmatprep.mubr.msk.f32.mxu0 %vm611_vm0, %v2164_v37  ;;  %1927 = vmatprep.mubr.msk.f32.mxu1 %vm611_vm0, %v2164_v37 }
  0x9d   : > { %1169 = vmatpush1.msra.mxu0 %v431_v7  ;;  %1258 = vmatpush1.msra.mxu1 %v433_v8  ;;  %v532_v7 = vld [vmem:[%s2026_s19 + $0xb08] sm:$0xff]  ;;  %v534_v8 = vld [vmem:[%s2026_s19 + $0xb18] sm:$0xff] }
  0x9e   : > { %1965 = vset.pattern.permute.xlu0 %v1982_v13  ;;  %1063 = vmatmul.mubr.f32.gmra.mxu0 %v2171_v40  ;;  %v507_v13 = vld [vmem:[%s2026_s19 + $0xa40] sm:$0xff] }
  0x9f   : > { %1152 = vmatmul.mubr.f32.gmra.mxu1 %v2171_v40  ;;  %1170 = vmatprep.subr.mxu0 %v408_v9  ;;  %v531_v9 = vld [vmem:[%s2026_s19 + $0xb00] sm:$0xff] }
  0xa0   : > { %1259 = vmatprep.subr.mxu1 %v410_v11  ;;  %1767 = vperm.xlu0 %1965, %v1764_v12   ;;  %v533_v11 = vld [vmem:[%s2026_s19 + $0xb10] sm:$0xff]  ;;  %v510_v12 = vld [vmem:[%s2026_s19 + $0xa58] sm:$0xff] }
  0xa1   : > { %1171 = vmatpush1.msra.mxu0 %v407_v14  ;;  %1260 = vmatpush1.msra.mxu1 %v409_v15  ;;  %v509_v14 = vld [vmem:[%s2026_s19 + $0xa50] sm:$0xff]  ;;  %v484_v15 = vld [vmem:[%s2026_s19 + $0x988] sm:$0xff] }
  0xa2   : > { %1172 = vmatprep.subr.mxu0 %v384_v16  ;;  %1261 = vmatprep.subr.mxu1 %v386_v18  ;;  %v486_v16 = vld [vmem:[%s2026_s19 + $0x998] sm:$0xff]  ;;  %v485_v18 = vld [vmem:[%s2026_s19 + $0x990] sm:$0xff] }
  0xa3   : > { %1173 = vmatpush1.msra.mxu0 %v383_v19  ;;  %1262 = vmatpush1.msra.mxu1 %v385_v21  ;;  %v462_v19 = vld [vmem:[%s2026_s19 + $0x8d8] sm:$0xff]  ;;  %v459_v21 = vld [vmem:[%s2026_s19 + $0x8c0] sm:$0xff] }
  0xa4   : > { %1174 = vmatprep.subr.mxu0 %v360_v22  ;;  %1263 = vmatprep.subr.mxu1 %v362_v23  ;;  %v461_v22 = vld [vmem:[%s2026_s19 + $0x8d0] sm:$0xff]  ;;  %v436_v23 = vld [vmem:[%s2026_s19 + $0x808] sm:$0xff] }
  0xa5   : > { %1175 = vmatpush1.msra.mxu0 %v359_v24  ;;  %1264 = vmatpush1.msra.mxu1 %v361_v25  ;;  %v438_v24 = vld [vmem:[%s2026_s19 + $0x818] sm:$0xff]  ;;  %v437_v25 = vld [vmem:[%s2026_s19 + $0x810] sm:$0xff] }
  0xa6   : > { %1176 = vmatprep.subr.mxu0 %v336_v26  ;;  %1265 = vmatprep.subr.mxu1 %v338_v28  ;;  %v414_v26 = vld [vmem:[%s2026_s19 + $0x758] sm:$0xff]  ;;  %v411_v28 = vld [vmem:[%s2026_s19 + $0x740] sm:$0xff] }
  0xa7   : > { %1177 = vmatpush1.msra.mxu0 %v335_v29  ;;  %1266 = vmatpush1.msra.mxu1 %v337_v31  ;;  %v413_v29 = vld [vmem:[%s2026_s19 + $0x750] sm:$0xff]  ;;  %v388_v31 = vld [vmem:[%s2026_s19 + $0x688] sm:$0xff] }
  0xa8   : > { %1178 = vmatprep.subr.mxu0 %v312_v32  ;;  %1267 = vmatprep.subr.mxu1 %v314_v33  ;;  %v390_v32 = vld [vmem:[%s2026_s19 + $0x698] sm:$0xff]  ;;  %v389_v33 = vld [vmem:[%s2026_s19 + $0x690] sm:$0xff] }
  0xa9   : > { %1179 = vmatpush1.msra.mxu0 %v311_v34  ;;  %1268 = vmatpush1.msra.mxu1 %v313_v35  ;;  %v364_v34 = vld [vmem:[%s2026_s19 + $0x5c8] sm:$0xff]  ;;  %v366_v35 = vld [vmem:[%s2026_s19 + $0x5d8] sm:$0xff] }
  0xaa   : > { %1180 = vmatprep.subr.mxu0 %v288_v36  ;;  %1269 = vmatprep.subr.mxu1 %v290_v38  ;;  %v363_v36 = vld [vmem:[%s2026_s19 + $0x5c0] sm:$0xff]  ;;  %v340_v38 = vld [vmem:[%s2026_s19 + $0x508] sm:$0xff] }
  0xab   : > { %1181 = vmatpush1.msra.mxu0 %v287_v39  ;;  %1270 = vmatpush1.msra.mxu1 %v289_v41  ;;  %v342_v39 = vld [vmem:[%s2026_s19 + $0x518] sm:$0xff]  ;;  %v339_v41 = vld [vmem:[%s2026_s19 + $0x500] sm:$0xff] }
  0xac   : > { %1182 = vmatprep.subr.mxu0 %v264_v42  ;;  %1271 = vmatprep.subr.mxu1 %v266_v43  ;;  %v341_v42 = vld [vmem:[%s2026_s19 + $0x510] sm:$0xff]  ;;  %v316_v43 = vld [vmem:[%s2026_s19 + $0x448] sm:$0xff] }
  0xad   : > { %1183 = vmatpush1.msra.mxu0 %v263_v44  ;;  %1272 = vmatpush1.msra.mxu1 %v265_v45  ;;  %v318_v44 = vld [vmem:[%s2026_s19 + $0x458] sm:$0xff]  ;;  %v315_v45 = vld [vmem:[%s2026_s19 + $0x440] sm:$0xff] }
  0xae   : > { %1184 = vmatprep.subr.mxu0 %v240_v46  ;;  %1273 = vmatprep.subr.mxu1 %v242_v47  ;;  %v317_v46 = vld [vmem:[%s2026_s19 + $0x450] sm:$0xff]  ;;  %v292_v47 = vld [vmem:[%s2026_s19 + $0x388] sm:$0xff] }
  0xaf   : > { %1185 = vmatpush1.msra.mxu0 %v239_v48  ;;  %1274 = vmatpush1.msra.mxu1 %v241_v49  ;;  %v294_v48 = vld [vmem:[%s2026_s19 + $0x398] sm:$0xff]  ;;  %v291_v49 = vld [vmem:[%s2026_s19 + $0x380] sm:$0xff] }
  0xb0   : > { %1186 = vmatprep.subr.mxu0 %v216_v50  ;;  %1275 = vmatprep.subr.mxu1 %v218_v51  ;;  %v293_v50 = vld [vmem:[%s2026_s19 + $0x390] sm:$0xff]  ;;  %v268_v51 = vld [vmem:[%s2026_s19 + $0x2c8] sm:$0xff] }
  0xb1   : > { %1187 = vmatpush1.msra.mxu0 %v215_v52  ;;  %1276 = vmatpush1.msra.mxu1 %v217_v53  ;;  %v270_v52 = vld [vmem:[%s2026_s19 + $0x2d8] sm:$0xff]  ;;  %v267_v53 = vld [vmem:[%s2026_s19 + $0x2c0] sm:$0xff] }
  0xb2   : > { %1188 = vmatprep.subr.mxu0 %v192_v54  ;;  %1277 = vmatprep.subr.mxu1 %v194_v55  ;;  %v269_v54 = vld [vmem:[%s2026_s19 + $0x2d0] sm:$0xff]  ;;  %v244_v55 = vld [vmem:[%s2026_s19 + $0x208] sm:$0xff] }
  0xb3   : > { %1189 = vmatpush1.msra.mxu0 %v191_v0  ;;  %1278 = vmatpush1.msra.mxu1 %v193_v56  ;;  %v246_v0 = vld [vmem:[%s2026_s19 + $0x218] sm:$0xff]  ;;  %v243_v56 = vld [vmem:[%s2026_s19 + $0x200] sm:$0xff] }
  0xb4   : > { %1218 = vmatprep.subr.mxu0 %v600_v57  ;;  %1307 = vmatprep.subr.mxu1 %v602_v58  ;;  %v245_v57 = vld [vmem:[%s2026_s19 + $0x210] sm:$0xff]  ;;  %v220_v58 = vld [vmem:[%s2026_s19 + $0x148] sm:$0xff] }
  0xb5   : > { %1219 = vmatpush2.msra.mxu0 %v599_v59  ;;  %1308 = vmatpush2.msra.mxu1 %v601_v60  ;;  %v222_v59 = vld [vmem:[%s2026_s19 + $0x158] sm:$0xff]  ;;  %v219_v60 = vld [vmem:[%s2026_s19 + $0x140] sm:$0xff] }
  0xb6   : > { %1220 = vmatprep.subr.mxu0 %v576_v61  ;;  %1309 = vmatprep.subr.mxu1 %v578_v62  ;;  %v221_v61 = vld [vmem:[%s2026_s19 + $0x150] sm:$0xff]  ;;  %v196_v62 = vld [vmem:[%s2026_s19 + $0x88] sm:$0xff] }
  0xb7   : > { %1221 = vmatpush2.msra.mxu0 %v575_v63  ;;  %1928 = vmatprep.mubr.msk.f32.mxu0 %vm611_vm0, %v2425_v2  ;;  %v198_v63 = vld [vmem:[%s2026_s19 + $0x98] sm:$0xff] }
  0xb8   : > { %1310 = vmatpush2.msra.mxu1 %v577_v1  ;;  %1932 = vmatprep.mubr.msk.f32.mxu1 %vm611_vm0, %v2425_v2  ;;  %v195_v1 = vld [vmem:[%s2026_s19 + $0x80] sm:$0xff] }
  0xb9   : > { %1223 = vmatmul.mubr.f32.vlgmr.msra.gmra.mxu0 %v2103_v10  ;;  %1312 = vmatmul.mubr.f32.vlgmr.msra.gmra.mxu1 %v2103_v10  ;;  %v508_v10 = vld [vmem:[%s2026_s19 + $0xa48] sm:$0xff] }
  0xba   : > { %1336 = vmatprep.subr.mxu0 %v556_v3  ;;  %1425 = vmatprep.subr.mxu1 %v558_v4  ;;  %v197_v3 = vld [vmem:[%s2026_s19 + $0x90] sm:$0xff]  ;;  %v604_v4 = vld [vmem:[%s2026_s19 + $0xd48] sm:$0xff] }
  0xbb   : > { %1337 = vmatpush1.msra.mxu0 %v555_v5  ;;  %1426 = vmatpush1.msra.mxu1 %v557_v6  ;;  %v606_v5 = vld [vmem:[%s2026_s19 + $0xd58] sm:$0xff]  ;;  %v603_v6 = vld [vmem:[%s2026_s19 + $0xd40] sm:$0xff] }
  0xbc   : > { %1338 = vmatprep.subr.mxu0 %v532_v7  ;;  %1427 = vmatprep.subr.mxu1 %v534_v8  ;;  %v605_v7 = vld [vmem:[%s2026_s19 + $0xd50] sm:$0xff]  ;;  %v580_v8 = vld [vmem:[%s2026_s19 + $0xc88] sm:$0xff] }
  0xbd   : > { %1929 = vmatprep.mubr.msk.f32.mxu0 %vm611_vm0, %v2116_v17  ;;  %1933 = vmatprep.mubr.msk.f32.mxu1 %vm611_vm0, %v2116_v17  ;;  %v483_v17 = vld [vmem:[%s2026_s19 + $0x980] sm:$0xff] }
  0xbe   : > { %1339 = vmatpush1.msra.mxu0 %v531_v9  ;;  %1428 = vmatpush1.msra.mxu1 %v533_v11  ;;  %v582_v9 = vld [vmem:[%s2026_s19 + $0xc98] sm:$0xff]  ;;  %v579_v11 = vld [vmem:[%s2026_s19 + $0xc80] sm:$0xff] }
  0xbf   : > { %1229 = vmatmul.mubr.f32.gmra.mxu0 %v2123_v20  ;;  %1318 = vmatmul.mubr.f32.gmra.mxu1 %v2123_v20  ;;  %v460_v20 = vld [vmem:[%s2026_s19 + $0x8c8] sm:$0xff] }
  0xc0   : > { %1340 = vmatprep.subr.mxu0 %v508_v10  ;;  %1429 = vmatprep.subr.mxu1 %v510_v12  ;;  %v581_v10 = vld [vmem:[%s2026_s19 + $0xc90] sm:$0xff]  ;;  %v560_v12 = vld [vmem:[%s2026_s19 + $0xbe8] sm:$0xff] }
  0xc1   : > { %1341 = vmatpush1.msra.mxu0 %v507_v13  ;;  %1430 = vmatpush1.msra.mxu1 %v509_v14  ;;  %v562_v13 = vld [vmem:[%s2026_s19 + $0xbf8] sm:$0xff]  ;;  %v559_v14 = vld [vmem:[%s2026_s19 + $0xbe0] sm:$0xff] }
  0xc2   : > { %1342 = vmatprep.subr.mxu0 %v484_v15  ;;  %1431 = vmatprep.subr.mxu1 %v486_v16  ;;  %v561_v15 = vld [vmem:[%s2026_s19 + $0xbf0] sm:$0xff]  ;;  %v2534_v16 = vld [vmem:[%s2761_s0] sm:$0xff] }
  0xc3   : > { %1930 = vmatprep.mubr.msk.f32.mxu0 %vm611_vm0, %v2140_v27  ;;  %1934 = vmatprep.mubr.msk.f32.mxu1 %vm611_vm0, %v2140_v27  ;;  %v435_v27 = vld [vmem:[%s2026_s19 + $0x800] sm:$0xff] }
  0xc4   : > { %1343 = vmatpush1.msra.mxu0 %v483_v17  ;;  %1432 = vmatpush1.msra.mxu1 %v485_v18  ;;  %v536_v17 = vld [vmem:[%s2026_s19 + $0xb28] sm:$0xff]  ;;  %v538_v18 = vld [vmem:[%s2026_s19 + $0xb38] sm:$0xff] }
  0xc5   : > { %1235 = vmatmul.mubr.f32.gmra.mxu0 %v2147_v30  ;;  %1324 = vmatmul.mubr.f32.gmra.mxu1 %v2147_v30  ;;  %v412_v30 = vld [vmem:[%s2026_s19 + $0x748] sm:$0xff] }
  0xc6   : > { %1344 = vmatprep.subr.mxu0 %v460_v20  ;;  %1433 = vmatprep.subr.mxu1 %v462_v19  ;;  %v535_v20 = vld [vmem:[%s2026_s19 + $0xb20] sm:$0xff]  ;;  %v537_v19 = vld [vmem:[%s2026_s19 + $0xb30] sm:$0xff] }
  0xc7   : > { %1345 = vmatpush1.msra.mxu0 %v459_v21  ;;  %1434 = vmatpush1.msra.mxu1 %v461_v22  ;;  %v2545_v21 = vld [vmem:[%s2761_s0 + $0x18] sm:$0xff]  ;;  %v512_v22 = vld [vmem:[%s2026_s19 + $0xa68] sm:$0xff] }
  0xc8   : > { %1346 = vmatprep.subr.mxu0 %v436_v23  ;;  %1435 = vmatprep.subr.mxu1 %v438_v24  ;;  %v514_v23 = vld [vmem:[%s2026_s19 + $0xa78] sm:$0xff]  ;;  %v511_v24 = vld [vmem:[%s2026_s19 + $0xa60] sm:$0xff] }
  0xc9   : > { %1931 = vmatprep.mubr.msk.f32.mxu0 %vm611_vm0, %v2164_v37  ;;  %1935 = vmatprep.mubr.msk.f32.mxu1 %vm611_vm0, %v2164_v37  ;;  %v387_v37 = vld [vmem:[%s2026_s19 + $0x680] sm:$0xff] }
  0xca   : > { %1347 = vmatpush1.msra.mxu0 %v435_v27  ;;  %1436 = vmatpush1.msra.mxu1 %v437_v25  ;;  %v513_v27 = vld [vmem:[%s2026_s19 + $0xa70] sm:$0xff] }
  0xcb   : > { %1241 = vmatmul.mubr.f32.gmra.mxu0 %v2171_v40  ;;  %1330 = vmatmul.mubr.f32.gmra.mxu1 %v2171_v40  ;;  %v365_v40 = vld [vmem:[%s2026_s19 + $0x5d0] sm:$0xff] }
  0xcc   : > { %1348 = vmatprep.subr.mxu0 %v412_v30  ;;  %1437 = vmatprep.subr.mxu1 %v414_v26  ;;  %v2558_v25 = vld [vmem:[%s2761_s0 + $0x10] sm:$0xff]  ;;  %v488_v30 = vld [vmem:[%s2026_s19 + $0x9a8] sm:$0xff]  ;;  %v490_v26 = vld [vmem:[%s2026_s19 + $0x9b8] sm:$0xff] }
  0xcd   : > { %1349 = vmatpush1.msra.mxu0 %v411_v28  ;;  %1438 = vmatpush1.msra.mxu1 %v413_v29  ;;  %v487_v28 = vld [vmem:[%s2026_s19 + $0x9a0] sm:$0xff]  ;;  %v489_v29 = vld [vmem:[%s2026_s19 + $0x9b0] sm:$0xff] }
  0xce   : > { %1350 = vmatprep.subr.mxu0 %v388_v31  ;;  %1439 = vmatprep.subr.mxu1 %v390_v32  ;;  %v2569_v31 = vld [vmem:[%s2761_s0 + $0x28] sm:$0xff] }
  0xcf   : > { %1351 = vmatpush1.msra.mxu0 %v387_v37  ;;  %1440 = vmatpush1.msra.mxu1 %v389_v33  ;;  %v464_v32 = vld [vmem:[%s2026_s19 + $0x8e8] sm:$0xff]  ;;  %v466_v37 = vld [vmem:[%s2026_s19 + $0x8f8] sm:$0xff]  ;;  %v463_v33 = vld [vmem:[%s2026_s19 + $0x8e0] sm:$0xff] }
  0xd0   : > { %1352 = vmatprep.subr.mxu0 %v364_v34  ;;  %1441 = vmatprep.subr.mxu1 %v366_v35  ;;  %v465_v34 = vld [vmem:[%s2026_s19 + $0x8f0] sm:$0xff]  ;;  %v2582_v35 = vld [vmem:[%s2761_s0 + $0x20] sm:$0xff] }
  0xd1   : > { %1353 = vmatpush1.msra.mxu0 %v363_v36  ;;  %1442 = vmatpush1.msra.mxu1 %v365_v40  ;;  %v440_v36 = vld [vmem:[%s2026_s19 + $0x828] sm:$0xff]  ;;  %v442_v40 = vld [vmem:[%s2026_s19 + $0x838] sm:$0xff] }
  0xd2   : > { %1354 = vmatprep.subr.mxu0 %v340_v38  ;;  %1443 = vmatprep.subr.mxu1 %v342_v39  ;;  %v439_v38 = vld [vmem:[%s2026_s19 + $0x820] sm:$0xff]  ;;  %v441_v39 = vld [vmem:[%s2026_s19 + $0x830] sm:$0xff] }
  0xd3   : > { %1355 = vmatpush1.msra.mxu0 %v339_v41  ;;  %1444 = vmatpush1.msra.mxu1 %v341_v42  ;;  %v2593_v41 = vld [vmem:[%s2761_s0 + $0x38] sm:$0xff]  ;;  %v416_v42 = vld [vmem:[%s2026_s19 + $0x768] sm:$0xff] }
  0xd4   : > { %1356 = vmatprep.subr.mxu0 %v316_v43  ;;  %1445 = vmatprep.subr.mxu1 %v318_v44  ;;  %v418_v43 = vld [vmem:[%s2026_s19 + $0x778] sm:$0xff] }
  0xd5   : > { %1357 = vmatpush1.msra.mxu0 %v315_v45  ;;  %1446 = vmatpush1.msra.mxu1 %v317_v46  ;;  %v415_v46 = vld [vmem:[%s2026_s19 + $0x760] sm:$0xff] }
  0xd6   : > { %1358 = vmatprep.subr.mxu0 %v292_v47  ;;  %1447 = vmatprep.subr.mxu1 %v294_v48  ;;  %v417_v47 = vld [vmem:[%s2026_s19 + $0x770] sm:$0xff] }
  0xd7   : > { %1359 = vmatpush1.msra.mxu0 %v291_v49  ;;  %1448 = vmatpush1.msra.mxu1 %v293_v50  ;;  %v2610_v48 = vld [vmem:[%s2761_s0 + $0x30] sm:$0xff]  ;;  %v392_v49 = vld [vmem:[%s2026_s19 + $0x6a8] sm:$0xff]  ;;  %v394_v50 = vld [vmem:[%s2026_s19 + $0x6b8] sm:$0xff] }
  0xd8   : > { %1360 = vmatprep.subr.mxu0 %v268_v51  ;;  %1449 = vmatprep.subr.mxu1 %v270_v52  ;;  %v391_v51 = vld [vmem:[%s2026_s19 + $0x6a0] sm:$0xff]  ;;  %v393_v52 = vld [vmem:[%s2026_s19 + $0x6b0] sm:$0xff] }
  0xd9   : > { %1361 = vmatpush1.msra.mxu0 %v267_v53  ;;  %1450 = vmatpush1.msra.mxu1 %v269_v54  ;;  %v368_v53 = vld [vmem:[%s2026_s19 + $0x5e8] sm:$0xff]  ;;  %v370_v54 = vld [vmem:[%s2026_s19 + $0x5f8] sm:$0xff] }
  0xda   : > { %1362 = vmatprep.subr.mxu0 %v244_v55  ;;  %1451 = vmatprep.subr.mxu1 %v246_v0 }
  0xdb   : > { %1363 = vmatpush1.msra.mxu0 %v243_v56  ;;  %1452 = vmatpush1.msra.mxu1 %v245_v57  ;;  %v367_v56 = vld [vmem:[%s2026_s19 + $0x5e0] sm:$0xff]  ;;  %v369_v57 = vld [vmem:[%s2026_s19 + $0x5f0] sm:$0xff] }
  0xdc   : > { %1364 = vmatprep.subr.mxu0 %v220_v58  ;;  %1453 = vmatprep.subr.mxu1 %v222_v59  ;;  %v344_v58 = vld [vmem:[%s2026_s19 + $0x528] sm:$0xff]  ;;  %v346_v59 = vld [vmem:[%s2026_s19 + $0x538] sm:$0xff] }
  0xdd   : > { %1365 = vmatpush1.msra.mxu0 %v219_v60  ;;  %1454 = vmatpush1.msra.mxu1 %v221_v61  ;;  %v343_v60 = vld [vmem:[%s2026_s19 + $0x520] sm:$0xff]  ;;  %v345_v61 = vld [vmem:[%s2026_s19 + $0x530] sm:$0xff] }
  0xde   : > { %1366 = vmatprep.subr.mxu0 %v196_v62  ;;  %1455 = vmatprep.subr.mxu1 %v198_v63  ;;  %v320_v62 = vld [vmem:[%s2026_s19 + $0x468] sm:$0xff]  ;;  %v322_v63 = vld [vmem:[%s2026_s19 + $0x478] sm:$0xff] }
  0xdf   : > { %1367 = vmatpush1.msra.mxu0 %v195_v1  ;;  %1456 = vmatpush1.msra.mxu1 %v197_v3 }
  0xe0   : > { %1396 = vmatprep.subr.mxu0 %v604_v4  ;;  %1485 = vmatprep.subr.mxu1 %v606_v5  ;;  %v319_v4 = vld [vmem:[%s2026_s19 + $0x460] sm:$0xff]  ;;  %v321_v5 = vld [vmem:[%s2026_s19 + $0x470] sm:$0xff] }
  0xe1   : > { %1397 = vmatpush2.msra.mxu0 %v603_v6  ;;  %1486 = vmatpush2.msra.mxu1 %v605_v7  ;;  %v296_v6 = vld [vmem:[%s2026_s19 + $0x3a8] sm:$0xff]  ;;  %v298_v7 = vld [vmem:[%s2026_s19 + $0x3b8] sm:$0xff] }
  0xe2   : > { %1398 = vmatprep.subr.mxu0 %v580_v8  ;;  %1487 = vmatprep.subr.mxu1 %v582_v9  ;;  %v295_v8 = vld [vmem:[%s2026_s19 + $0x3a0] sm:$0xff]  ;;  %v297_v9 = vld [vmem:[%s2026_s19 + $0x3b0] sm:$0xff] }
  0xe3   : > { %1399 = vmatpush2.msra.mxu0 %v579_v11  ;;  %1936 = vmatprep.mubr.msk.f32.mxu0 %vm611_vm0, %v2425_v2  ;;  %v272_v11 = vld [vmem:[%s2026_s19 + $0x2e8] sm:$0xff] }
  0xe4   : > { %1488 = vmatpush2.msra.mxu1 %v581_v10  ;;  %1940 = vmatprep.mubr.msk.f32.mxu1 %vm611_vm0, %v2425_v2  ;;  %v274_v10 = vld [vmem:[%s2026_s19 + $0x2f8] sm:$0xff] }
  0xe5   : > { %1401 = vmatmul.mubr.f32.vlgmr.msra.gmra.mxu0 %v2534_v16  ;;  %1490 = vmatmul.mubr.f32.vlgmr.msra.gmra.mxu1 %v2534_v16 }
  0xe6   : > { %1514 = vmatprep.subr.mxu0 %v560_v12  ;;  %1603 = vmatprep.subr.mxu1 %v562_v13 }
  0xe7   : > { %1515 = vmatpush1.msra.mxu0 %v559_v14  ;;  %1604 = vmatpush1.msra.mxu1 %v561_v15  ;;  %v271_v14 = vld [vmem:[%s2026_s19 + $0x2e0] sm:$0xff]  ;;  %v273_v15 = vld [vmem:[%s2026_s19 + $0x2f0] sm:$0xff] }
  0xe8   : > { %1516 = vmatprep.subr.mxu0 %v536_v17  ;;  %1605 = vmatprep.subr.mxu1 %v538_v18  ;;  %v248_v17 = vld [vmem:[%s2026_s19 + $0x228] sm:$0xff]  ;;  %v250_v18 = vld [vmem:[%s2026_s19 + $0x238] sm:$0xff] }
  0xe9   : > { %1937 = vmatprep.mubr.msk.f32.mxu0 %vm611_vm0, %v2545_v21  ;;  %1941 = vmatprep.mubr.msk.f32.mxu1 %vm611_vm0, %v2545_v21 }
  0xea   : > { %1517 = vmatpush1.msra.mxu0 %v535_v20  ;;  %1606 = vmatpush1.msra.mxu1 %v537_v19  ;;  %v247_v20 = vld [vmem:[%s2026_s19 + $0x220] sm:$0xff]  ;;  %v249_v19 = vld [vmem:[%s2026_s19 + $0x230] sm:$0xff] }
  0xeb   : > { %1407 = vmatmul.mubr.f32.gmra.mxu0 %v2558_v25  ;;  %1496 = vmatmul.mubr.f32.gmra.mxu1 %v2558_v25 }
  0xec   : > { %1518 = vmatprep.subr.mxu0 %v512_v22  ;;  %1607 = vmatprep.subr.mxu1 %v514_v23  ;;  %v224_v22 = vld [vmem:[%s2026_s19 + $0x168] sm:$0xff]  ;;  %v226_v23 = vld [vmem:[%s2026_s19 + $0x178] sm:$0xff] }
  0xed   : > { %1519 = vmatpush1.msra.mxu0 %v511_v24  ;;  %1608 = vmatpush1.msra.mxu1 %v513_v27 }
  0xee   : > { %1520 = vmatprep.subr.mxu0 %v488_v30  ;;  %1609 = vmatprep.subr.mxu1 %v490_v26  ;;  %v223_v30 = vld [vmem:[%s2026_s19 + $0x160] sm:$0xff]  ;;  %v225_v26 = vld [vmem:[%s2026_s19 + $0x170] sm:$0xff] }
  0xef   : > { %1938 = vmatprep.mubr.msk.f32.mxu0 %vm611_vm0, %v2569_v31  ;;  %1942 = vmatprep.mubr.msk.f32.mxu1 %vm611_vm0, %v2569_v31 }
  0xf0   : > { %1521 = vmatpush1.msra.mxu0 %v487_v28  ;;  %1610 = vmatpush1.msra.mxu1 %v489_v29  ;;  %v200_v28 = vld [vmem:[%s2026_s19 + $0xa8] sm:$0xff]  ;;  %v202_v29 = vld [vmem:[%s2026_s19 + $0xb8] sm:$0xff] }
  0xf1   : > { %1413 = vmatmul.mubr.f32.gmra.mxu0 %v2582_v35  ;;  %1502 = vmatmul.mubr.f32.gmra.mxu1 %v2582_v35 }
  0xf2   : > { %1522 = vmatprep.subr.mxu0 %v464_v32  ;;  %1611 = vmatprep.subr.mxu1 %v466_v37  ;;  %v199_v32 = vld [vmem:[%s2026_s19 + $0xa0] sm:$0xff]  ;;  %v201_v37 = vld [vmem:[%s2026_s19 + $0xb0] sm:$0xff] }
  0xf3   : > { %1523 = vmatpush1.msra.mxu0 %v463_v33  ;;  %1612 = vmatpush1.msra.mxu1 %v465_v34  ;;  %v608_v33 = vld [vmem:[%s2026_s19 + $0xd68] sm:$0xff]  ;;  %v610_v34 = vld [vmem:[%s2026_s19 + $0xd78] sm:$0xff] }
  0xf4   : > { %1524 = vmatprep.subr.mxu0 %v440_v36  ;;  %1613 = vmatprep.subr.mxu1 %v442_v40  ;;  %v2601_v44 = vpop.f32.mrf.mxu0  ;;  %v2603_v45 = vpop.f32.mrf.mxu1 }
  0xf5   : > { %1939 = vmatprep.mubr.msk.f32.mxu0 %vm611_vm0, %v2593_v41  ;;  %1943 = vmatprep.mubr.msk.f32.mxu1 %vm611_vm0, %v2593_v41 }
  0xf6   : > { %1525 = vmatpush1.msra.mxu0 %v439_v38  ;;  %1614 = vmatpush1.msra.mxu1 %v441_v39  ;;  %v2620_v55 = vpop.f32.mrf.mxu0  ;;  %v2622_v0 = vpop.f32.mrf.mxu1  ;;  %v607_v38 = vld [vmem:[%s2026_s19 + $0xd60] sm:$0xff]  ;;  %v609_v39 = vld [vmem:[%s2026_s19 + $0xd70] sm:$0xff] }
  0xf7   : > { %1419 = vmatmul.mubr.f32.gmra.mxu0 %v2610_v48  ;;  %1508 = vmatmul.mubr.f32.gmra.mxu1 %v2610_v48 }
  0xf8   : > { %1526 = vmatprep.subr.mxu0 %v416_v42  ;;  %1615 = vmatprep.subr.mxu1 %v418_v43  ;;  %v584_v42 = vld [vmem:[%s2026_s19 + $0xca8] sm:$0xff]  ;;  %v586_v43 = vld [vmem:[%s2026_s19 + $0xcb8] sm:$0xff] }
  0xf9   : > { %1527 = vmatpush1.msra.mxu0 %v415_v46  ;;  %1616 = vmatpush1.msra.mxu1 %v417_v47  ;;  %v583_v46 = vld [vmem:[%s2026_s19 + $0xca0] sm:$0xff]  ;;  %v585_v47 = vld [vmem:[%s2026_s19 + $0xcb0] sm:$0xff]  ;;  %s1955_s19 = smul.u32 192, %s2766_s13 }
  0xfa   : > { %1528 = vmatprep.subr.mxu0 %v392_v49  ;;  %1617 = vmatprep.subr.mxu1 %v394_v50  ;;  %v2632_v1 = vpop.f32.mrf.mxu0  ;;  %v2634_v3 = vpop.f32.mrf.mxu1 }
  0xfb   : > { %1529 = vmatpush1.msra.mxu0 %v391_v51  ;;  %1618 = vmatpush1.msra.mxu1 %v393_v52  ;;  %s2712_s29 = scalar_lea.vmem %s2764_s3, %s1955_s19 }
  0xfc   : > { %1530 = vmatprep.subr.mxu0 %v368_v53  ;;  %1619 = vmatprep.subr.mxu1 %v370_v54  ;;  %v2644_v12 = vpop.f32.mrf.mxu0  ;;  %v2646_v13 = vpop.f32.mrf.mxu1 }
  0xfd   : > { %1531 = vmatpush1.msra.mxu0 %v367_v56  ;;  %1620 = vmatpush1.msra.mxu1 %v369_v57 }
  0xfe   : > { %1532 = vmatprep.subr.mxu0 %v344_v58  ;;  %1621 = vmatprep.subr.mxu1 %v346_v59  ;;  %v1695_v58 = vmax.f32 %v2622_v0, %v2646_v13 }
  0xff   : > { %1533 = vmatpush1.msra.mxu0 %v343_v60  ;;  %1622 = vmatpush1.msra.mxu1 %v345_v61 }
 0x100   : > { %1534 = vmatprep.subr.mxu0 %v320_v62  ;;  %1623 = vmatprep.subr.mxu1 %v322_v63  ;;  %v702_v24 = vpop.f32.mrf.mxu0  ;;  %v791_v27 = vpop.f32.mrf.mxu1 }
 0x101   : > { %1535 = vmatpush1.msra.mxu0 %v319_v4  ;;  %1624 = vmatpush1.msra.mxu1 %v321_v5 }
 0x102   : > { %1536 = vmatprep.subr.mxu0 %v296_v6  ;;  %1625 = vmatprep.subr.mxu1 %v298_v7  ;;  %v704_v36 = vpop.f32.mrf.mxu0  ;;  %v793_v40 = vpop.f32.mrf.mxu1 }
 0x103   : > { %1537 = vmatpush1.msra.mxu0 %v295_v8  ;;  %1626 = vmatpush1.msra.mxu1 %v297_v9 }
 0x104   : > { %1538 = vmatprep.subr.mxu0 %v272_v11  ;;  %1627 = vmatprep.subr.mxu1 %v274_v10 }
 0x105   : > { %1539 = vmatpush1.msra.mxu0 %v271_v14  ;;  %1628 = vmatpush1.msra.mxu1 %v273_v15 }
 0x106   : > { %1540 = vmatprep.subr.mxu0 %v248_v17  ;;  %1629 = vmatprep.subr.mxu1 %v250_v18  ;;  %v708_v49 = vpop.f32.mrf.mxu0  ;;  %v797_v50 = vpop.f32.mrf.mxu1 }
 0x107   : > { %1541 = vmatpush1.msra.mxu0 %v247_v20  ;;  %1630 = vmatpush1.msra.mxu1 %v249_v19  ;;  %v1716_v53 = vmax.f32 %v702_v24, %v708_v49  ;;  %v1718_v54 = vmax.f32 %v791_v27, %v797_v50 }
 0x108   : > { %1542 = vmatprep.subr.mxu0 %v224_v22  ;;  %1631 = vmatprep.subr.mxu1 %v226_v23  ;;  %v710_v51 = vpop.f32.mrf.mxu0  ;;  %v799_v52 = vpop.f32.mrf.mxu1 }
 0x109   : > { %1543 = vmatpush1.msra.mxu0 %v223_v30  ;;  %1632 = vmatpush1.msra.mxu1 %v225_v26  ;;  %v1717_v56 = vmax.f32 %v704_v36, %v710_v51  ;;  %v1719_v57 = vmax.f32 %v793_v40, %v799_v52 }
 0x10a   : > { %1544 = vmatprep.subr.mxu0 %v200_v28  ;;  %1633 = vmatprep.subr.mxu1 %v202_v29 }
 0x10b   : > { %1545 = vmatpush1.msra.mxu0 %v199_v32  ;;  %1634 = vmatpush1.msra.mxu1 %v201_v37  ;;  %v1743_v61 = vmax.f32 %v1695_v58, %v1719_v57 }
 0x10c   : > { %1574 = vmatprep.subr.mxu0 %v608_v33  ;;  %1663 = vmatprep.subr.mxu1 %v610_v34 }
 0x10d   : > { %1575 = vmatpush2.msra.mxu0 %v607_v38  ;;  %1664 = vmatpush2.msra.mxu1 %v609_v39 }
 0x10e   : > { %1576 = vmatprep.subr.mxu0 %v584_v42  ;;  %1665 = vmatprep.subr.mxu1 %v586_v43 }
 0x10f   : > { %1577 = vmatpush2.msra.mxu0 %v583_v46  ;;  %1944 = vmatprep.mubr.msk.f32.mxu0 %vm611_vm0, %v2425_v2 }
 0x110   : > { %1666 = vmatpush2.msra.mxu1 %v585_v47  ;;  %1948 = vmatprep.mubr.msk.f32.mxu1 %vm611_vm0, %v2425_v2  ;;  %v1692_v2 = vmax.f32 %v2601_v44, %v2632_v1 }
 0x111   : > { %1579 = vmatmul.mubr.f32.vlgmr.msra.gmra.mxu0 %v2534_v16  ;;  %1668 = vmatmul.mubr.f32.vlgmr.msra.gmra.mxu1 %v2534_v16  ;;  %v1694_v16 = vmax.f32 %v2603_v45, %v2634_v3 }
 0x112   : > { %1945 = vmatprep.mubr.msk.f32.mxu0 %vm611_vm0, %v2545_v21  ;;  %1949 = vmatprep.mubr.msk.f32.mxu1 %vm611_vm0, %v2545_v21  ;;  %v1693_v21 = vmax.f32 %v2620_v55, %v2644_v12  ;;  %v1740_v59 = vmax.f32 %v1692_v2, %v1716_v53 }
 0x114   : > { %v1741_v60 = vmax.f32 %v1693_v21, %v1717_v56 }
 0x115   : > { %1585 = vmatmul.mubr.f32.gmra.mxu0 %v2558_v25  ;;  %1674 = vmatmul.mubr.f32.gmra.mxu1 %v2558_v25  ;;  %v1742_v25 = vmax.f32 %v1694_v16, %v1718_v54 }
 0x116   : > { %1946 = vmatprep.mubr.msk.f32.mxu0 %vm611_vm0, %v2569_v31  ;;  %1950 = vmatprep.mubr.msk.f32.mxu1 %vm611_vm0, %v2569_v31 }
 0x119   : > { %1591 = vmatmul.mubr.f32.gmra.mxu0 %v2582_v35  ;;  %1680 = vmatmul.mubr.f32.gmra.mxu1 %v2582_v35 }
 0x11a   : > { %1947 = vmatprep.mubr.msk.f32.mxu0 %vm611_vm0, %v2593_v41  ;;  %1951 = vmatprep.mubr.msk.f32.mxu1 %vm611_vm0, %v2593_v41 }
 0x11b   : > { %v2701_v31 = vpop.permute.xlu0 %1767 }
 0x11c   : > { %v1770_v44 = vadd.f32 %v2701_v31, %v1740_v59  ;;  %v1771_v45 = vadd.f32 %v2701_v31, %v1741_v60  ;;  %v1772_v55 = vadd.f32 %v2701_v31, %v1742_v25  ;;  %v1773_v0 = vadd.f32 %v2701_v31, %v1743_v61 }
 0x11d   : > { %1597 = vmatmul.mubr.f32.gmra.mxu0 %v2610_v48  ;;  %1686 = vmatmul.mubr.f32.gmra.mxu1 %v2610_v48 }
 0x11e   : > { %v1794_v35 = vmax.f32 %v1770_v44, 0.0  ;;  %v1795_v41 = vmax.f32 %v1771_v45, 0.0  ;;  %v1796_v62 = vmax.f32 %v1772_v55, 0.0  ;;  %v1797_v63 = vmax.f32 %v1773_v0, 0.0 }
 0x120   : > { %1818 = vst [vmem:[%s2712_s29] sm:$0x3f] %v1794_v35  ;;  %1819 = vst [vmem:[%s2712_s29 + $0x8] sm:$0x3f] %v1795_v41  ;;  %v868_v1 = vpop.f32.mrf.mxu0  ;;  %v957_v3 = vpop.f32.mrf.mxu1 }
 0x121   : > { %1820 = vst [vmem:[%s2712_s29 + $0x10] sm:$0x3f] %v1796_v62  ;;  %1821 = vst [vmem:[%s2712_s29 + $0x18] sm:$0x3f] %v1797_v63 }
 0x122   : > { %v870_v48 = vpop.f32.mrf.mxu0  ;;  %v959_v4 = vpop.f32.mrf.mxu1 }
 0x126   : > { %v874_v5 = vpop.f32.mrf.mxu0  ;;  %v963_v6 = vpop.f32.mrf.mxu1 }
 0x127   : > { %v1696_v15 = vmax.f32 %v868_v1, %v874_v5  ;;  %v1698_v17 = vmax.f32 %v957_v3, %v963_v6 }
 0x128   : > { %v876_v7 = vpop.f32.mrf.mxu0  ;;  %v965_v8 = vpop.f32.mrf.mxu1 }
 0x129   : > { %v1697_v19 = vmax.f32 %v870_v48, %v876_v7  ;;  %v1699_v22 = vmax.f32 %v959_v4, %v965_v8 }
 0x12c   : > { %v880_v9 = vpop.f32.mrf.mxu0  ;;  %v969_v11 = vpop.f32.mrf.mxu1 }
 0x12e   : > { %v882_v10 = vpop.f32.mrf.mxu0  ;;  %v971_v12 = vpop.f32.mrf.mxu1 }
 0x132   : > { %v886_v13 = vpop.f32.mrf.mxu0  ;;  %v975_v14 = vpop.f32.mrf.mxu1 }
 0x133   : > { %v1720_v18 = vmax.f32 %v880_v9, %v886_v13  ;;  %v1722_v20 = vmax.f32 %v969_v11, %v975_v14 }
 0x134   : > { %v888_v23 = vpop.f32.mrf.mxu0  ;;  %v977_v24 = vpop.f32.mrf.mxu1 }
 0x135   : > { %v1744_v27 = vmax.f32 %v1696_v15, %v1720_v18  ;;  %v1746_v30 = vmax.f32 %v1698_v17, %v1722_v20  ;;  %v1721_v26 = vmax.f32 %v882_v10, %v888_v23  ;;  %v1723_v28 = vmax.f32 %v971_v12, %v977_v24 }
 0x137   : > { %v1774_v29 = vadd.f32 %v2701_v31, %v1744_v27  ;;  %v1776_v32 = vadd.f32 %v2701_v31, %v1746_v30  ;;  %v1745_v37 = vmax.f32 %v1697_v19, %v1721_v26  ;;  %v1747_v33 = vmax.f32 %v1699_v22, %v1723_v28 }
 0x139   : > { %v1798_v34 = vmax.f32 %v1774_v29, 0.0  ;;  %v1800_v36 = vmax.f32 %v1776_v32, 0.0  ;;  %v1775_v40 = vadd.f32 %v2701_v31, %v1745_v37  ;;  %v1777_v38 = vadd.f32 %v2701_v31, %v1747_v33 }
 0x13b   : > { %1822 = vst [vmem:[%s2712_s29 + $0x20] sm:$0x3f] %v1798_v34  ;;  %1824 = vst [vmem:[%s2712_s29 + $0x30] sm:$0x3f] %v1800_v36  ;;  %v1799_v39 = vmax.f32 %v1775_v40, 0.0  ;;  %v1801_v42 = vmax.f32 %v1777_v38, 0.0 }
 0x13d   : > { %1823 = vst [vmem:[%s2712_s29 + $0x28] sm:$0x3f] %v1799_v39  ;;  %1825 = vst [vmem:[%s2712_s29 + $0x38] sm:$0x3f] %v1801_v42 }
 0x14c   : > { %v1046_v43 = vpop.f32.mrf.mxu0  ;;  %v1135_v46 = vpop.f32.mrf.mxu1 }
 0x14e   : > { %v1048_v47 = vpop.f32.mrf.mxu0  ;;  %v1137_v49 = vpop.f32.mrf.mxu1 }
 0x152   : > { %v1052_v50 = vpop.f32.mrf.mxu0  ;;  %v1141_v51 = vpop.f32.mrf.mxu1 }
 0x153   : > { %v1700_v21 = vmax.f32 %v1046_v43, %v1052_v50  ;;  %v1702_v25 = vmax.f32 %v1135_v46, %v1141_v51 }
 0x154   : > { %v1054_v52 = vpop.f32.mrf.mxu0  ;;  %v1143_v53 = vpop.f32.mrf.mxu1 }
 0x155   : > { %v1701_v44 = vmax.f32 %v1048_v47, %v1054_v52  ;;  %v1703_v35 = vmax.f32 %v1137_v49, %v1143_v53 }
 0x158   : > { %v1058_v54 = vpop.f32.mrf.mxu0  ;;  %v1147_v56 = vpop.f32.mrf.mxu1 }
 0x15a   : > { %v1060_v57 = vpop.f32.mrf.mxu0  ;;  %v1149_v2 = vpop.f32.mrf.mxu1 }
 0x15e   : > { %v1064_v16 = vpop.f32.mrf.mxu0 }
 0x15f   : > { %v1724_v58 = vmax.f32 %v1058_v54, %v1064_v16  ;;  %v1153_v59 = vpop.f32.mrf.mxu1 }
 0x160   : > { %v1726_v60 = vmax.f32 %v1147_v56, %v1153_v59  ;;  %v1066_v61 = vpop.f32.mrf.mxu0 }
 0x161   : > { %v1748_v45 = vmax.f32 %v1700_v21, %v1724_v58  ;;  %v1725_v55 = vmax.f32 %v1060_v57, %v1066_v61  ;;  %v1155_v0 = vpop.f32.mrf.mxu1 }
 0x162   : > { %v1750_v41 = vmax.f32 %v1702_v25, %v1726_v60  ;;  %v1727_v62 = vmax.f32 %v1149_v2, %v1155_v0 }
 0x163   : > { %v1778_v63 = vadd.f32 %v2701_v31, %v1748_v45  ;;  %v1749_v1 = vmax.f32 %v1701_v44, %v1725_v55 }
 0x164   : > { %v1780_v3 = vadd.f32 %v2701_v31, %v1750_v41  ;;  %v1751_v48 = vmax.f32 %v1703_v35, %v1727_v62 }
 0x165   : > { %v1802_v4 = vmax.f32 %v1778_v63, 0.0  ;;  %v1779_v5 = vadd.f32 %v2701_v31, %v1749_v1 }
 0x166   : > { %v1804_v6 = vmax.f32 %v1780_v3, 0.0  ;;  %v1781_v7 = vadd.f32 %v2701_v31, %v1751_v48 }
 0x167   : > { %1826 = vst [vmem:[%s2712_s29 + $0x40] sm:$0x3f] %v1802_v4  ;;  %v1803_v8 = vmax.f32 %v1779_v5, 0.0 }
 0x168   : > { %1828 = vst [vmem:[%s2712_s29 + $0x50] sm:$0x3f] %v1804_v6  ;;  %v1805_v9 = vmax.f32 %v1781_v7, 0.0 }
 0x169   : > { %1827 = vst [vmem:[%s2712_s29 + $0x48] sm:$0x3f] %v1803_v8 }
 0x16a   : > { %1829 = vst [vmem:[%s2712_s29 + $0x58] sm:$0x3f] %v1805_v9 }
 0x179   : > { %v1224_v11 = vpop.f32.mrf.mxu0  ;;  %v1313_v10 = vpop.f32.mrf.mxu1 }
 0x17b   : > { %v1226_v12 = vpop.f32.mrf.mxu0  ;;  %v1315_v13 = vpop.f32.mrf.mxu1 }
 0x17f   : > { %v1230_v14 = vpop.f32.mrf.mxu0  ;;  %v1319_v15 = vpop.f32.mrf.mxu1 }
 0x180   : > { %v1704_v30 = vmax.f32 %v1224_v11, %v1230_v14  ;;  %v1706_v26 = vmax.f32 %v1313_v10, %v1319_v15 }
 0x181   : > { %v1232_v17 = vpop.f32.mrf.mxu0  ;;  %v1321_v18 = vpop.f32.mrf.mxu1 }
 0x182   : > { %v1705_v32 = vmax.f32 %v1226_v12, %v1232_v17  ;;  %v1707_v37 = vmax.f32 %v1315_v13, %v1321_v18 }
 0x185   : > { %v1236_v20 = vpop.f32.mrf.mxu0  ;;  %v1325_v19 = vpop.f32.mrf.mxu1 }
 0x187   : > { %v1238_v22 = vpop.f32.mrf.mxu0  ;;  %v1327_v23 = vpop.f32.mrf.mxu1 }
 0x18b   : > { %v1242_v24 = vpop.f32.mrf.mxu0  ;;  %v1331_v27 = vpop.f32.mrf.mxu1 }
 0x18c   : > { %v1728_v28 = vmax.f32 %v1236_v20, %v1242_v24  ;;  %v1730_v29 = vmax.f32 %v1325_v19, %v1331_v27 }
 0x18d   : > { %v1244_v33 = vpop.f32.mrf.mxu0  ;;  %v1333_v34 = vpop.f32.mrf.mxu1 }
 0x18e   : > { %v1752_v36 = vmax.f32 %v1704_v30, %v1728_v28  ;;  %v1754_v40 = vmax.f32 %v1706_v26, %v1730_v29  ;;  %v1729_v38 = vmax.f32 %v1238_v22, %v1244_v33  ;;  %v1731_v39 = vmax.f32 %v1327_v23, %v1333_v34 }
 0x190   : > { %v1782_v42 = vadd.f32 %v2701_v31, %v1752_v36  ;;  %v1784_v43 = vadd.f32 %v2701_v31, %v1754_v40  ;;  %v1753_v46 = vmax.f32 %v1705_v32, %v1729_v38  ;;  %v1755_v47 = vmax.f32 %v1707_v37, %v1731_v39 }
 0x192   : > { %v1806_v49 = vmax.f32 %v1782_v42, 0.0  ;;  %v1808_v50 = vmax.f32 %v1784_v43, 0.0  ;;  %v1783_v51 = vadd.f32 %v2701_v31, %v1753_v46  ;;  %v1785_v52 = vadd.f32 %v2701_v31, %v1755_v47 }
 0x194   : > { %1830 = vst [vmem:[%s2712_s29 + $0x60] sm:$0x3f] %v1806_v49  ;;  %1832 = vst [vmem:[%s2712_s29 + $0x70] sm:$0x3f] %v1808_v50  ;;  %v1807_v53 = vmax.f32 %v1783_v51, 0.0  ;;  %v1809_v54 = vmax.f32 %v1785_v52, 0.0 }
 0x196   : > { %1831 = vst [vmem:[%s2712_s29 + $0x68] sm:$0x3f] %v1807_v53  ;;  %1833 = vst [vmem:[%s2712_s29 + $0x78] sm:$0x3f] %v1809_v54 }
 0x1a5   : > { %v1402_v56 = vpop.f32.mrf.mxu0  ;;  %v1491_v57 = vpop.f32.mrf.mxu1 }
 0x1a7   : > { %v1404_v2 = vpop.f32.mrf.mxu0  ;;  %v1493_v16 = vpop.f32.mrf.mxu1 }
 0x1ab   : > { %v1408_v21 = vpop.f32.mrf.mxu0  ;;  %v1497_v58 = vpop.f32.mrf.mxu1 }
 0x1ac   : > { %v1708_v35 = vmax.f32 %v1402_v56, %v1408_v21  ;;  %v1710_v41 = vmax.f32 %v1491_v57, %v1497_v58 }
 0x1ad   : > { %v1410_v59 = vpop.f32.mrf.mxu0  ;;  %v1499_v25 = vpop.f32.mrf.mxu1 }
 0x1ae   : > { %v1709_v1 = vmax.f32 %v1404_v2, %v1410_v59  ;;  %v1711_v3 = vmax.f32 %v1493_v16, %v1499_v25 }
 0x1b1   : > { %v1414_v60 = vpop.f32.mrf.mxu0  ;;  %v1503_v61 = vpop.f32.mrf.mxu1 }
 0x1b3   : > { %v1416_v44 = vpop.f32.mrf.mxu0  ;;  %v1505_v45 = vpop.f32.mrf.mxu1 }
 0x1b7   : > { %v1420_v55 = vpop.f32.mrf.mxu0  ;;  %v1509_v0 = vpop.f32.mrf.mxu1 }
 0x1b8   : > { %v1732_v62 = vmax.f32 %v1414_v60, %v1420_v55  ;;  %v1734_v63 = vmax.f32 %v1503_v61, %v1509_v0 }
 0x1b9   : > { %v1422_v48 = vpop.f32.mrf.mxu0  ;;  %v1511_v4 = vpop.f32.mrf.mxu1 }
 0x1ba   : > { %v1756_v5 = vmax.f32 %v1708_v35, %v1732_v62  ;;  %v1758_v6 = vmax.f32 %v1710_v41, %v1734_v63  ;;  %v1733_v7 = vmax.f32 %v1416_v44, %v1422_v48  ;;  %v1735_v8 = vmax.f32 %v1505_v45, %v1511_v4 }
 0x1bc   : > { %v1786_v9 = vadd.f32 %v2701_v31, %v1756_v5  ;;  %v1788_v11 = vadd.f32 %v2701_v31, %v1758_v6  ;;  %v1757_v10 = vmax.f32 %v1709_v1, %v1733_v7  ;;  %v1759_v12 = vmax.f32 %v1711_v3, %v1735_v8 }
 0x1be   : > { %v1810_v13 = vmax.f32 %v1786_v9, 0.0  ;;  %v1812_v14 = vmax.f32 %v1788_v11, 0.0  ;;  %v1787_v15 = vadd.f32 %v2701_v31, %v1757_v10  ;;  %v1789_v17 = vadd.f32 %v2701_v31, %v1759_v12 }
 0x1c0   : > { %1834 = vst [vmem:[%s2712_s29 + $0x80] sm:$0x3f] %v1810_v13  ;;  %1836 = vst [vmem:[%s2712_s29 + $0x90] sm:$0x3f] %v1812_v14  ;;  %v1811_v18 = vmax.f32 %v1787_v15, 0.0  ;;  %v1813_v20 = vmax.f32 %v1789_v17, 0.0 }
 0x1c2   : > { %1835 = vst [vmem:[%s2712_s29 + $0x88] sm:$0x3f] %v1811_v18  ;;  %1837 = vst [vmem:[%s2712_s29 + $0x98] sm:$0x3f] %v1813_v20 }
 0x1d1   : > { %v1580_v19 = vpop.f32.mrf.mxu0  ;;  %v1669_v22 = vpop.f32.mrf.mxu1 }
 0x1d3   : > { %v1582_v23 = vpop.f32.mrf.mxu0  ;;  %v1671_v24 = vpop.f32.mrf.mxu1 }
 0x1d5   : > { %v1586_v27 = vpop.f32.mrf.mxu0  ;;  %v1675_v30 = vpop.f32.mrf.mxu1 }
 0x1d6   : > { %v1712_v40 = vmax.f32 %v1580_v19, %v1586_v27  ;;  %v1714_v38 = vmax.f32 %v1669_v22, %v1675_v30 }
 0x1d7   : > { %v1588_v26 = vpop.f32.mrf.mxu0  ;;  %v1677_v28 = vpop.f32.mrf.mxu1 }
 0x1d8   : > { %v1713_v43 = vmax.f32 %v1582_v23, %v1588_v26  ;;  %v1715_v46 = vmax.f32 %v1671_v24, %v1677_v28 }
 0x1d9   : > { %v1592_v29 = vpop.f32.mrf.mxu0  ;;  %v1681_v32 = vpop.f32.mrf.mxu1 }
 0x1db   : > { %v1594_v37 = vpop.f32.mrf.mxu0  ;;  %v1683_v33 = vpop.f32.mrf.mxu1 }
 0x1dd   : > { %v1598_v34 = vpop.f32.mrf.mxu0  ;;  %v1687_v36 = vpop.f32.mrf.mxu1 }
 0x1de   : > { %v1736_v39 = vmax.f32 %v1592_v29, %v1598_v34  ;;  %v1738_v42 = vmax.f32 %v1681_v32, %v1687_v36 }
 0x1df   : > { %v1600_v47 = vpop.f32.mrf.mxu0  ;;  %v1689_v49 = vpop.f32.mrf.mxu1 }
 0x1e0   : > { %v1760_v50 = vmax.f32 %v1712_v40, %v1736_v39  ;;  %v1762_v51 = vmax.f32 %v1714_v38, %v1738_v42  ;;  %v1737_v52 = vmax.f32 %v1594_v37, %v1600_v47  ;;  %v1739_v53 = vmax.f32 %v1683_v33, %v1689_v49 }
 0x1e2   : > { %v1790_v54 = vadd.f32 %v2701_v31, %v1760_v50  ;;  %v1792_v56 = vadd.f32 %v2701_v31, %v1762_v51  ;;  %v1761_v57 = vmax.f32 %v1713_v43, %v1737_v52  ;;  %v1763_v2 = vmax.f32 %v1715_v46, %v1739_v53 }
 0x1e4   : > { %v1814_v16 = vmax.f32 %v1790_v54, 0.0  ;;  %v1816_v21 = vmax.f32 %v1792_v56, 0.0  ;;  %v1791_v58 = vadd.f32 %v2701_v31, %v1761_v57  ;;  %v1793_v59 = vadd.f32 %v2701_v31, %v1763_v2 }
 0x1e6   : > { %1838 = vst [vmem:[%s2712_s29 + $0xa0] sm:$0x3f] %v1814_v16  ;;  %1840 = vst [vmem:[%s2712_s29 + $0xb0] sm:$0x3f] %v1816_v21  ;;  %v1815_v25 = vmax.f32 %v1791_v58, 0.0  ;;  %v1817_v60 = vmax.f32 %v1793_v59, 0.0 }
 0x1e8   : > { %1839 = vst [vmem:[%s2712_s29 + $0xa8] sm:$0x3f] %v1815_v25  ;;  %1841 = vst [vmem:[%s2712_s29 + $0xb8] sm:$0x3f] %v1817_v60 }
 0x1e9 PF: > { %s13_s12 = sadd.s32 1, %s1980_s12  }
 0x1ea   : > { %p10_p4 = scmp.ge.s32.totalorder %s13_s12, 4  }
 0x1ec   :  { %12 = sbr.rel (!%p10_p4) target bundleno = 1 (0x1), region = 62 }

// kernel: conv2d_layer1_forward.4
= control target key start
LH: loop header
LB: loop body
LE: loop exit
PB: predicated region body
PF: predicated region fallthrough
CT: control target
= control target key end

     0   :  { %s936_s12 = smov 0   ;;  %s1337_s0 = inlined_call_operand.vmem [shape: f32[64,216], index: 0, kind: input, shape index: {}]   ;;  %s1338_s1 = inlined_call_operand.vmem [shape: f32[16,1], index: 1, kind: input, shape index: {}]   ;;  %s1339_s2 = inlined_call_operand.vmem [shape: f32[2,216,620], index: 2, kind: input, shape index: {}]   ;;  %s1340_s3 = inlined_call_operand.vmem [shape: f32[2,16,620], index: 3, kind: output, shape index: {}]  }
   0x1 LB: > { %s806_s13 = sadd.s32 4294967295, %s912_s12   ;;  %p810_p0 = scmp.ge.s32.totalorder %s912_s12, 1  ;;  %s912_s12 = sphi %s936_s12, %s13_s12  }
   0x2   : > { %p137_p1 = scmp.lt.s32.totalorder %s912_s12, 3 }
   0x4   : > { %p138_p2 = pnand %p810_p0, %p137_p1 }
   0x5   : > { %p161_p3 = scmp.lt.s32.totalorder (!%p138_p2), %s806_s13, 1 }
   0x6   : > { %141 = sbr.rel (%p138_p2) target bundleno = 354 (0x162), region = 32 }
   0xb   : > { %v947_v0 = vld [vmem:[%s1337_s0 + $0x8] sm:$0xff]  ;;  %vm322_vm0 = vcmask 719872   ;;  %s1342_s13 = smov (!%p161_p3, %s806_s13), 1  ;;  %vm744_vm1 = vcmask 883712  }
   0xc   : > { %813 = vmatprep.mubr.msk.f32.mxu0 %vm322_vm0, %v947_v0  ;;  %821 = vmatprep.mubr.msk.f32.mxu1 %vm322_vm0, %v947_v0  ;;  %s893_s16 = smul.u32 1080, %s1342_s13 }
   0xd   : > { %s894_s29 = smul.u32 80, %s1342_s13 }
   0xe   : > { %s959_s19 = scalar_lea.vmem %s1339_s2, %s893_s16 }
   0xf   : > { %v263_v1 = vld [vmem:[%s959_s19 + $0x260] sm:$0xff]  ;;  %v265_v2 = vld [vmem:[%s959_s19 + $0x270] sm:$0xff]  ;;  %v262_v3 = vld [vmem:[%s959_s19 + $0x258] sm:$0xff]  ;;  %s1317_s5 = scalar_lea.vmem %s1340_s3, %s894_s29 }
  0x10   : > { %347 = vmatprep.subr.mxu0 %v263_v1  ;;  %460 = vmatprep.subr.mxu1 %v265_v2  ;;  %v264_v4 = vld [vmem:[%s959_s19 + $0x268] sm:$0xff]  ;;  %v258_v5 = vld [vmem:[%s959_s19 + $0x238] sm:$0xff]  ;;  %v257_v7 = vld [vmem:[%s959_s19 + $0x230] sm:$0xff] }
  0x11   : > { %v260_v6 = vld [vmem:[%s959_s19 + $0x248] sm:$0xff]  ;;  %348 = vmatpush1.msra.mxu0 %v262_v3  ;;  %461 = vmatpush1.msra.mxu1 %v264_v4  ;;  %v259_v8 = vld [vmem:[%s959_s19 + $0x240] sm:$0xff]  ;;  %v253_v9 = vld [vmem:[%s959_s19 + $0x210] sm:$0xff] }
  0x12   : > { %349 = vmatprep.subr.mxu0 %v258_v5  ;;  %462 = vmatprep.subr.mxu1 %v260_v6  ;;  %v255_v10 = vld [vmem:[%s959_s19 + $0x220] sm:$0xff]  ;;  %v252_v11 = vld [vmem:[%s959_s19 + $0x208] sm:$0xff]  ;;  %v254_v12 = vld [vmem:[%s959_s19 + $0x218] sm:$0xff] }
  0x13   : > { %350 = vmatpush1.msra.mxu0 %v257_v7  ;;  %463 = vmatpush1.msra.mxu1 %v259_v8  ;;  %v248_v13 = vld [vmem:[%s959_s19 + $0x1e8] sm:$0xff]  ;;  %v250_v14 = vld [vmem:[%s959_s19 + $0x1f8] sm:$0xff]  ;;  %v247_v15 = vld [vmem:[%s959_s19 + $0x1e0] sm:$0xff] }
  0x14   : > { %351 = vmatprep.subr.mxu0 %v253_v9  ;;  %464 = vmatprep.subr.mxu1 %v255_v10  ;;  %v249_v16 = vld [vmem:[%s959_s19 + $0x1f0] sm:$0xff]  ;;  %v243_v17 = vld [vmem:[%s959_s19 + $0x1c0] sm:$0xff]  ;;  %v242_v19 = vld [vmem:[%s959_s19 + $0x1b8] sm:$0xff] }
  0x15   : > { %352 = vmatpush1.msra.mxu0 %v252_v11  ;;  %465 = vmatpush1.msra.mxu1 %v254_v12  ;;  %v245_v18 = vld [vmem:[%s959_s19 + $0x1d0] sm:$0xff]  ;;  %v244_v20 = vld [vmem:[%s959_s19 + $0x1c8] sm:$0xff]  ;;  %v238_v21 = vld [vmem:[%s959_s19 + $0x198] sm:$0xff] }
  0x16   : > { %353 = vmatprep.subr.mxu0 %v248_v13  ;;  %466 = vmatprep.subr.mxu1 %v250_v14  ;;  %v240_v22 = vld [vmem:[%s959_s19 + $0x1a8] sm:$0xff]  ;;  %v237_v23 = vld [vmem:[%s959_s19 + $0x190] sm:$0xff]  ;;  %v239_v24 = vld [vmem:[%s959_s19 + $0x1a0] sm:$0xff] }
  0x17   : > { %354 = vmatpush1.msra.mxu0 %v247_v15  ;;  %467 = vmatpush1.msra.mxu1 %v249_v16  ;;  %v233_v25 = vld [vmem:[%s959_s19 + $0x170] sm:$0xff]  ;;  %v235_v26 = vld [vmem:[%s959_s19 + $0x180] sm:$0xff]  ;;  %v232_v27 = vld [vmem:[%s959_s19 + $0x168] sm:$0xff] }
  0x18   : > { %355 = vmatprep.subr.mxu0 %v243_v17  ;;  %468 = vmatprep.subr.mxu1 %v245_v18  ;;  %v234_v28 = vld [vmem:[%s959_s19 + $0x178] sm:$0xff]  ;;  %v228_v29 = vld [vmem:[%s959_s19 + $0x148] sm:$0xff]  ;;  %v227_v31 = vld [vmem:[%s959_s19 + $0x140] sm:$0xff] }
  0x19   : > { %356 = vmatpush1.msra.mxu0 %v242_v19  ;;  %469 = vmatpush1.msra.mxu1 %v244_v20  ;;  %v230_v30 = vld [vmem:[%s959_s19 + $0x158] sm:$0xff]  ;;  %v229_v32 = vld [vmem:[%s959_s19 + $0x150] sm:$0xff]  ;;  %v223_v33 = vld [vmem:[%s959_s19 + $0x120] sm:$0xff] }
  0x1a   : > { %357 = vmatprep.subr.mxu0 %v238_v21  ;;  %470 = vmatprep.subr.mxu1 %v240_v22  ;;  %v225_v34 = vld [vmem:[%s959_s19 + $0x130] sm:$0xff]  ;;  %v222_v35 = vld [vmem:[%s959_s19 + $0x118] sm:$0xff]  ;;  %v224_v36 = vld [vmem:[%s959_s19 + $0x128] sm:$0xff] }
  0x1b   : > { %358 = vmatpush1.msra.mxu0 %v237_v23  ;;  %471 = vmatpush1.msra.mxu1 %v239_v24  ;;  %v218_v37 = vld [vmem:[%s959_s19 + $0xf8] sm:$0xff]  ;;  %v220_v38 = vld [vmem:[%s959_s19 + $0x108] sm:$0xff]  ;;  %v217_v39 = vld [vmem:[%s959_s19 + $0xf0] sm:$0xff] }
  0x1c   : > { %359 = vmatprep.subr.mxu0 %v233_v25  ;;  %472 = vmatprep.subr.mxu1 %v235_v26  ;;  %v219_v40 = vld [vmem:[%s959_s19 + $0x100] sm:$0xff]  ;;  %v213_v41 = vld [vmem:[%s959_s19 + $0xd0] sm:$0xff]  ;;  %v212_v43 = vld [vmem:[%s959_s19 + $0xc8] sm:$0xff] }
  0x1d   : > { %360 = vmatpush1.msra.mxu0 %v232_v27  ;;  %473 = vmatpush1.msra.mxu1 %v234_v28  ;;  %v215_v42 = vld [vmem:[%s959_s19 + $0xe0] sm:$0xff]  ;;  %v214_v44 = vld [vmem:[%s959_s19 + $0xd8] sm:$0xff]  ;;  %v208_v45 = vld [vmem:[%s959_s19 + $0xa8] sm:$0xff] }
  0x1e   : > { %361 = vmatprep.subr.mxu0 %v228_v29  ;;  %474 = vmatprep.subr.mxu1 %v230_v30  ;;  %v210_v46 = vld [vmem:[%s959_s19 + $0xb8] sm:$0xff]  ;;  %v207_v47 = vld [vmem:[%s959_s19 + $0xa0] sm:$0xff]  ;;  %v209_v48 = vld [vmem:[%s959_s19 + $0xb0] sm:$0xff] }
  0x1f   : > { %362 = vmatpush1.msra.mxu0 %v227_v31  ;;  %475 = vmatpush1.msra.mxu1 %v229_v32  ;;  %v203_v49 = vld [vmem:[%s959_s19 + $0x80] sm:$0xff]  ;;  %v205_v50 = vld [vmem:[%s959_s19 + $0x90] sm:$0xff]  ;;  %v202_v51 = vld [vmem:[%s959_s19 + $0x78] sm:$0xff] }
  0x20   : > { %363 = vmatprep.subr.mxu0 %v223_v33  ;;  %476 = vmatprep.subr.mxu1 %v225_v34  ;;  %v204_v52 = vld [vmem:[%s959_s19 + $0x88] sm:$0xff]  ;;  %v198_v53 = vld [vmem:[%s959_s19 + $0x58] sm:$0xff]  ;;  %v197_v55 = vld [vmem:[%s959_s19 + $0x50] sm:$0xff] }
  0x21   : > { %364 = vmatpush1.msra.mxu0 %v222_v35  ;;  %477 = vmatpush1.msra.mxu1 %v224_v36  ;;  %v200_v54 = vld [vmem:[%s959_s19 + $0x68] sm:$0xff]  ;;  %v199_v56 = vld [vmem:[%s959_s19 + $0x60] sm:$0xff]  ;;  %v193_v57 = vld [vmem:[%s959_s19 + $0x30] sm:$0xff] }
  0x22   : > { %365 = vmatprep.subr.mxu0 %v218_v37  ;;  %478 = vmatprep.subr.mxu1 %v220_v38  ;;  %v195_v58 = vld [vmem:[%s959_s19 + $0x40] sm:$0xff]  ;;  %v192_v59 = vld [vmem:[%s959_s19 + $0x28] sm:$0xff]  ;;  %v194_v60 = vld [vmem:[%s959_s19 + $0x38] sm:$0xff] }
  0x23   : > { %366 = vmatpush1.msra.mxu0 %v217_v39  ;;  %479 = vmatpush1.msra.mxu1 %v219_v40  ;;  %v188_v61 = vld [vmem:[%s959_s19 + $0x8] sm:$0xff]  ;;  %v190_v62 = vld [vmem:[%s959_s19 + $0x18] sm:$0xff]  ;;  %v187_v63 = vld [vmem:[%s959_s19] sm:$0xff] }
  0x24   : > { %367 = vmatprep.subr.mxu0 %v213_v41  ;;  %480 = vmatprep.subr.mxu1 %v215_v42  ;;  %v189_v1 = vld [vmem:[%s959_s19 + $0x10] sm:$0xff]  ;;  %v318_v2 = vld [vmem:[%s959_s19 + $0x418] sm:$0xff]  ;;  %v320_v3 = vld [vmem:[%s959_s19 + $0x428] sm:$0xff] }
  0x25   : > { %368 = vmatpush1.msra.mxu0 %v212_v43  ;;  %481 = vmatpush1.msra.mxu1 %v214_v44  ;;  %v317_v4 = vld [vmem:[%s959_s19 + $0x410] sm:$0xff]  ;;  %v319_v5 = vld [vmem:[%s959_s19 + $0x420] sm:$0xff]  ;;  %v312_v8 = vld [vmem:[%s959_s19 + $0x3e8] sm:$0xff] }
  0x26   : > { %369 = vmatprep.subr.mxu0 %v208_v45  ;;  %482 = vmatprep.subr.mxu1 %v210_v46  ;;  %v313_v6 = vld [vmem:[%s959_s19 + $0x3f0] sm:$0xff]  ;;  %v315_v7 = vld [vmem:[%s959_s19 + $0x400] sm:$0xff]  ;;  %v314_v9 = vld [vmem:[%s959_s19 + $0x3f8] sm:$0xff] }
  0x27   : > { %370 = vmatpush1.msra.mxu0 %v207_v47  ;;  %483 = vmatpush1.msra.mxu1 %v209_v48  ;;  %v308_v10 = vld [vmem:[%s959_s19 + $0x3c8] sm:$0xff]  ;;  %v310_v11 = vld [vmem:[%s959_s19 + $0x3d8] sm:$0xff]  ;;  %v307_v12 = vld [vmem:[%s959_s19 + $0x3c0] sm:$0xff]  ;;  %v914_v48 = vmov 0.0  }
  0x28   : > { %371 = vmatprep.subr.mxu0 %v203_v49  ;;  %484 = vmatprep.subr.mxu1 %v205_v50  ;;  %v309_v13 = vld [vmem:[%s959_s19 + $0x3d0] sm:$0xff]  ;;  %v303_v14 = vld [vmem:[%s959_s19 + $0x3a0] sm:$0xff]  ;;  %v302_v16 = vld [vmem:[%s959_s19 + $0x398] sm:$0xff] }
  0x29   : > { %372 = vmatpush1.msra.mxu0 %v202_v51  ;;  %485 = vmatpush1.msra.mxu1 %v204_v52  ;;  %v305_v15 = vld [vmem:[%s959_s19 + $0x3b0] sm:$0xff]  ;;  %v304_v17 = vld [vmem:[%s959_s19 + $0x3a8] sm:$0xff]  ;;  %v298_v18 = vld [vmem:[%s959_s19 + $0x378] sm:$0xff] }
  0x2a   : > { %373 = vmatprep.subr.mxu0 %v198_v53  ;;  %486 = vmatprep.subr.mxu1 %v200_v54  ;;  %v300_v19 = vld [vmem:[%s959_s19 + $0x388] sm:$0xff]  ;;  %v297_v20 = vld [vmem:[%s959_s19 + $0x370] sm:$0xff]  ;;  %v299_v21 = vld [vmem:[%s959_s19 + $0x380] sm:$0xff] }
  0x2b   : > { %374 = vmatpush1.msra.mxu0 %v197_v55  ;;  %487 = vmatpush1.msra.mxu1 %v199_v56  ;;  %v293_v22 = vld [vmem:[%s959_s19 + $0x350] sm:$0xff]  ;;  %v295_v23 = vld [vmem:[%s959_s19 + $0x360] sm:$0xff]  ;;  %v292_v24 = vld [vmem:[%s959_s19 + $0x348] sm:$0xff] }
  0x2c   : > { %375 = vmatprep.subr.mxu0 %v193_v57  ;;  %488 = vmatprep.subr.mxu1 %v195_v58  ;;  %v294_v25 = vld [vmem:[%s959_s19 + $0x358] sm:$0xff]  ;;  %v288_v26 = vld [vmem:[%s959_s19 + $0x328] sm:$0xff]  ;;  %v287_v28 = vld [vmem:[%s959_s19 + $0x320] sm:$0xff] }
  0x2d   : > { %376 = vmatpush1.msra.mxu0 %v192_v59  ;;  %489 = vmatpush1.msra.mxu1 %v194_v60  ;;  %v290_v27 = vld [vmem:[%s959_s19 + $0x338] sm:$0xff]  ;;  %v289_v29 = vld [vmem:[%s959_s19 + $0x330] sm:$0xff]  ;;  %v283_v30 = vld [vmem:[%s959_s19 + $0x300] sm:$0xff] }
  0x2e   : > { %377 = vmatprep.subr.mxu0 %v188_v61  ;;  %490 = vmatprep.subr.mxu1 %v190_v62  ;;  %v285_v31 = vld [vmem:[%s959_s19 + $0x310] sm:$0xff]  ;;  %v282_v32 = vld [vmem:[%s959_s19 + $0x2f8] sm:$0xff]  ;;  %v284_v33 = vld [vmem:[%s959_s19 + $0x308] sm:$0xff] }
  0x2f   : > { %378 = vmatpush1.msra.mxu0 %v187_v63  ;;  %491 = vmatpush1.msra.mxu1 %v189_v1  ;;  %v278_v34 = vld [vmem:[%s959_s19 + $0x2d8] sm:$0xff]  ;;  %v280_v35 = vld [vmem:[%s959_s19 + $0x2e8] sm:$0xff]  ;;  %v277_v36 = vld [vmem:[%s959_s19 + $0x2d0] sm:$0xff] }
  0x30   : > { %389 = vmatprep.subr.mxu0 %v318_v2  ;;  %502 = vmatprep.subr.mxu1 %v320_v3  ;;  %v279_v37 = vld [vmem:[%s959_s19 + $0x2e0] sm:$0xff]  ;;  %v273_v38 = vld [vmem:[%s959_s19 + $0x2b0] sm:$0xff]  ;;  %v272_v40 = vld [vmem:[%s959_s19 + $0x2a8] sm:$0xff] }
  0x31   : > { %390 = vmatpush2.msra.mxu0 %v317_v4  ;;  %503 = vmatpush2.msra.mxu1 %v319_v5  ;;  %v275_v39 = vld [vmem:[%s959_s19 + $0x2c0] sm:$0xff]  ;;  %v274_v41 = vld [vmem:[%s959_s19 + $0x2b8] sm:$0xff]  ;;  %v268_v42 = vld [vmem:[%s959_s19 + $0x288] sm:$0xff] }
  0x32   : > { %391 = vmatprep.subr.mxu0 %v313_v6  ;;  %504 = vmatprep.subr.mxu1 %v315_v7  ;;  %v270_v43 = vld [vmem:[%s959_s19 + $0x298] sm:$0xff]  ;;  %v267_v44 = vld [vmem:[%s959_s19 + $0x280] sm:$0xff]  ;;  %v269_v45 = vld [vmem:[%s959_s19 + $0x290] sm:$0xff] }
  0x33   : > { %392 = vmatpush2.msra.mxu0 %v312_v8  ;;  %505 = vmatpush2.msra.mxu1 %v314_v9  ;;  %v1072_v46 = vld [vmem:[%s1337_s0] sm:$0xff]  ;;  %v266_v47 = vld [vmem:[%s959_s19 + $0x278] sm:$0xff]  ;;  %v261_v50 = vld [vmem:[%s959_s19 + $0x250] sm:$0xff] }
  0x34   : > { %393 = vmatprep.subr.mxu0 %v308_v10  ;;  %506 = vmatprep.subr.mxu1 %v310_v11  ;;  %v1082_v49 = vld [vmem:[%s1337_s0 + $0x18] sm:$0xff]  ;;  %v1090_v51 = vld [vmem:[%s1337_s0 + $0x10] sm:$0xff]  ;;  %v256_v52 = vld [vmem:[%s959_s19 + $0x228] sm:$0xff] }
  0x35   : > { %394 = vmatpush2.msra.mxu0 %v307_v12  ;;  %507 = vmatpush2.msra.mxu1 %v309_v13  ;;  %v1104_v53 = vld [vmem:[%s1337_s0 + $0x28] sm:$0xff]  ;;  %v251_v54 = vld [vmem:[%s959_s19 + $0x200] sm:$0xff]  ;;  %v246_v56 = vld [vmem:[%s959_s19 + $0x1d8] sm:$0xff] }
  0x36   : > { %395 = vmatprep.subr.mxu0 %v303_v14  ;;  %508 = vmatprep.subr.mxu1 %v305_v15  ;;  %v1112_v55 = vld [vmem:[%s1337_s0 + $0x20] sm:$0xff]  ;;  %v1126_v57 = vld [vmem:[%s1337_s0 + $0x38] sm:$0xff]  ;;  %v241_v58 = vld [vmem:[%s959_s19 + $0x1b0] sm:$0xff] }
  0x37   : > { %396 = vmatpush2.msra.mxu0 %v302_v16  ;;  %509 = vmatpush2.msra.mxu1 %v304_v17  ;;  %v1134_v59 = vld [vmem:[%s1337_s0 + $0x30] sm:$0xff]  ;;  %v236_v60 = vld [vmem:[%s959_s19 + $0x188] sm:$0xff]  ;;  %v231_v62 = vld [vmem:[%s959_s19 + $0x160] sm:$0xff] }
  0x38   : > { %397 = vmatprep.subr.mxu0 %v298_v18  ;;  %510 = vmatprep.subr.mxu1 %v300_v19  ;;  %v1148_v61 = vld [vmem:[%s1337_s0 + $0x48] sm:$0xff]  ;;  %v1156_v63 = vld [vmem:[%s1337_s0 + $0x40] sm:$0xff]  ;;  %v226_v1 = vld [vmem:[%s959_s19 + $0x138] sm:$0xff] }
  0x39   : > { %398 = vmatpush2.msra.mxu0 %v297_v20  ;;  %511 = vmatpush2.msra.mxu1 %v299_v21  ;;  %v1170_v2 = vld [vmem:[%s1337_s0 + $0x58] sm:$0xff]  ;;  %v221_v3 = vld [vmem:[%s959_s19 + $0x110] sm:$0xff]  ;;  %v216_v5 = vld [vmem:[%s959_s19 + $0xe8] sm:$0xff] }
  0x3a   : > { %399 = vmatprep.subr.mxu0 %v293_v22  ;;  %512 = vmatprep.subr.mxu1 %v295_v23  ;;  %v1178_v4 = vld [vmem:[%s1337_s0 + $0x50] sm:$0xff]  ;;  %v1192_v6 = vld [vmem:[%s1337_s0 + $0x68] sm:$0xff]  ;;  %v211_v7 = vld [vmem:[%s959_s19 + $0xc0] sm:$0xff] }
  0x3b   : > { %400 = vmatpush2.msra.mxu0 %v292_v24  ;;  %513 = vmatpush2.msra.mxu1 %v294_v25  ;;  %v1200_v8 = vld [vmem:[%s1337_s0 + $0x60] sm:$0xff]  ;;  %v206_v9 = vld [vmem:[%s959_s19 + $0x98] sm:$0xff]  ;;  %v201_v11 = vld [vmem:[%s959_s19 + $0x70] sm:$0xff] }
  0x3c   : > { %401 = vmatprep.subr.mxu0 %v288_v26  ;;  %514 = vmatprep.subr.mxu1 %v290_v27  ;;  %v1214_v10 = vld [vmem:[%s1337_s0 + $0x78] sm:$0xff]  ;;  %v1222_v12 = vld [vmem:[%s1337_s0 + $0x70] sm:$0xff]  ;;  %v196_v13 = vld [vmem:[%s959_s19 + $0x48] sm:$0xff]  ;;  %v915_v27 = vmov 0  }
  0x3d   : > { %402 = vmatpush2.msra.mxu0 %v287_v28  ;;  %515 = vmatpush2.msra.mxu1 %v289_v29  ;;  %v191_v14 = vld [vmem:[%s959_s19 + $0x20] sm:$0xff]  ;;  %v321_v15 = vld [vmem:[%s959_s19 + $0x430] sm:$0xff]  ;;  %v316_v16 = vld [vmem:[%s959_s19 + $0x408] sm:$0xff] }
  0x3e   : > { %403 = vmatprep.subr.mxu0 %v283_v30  ;;  %516 = vmatprep.subr.mxu1 %v285_v31  ;;  %v311_v17 = vld [vmem:[%s959_s19 + $0x3e0] sm:$0xff]  ;;  %v306_v18 = vld [vmem:[%s959_s19 + $0x3b8] sm:$0xff]  ;;  %v301_v19 = vld [vmem:[%s959_s19 + $0x390] sm:$0xff] }
  0x3f   : > { %404 = vmatpush2.msra.mxu0 %v282_v32  ;;  %517 = vmatpush2.msra.mxu1 %v284_v33  ;;  %v296_v20 = vld [vmem:[%s959_s19 + $0x368] sm:$0xff]  ;;  %v291_v21 = vld [vmem:[%s959_s19 + $0x340] sm:$0xff]  ;;  %v286_v22 = vld [vmem:[%s959_s19 + $0x318] sm:$0xff] }
  0x40   : > { %405 = vmatprep.subr.mxu0 %v278_v34  ;;  %518 = vmatprep.subr.mxu1 %v280_v35  ;;  %v281_v23 = vld [vmem:[%s959_s19 + $0x2f0] sm:$0xff]  ;;  %v276_v24 = vld [vmem:[%s959_s19 + $0x2c8] sm:$0xff]  ;;  %v271_v25 = vld [vmem:[%s959_s19 + $0x2a0] sm:$0xff] }
  0x41   : > { %406 = vmatpush2.msra.mxu0 %v277_v36  ;;  %519 = vmatpush2.msra.mxu1 %v279_v37  ;;  %v708_v26 = vld [vmem:[%s1338_s1] sm:$0xff] }
  0x42   : > { %407 = vmatprep.subr.mxu0 %v273_v38  ;;  %520 = vmatprep.subr.mxu1 %v275_v39 }
  0x43   : > { %408 = vmatpush2.msra.mxu0 %v272_v40  ;;  %521 = vmatpush2.msra.mxu1 %v274_v41 }
  0x44   : > { %409 = vmatprep.subr.mxu0 %v268_v42  ;;  %522 = vmatprep.subr.mxu1 %v270_v43 }
  0x45   : > { %410 = vmatpush2.msra.mxu0 %v267_v44  ;;  %523 = vmatpush2.msra.mxu1 %v269_v45 }
  0x46   : > { %412 = vmatmul.mubr.f32.vlgmr.msra.gmra.mxu0 %v1072_v46  ;;  %525 = vmatmul.mubr.f32.vlgmr.msra.gmra.mxu1 %v1072_v46 }
  0x47   : > { %573 = vmatprep.subr.mxu0 %v914_v48  ;;  %839 = vmatprep.subr.mxu1 %v914_v48 }
  0x48   : > { %574 = vmatpush1.msra.mxu0 %v266_v47  ;;  %866 = vmatpush1.msra.mxu1 %v266_v47 }
  0x49   : > { %575 = vmatprep.subr.mxu0 %v914_v48  ;;  %840 = vmatprep.subr.mxu1 %v914_v48 }
  0x4a   : > { %814 = vmatprep.mubr.msk.f32.mxu0 %vm322_vm0, %v1082_v49  ;;  %822 = vmatprep.mubr.msk.f32.mxu1 %vm322_vm0, %v1082_v49 }
  0x4b   : > { %576 = vmatpush1.msra.mxu0 %v261_v50  ;;  %867 = vmatpush1.msra.mxu1 %v261_v50 }
  0x4c   : > { %418 = vmatmul.mubr.f32.gmra.mxu0 %v1090_v51  ;;  %531 = vmatmul.mubr.f32.gmra.mxu1 %v1090_v51 }
  0x4d   : > { %577 = vmatprep.subr.mxu0 %v914_v48  ;;  %841 = vmatprep.subr.mxu1 %v914_v48 }
  0x4e   : > { %578 = vmatpush1.msra.mxu0 %v256_v52  ;;  %868 = vmatpush1.msra.mxu1 %v256_v52 }
  0x4f   : > { %579 = vmatprep.subr.mxu0 %v914_v48  ;;  %842 = vmatprep.subr.mxu1 %v914_v48 }
  0x50   : > { %815 = vmatprep.mubr.msk.f32.mxu0 %vm322_vm0, %v1104_v53  ;;  %823 = vmatprep.mubr.msk.f32.mxu1 %vm322_vm0, %v1104_v53 }
  0x51   : > { %580 = vmatpush1.msra.mxu0 %v251_v54  ;;  %869 = vmatpush1.msra.mxu1 %v251_v54 }
  0x52   : > { %424 = vmatmul.mubr.f32.gmra.mxu0 %v1112_v55  ;;  %537 = vmatmul.mubr.f32.gmra.mxu1 %v1112_v55 }
  0x53   : > { %581 = vmatprep.subr.mxu0 %v914_v48  ;;  %843 = vmatprep.subr.mxu1 %v914_v48 }
  0x54   : > { %582 = vmatpush1.msra.mxu0 %v246_v56  ;;  %870 = vmatpush1.msra.mxu1 %v246_v56 }
  0x55   : > { %583 = vmatprep.subr.mxu0 %v914_v48  ;;  %844 = vmatprep.subr.mxu1 %v914_v48 }
  0x56   : > { %816 = vmatprep.mubr.msk.f32.mxu0 %vm322_vm0, %v1126_v57  ;;  %824 = vmatprep.mubr.msk.f32.mxu1 %vm322_vm0, %v1126_v57 }
  0x57   : > { %584 = vmatpush1.msra.mxu0 %v241_v58  ;;  %871 = vmatpush1.msra.mxu1 %v241_v58 }
  0x58   : > { %430 = vmatmul.mubr.f32.gmra.mxu0 %v1134_v59  ;;  %543 = vmatmul.mubr.f32.gmra.mxu1 %v1134_v59 }
  0x59   : > { %585 = vmatprep.subr.mxu0 %v914_v48  ;;  %845 = vmatprep.subr.mxu1 %v914_v48 }
  0x5a   : > { %586 = vmatpush1.msra.mxu0 %v236_v60  ;;  %872 = vmatpush1.msra.mxu1 %v236_v60 }
  0x5b   : > { %587 = vmatprep.subr.mxu0 %v914_v48  ;;  %846 = vmatprep.subr.mxu1 %v914_v48 }
  0x5c   : > { %817 = vmatprep.mubr.msk.f32.mxu0 %vm322_vm0, %v1148_v61  ;;  %825 = vmatprep.mubr.msk.f32.mxu1 %vm322_vm0, %v1148_v61 }
  0x5d   : > { %588 = vmatpush1.msra.mxu0 %v231_v62  ;;  %873 = vmatpush1.msra.mxu1 %v231_v62 }
  0x5e   : > { %436 = vmatmul.mubr.f32.gmra.mxu0 %v1156_v63  ;;  %549 = vmatmul.mubr.f32.gmra.mxu1 %v1156_v63 }
  0x5f   : > { %589 = vmatprep.subr.mxu0 %v914_v48  ;;  %847 = vmatprep.subr.mxu1 %v914_v48 }
  0x60   : > { %590 = vmatpush1.msra.mxu0 %v226_v1  ;;  %874 = vmatpush1.msra.mxu1 %v226_v1 }
  0x61   : > { %591 = vmatprep.subr.mxu0 %v914_v48  ;;  %848 = vmatprep.subr.mxu1 %v914_v48 }
  0x62   : > { %818 = vmatprep.mubr.msk.f32.mxu0 %vm322_vm0, %v1170_v2  ;;  %826 = vmatprep.mubr.msk.f32.mxu1 %vm322_vm0, %v1170_v2 }
  0x63   : > { %592 = vmatpush1.msra.mxu0 %v221_v3  ;;  %875 = vmatpush1.msra.mxu1 %v221_v3 }
  0x64   : > { %442 = vmatmul.mubr.f32.gmra.mxu0 %v1178_v4  ;;  %555 = vmatmul.mubr.f32.gmra.mxu1 %v1178_v4 }
  0x65   : > { %593 = vmatprep.subr.mxu0 %v914_v48  ;;  %849 = vmatprep.subr.mxu1 %v914_v48 }
  0x66   : > { %594 = vmatpush1.msra.mxu0 %v216_v5  ;;  %876 = vmatpush1.msra.mxu1 %v216_v5 }
  0x67   : > { %595 = vmatprep.subr.mxu0 %v914_v48  ;;  %850 = vmatprep.subr.mxu1 %v914_v48 }
  0x68   : > { %819 = vmatprep.mubr.msk.f32.mxu0 %vm322_vm0, %v1192_v6  ;;  %827 = vmatprep.mubr.msk.f32.mxu1 %vm322_vm0, %v1192_v6 }
  0x69   : > { %596 = vmatpush1.msra.mxu0 %v211_v7  ;;  %877 = vmatpush1.msra.mxu1 %v211_v7 }
  0x6a   : > { %448 = vmatmul.mubr.f32.gmra.mxu0 %v1200_v8  ;;  %561 = vmatmul.mubr.f32.gmra.mxu1 %v1200_v8 }
  0x6b   : > { %597 = vmatprep.subr.mxu0 %v914_v48  ;;  %851 = vmatprep.subr.mxu1 %v914_v48 }
  0x6c   : > { %598 = vmatpush1.msra.mxu0 %v206_v9  ;;  %878 = vmatpush1.msra.mxu1 %v206_v9 }
  0x6d   : > { %599 = vmatprep.subr.mxu0 %v914_v48  ;;  %852 = vmatprep.subr.mxu1 %v914_v48 }
  0x6e   : > { %820 = vmatprep.mubr.msk.f32.mxu0 %vm322_vm0, %v1214_v10  ;;  %828 = vmatprep.mubr.msk.f32.mxu1 %vm322_vm0, %v1214_v10 }
  0x6f   : > { %600 = vmatpush1.msra.mxu0 %v201_v11  ;;  %879 = vmatpush1.msra.mxu1 %v201_v11 }
  0x70   : > { %454 = vmatmul.mubr.f32.gmra.mxu0 %v1222_v12  ;;  %567 = vmatmul.mubr.f32.gmra.mxu1 %v1222_v12 }
  0x71   : > { %601 = vmatprep.subr.mxu0 %v914_v48  ;;  %853 = vmatprep.subr.mxu1 %v914_v48 }
  0x72   : > { %602 = vmatpush1.msra.mxu0 %v196_v13  ;;  %880 = vmatpush1.msra.mxu1 %v196_v13 }
  0x73   : > { %603 = vmatprep.subr.mxu0 %v914_v48  ;;  %854 = vmatprep.subr.mxu1 %v914_v48 }
  0x74   : > { %604 = vmatpush1.msra.mxu0 %v191_v14  ;;  %881 = vmatpush1.msra.mxu1 %v191_v14 }
  0x75   : > { %615 = vmatprep.subr.mxu0 %v914_v48  ;;  %855 = vmatprep.subr.mxu1 %v914_v48 }
  0x76   : > { %616 = vmatpush2.msra.mxu0 %v321_v15  ;;  %882 = vmatpush2.msra.mxu1 %v321_v15 }
  0x77   : > { %617 = vmatprep.subr.mxu0 %v914_v48  ;;  %856 = vmatprep.subr.mxu1 %v914_v48 }
  0x78   : > { %618 = vmatpush2.msra.mxu0 %v316_v16  ;;  %883 = vmatpush2.msra.mxu1 %v316_v16 }
  0x79   : > { %619 = vmatprep.subr.mxu0 %v914_v48  ;;  %857 = vmatprep.subr.mxu1 %v914_v48 }
  0x7a   : > { %620 = vmatpush2.msra.mxu0 %v311_v17  ;;  %884 = vmatpush2.msra.mxu1 %v311_v17 }
  0x7b   : > { %621 = vmatprep.subr.mxu0 %v914_v48  ;;  %858 = vmatprep.subr.mxu1 %v914_v48 }
  0x7c   : > { %622 = vmatpush2.msra.mxu0 %v306_v18  ;;  %885 = vmatpush2.msra.mxu1 %v306_v18 }
  0x7d   : > { %623 = vmatprep.subr.mxu0 %v914_v48  ;;  %859 = vmatprep.subr.mxu1 %v914_v48 }
  0x7e   : > { %624 = vmatpush2.msra.mxu0 %v301_v19  ;;  %886 = vmatpush2.msra.mxu1 %v301_v19 }
  0x7f   : > { %625 = vmatprep.subr.mxu0 %v914_v48  ;;  %860 = vmatprep.subr.mxu1 %v914_v48 }
  0x80   : > { %626 = vmatpush2.msra.mxu0 %v296_v20  ;;  %887 = vmatpush2.msra.mxu1 %v296_v20 }
  0x81   : > { %627 = vmatprep.subr.mxu0 %v914_v48  ;;  %861 = vmatprep.subr.mxu1 %v914_v48 }
  0x82   : > { %628 = vmatpush2.msra.mxu0 %v291_v21  ;;  %888 = vmatpush2.msra.mxu1 %v291_v21 }
  0x83   : > { %629 = vmatprep.subr.mxu0 %v914_v48  ;;  %862 = vmatprep.subr.mxu1 %v914_v48 }
  0x84   : > { %630 = vmatpush2.msra.mxu0 %v286_v22  ;;  %889 = vmatpush2.msra.mxu1 %v286_v22 }
  0x85   : > { %631 = vmatprep.subr.mxu0 %v914_v48  ;;  %863 = vmatprep.subr.mxu1 %v914_v48 }
  0x86   : > { %632 = vmatpush2.msra.mxu0 %v281_v23  ;;  %890 = vmatpush2.msra.mxu1 %v281_v23 }
  0x87   : > { %633 = vmatprep.subr.mxu0 %v914_v48  ;;  %864 = vmatprep.subr.mxu1 %v914_v48 }
  0x88   : > { %634 = vmatpush2.msra.mxu0 %v276_v24  ;;  %891 = vmatpush2.msra.mxu1 %v276_v24 }
  0x89   : > { %635 = vmatprep.subr.mxu0 %v914_v48  ;;  %865 = vmatprep.subr.mxu1 %v914_v48 }
  0x8a   : > { %636 = vmatpush2.msra.mxu0 %v271_v25  ;;  %892 = vmatpush2.msra.mxu1 %v271_v25 }
  0x8b   : > { %829 = vmatprep.mubr.msk.f32.mxu0 %vm322_vm0, %v947_v0  ;;  %833 = vmatprep.mubr.msk.f32.mxu1 %vm322_vm0, %v1148_v61  ;;  %v709_v0 = vld [vmem:[%s1338_s1 + $0x8] sm:$0xff] }
  0x8c   : > { %638 = vmatmul.mubr.f32.vlgmr.msra.gmra.mxu0 %v1072_v46  ;;  %658 = vmatmul.mubr.f32.vlgmr.msra.gmra.mxu1 %v1156_v63 }
  0x8d   : > { %830 = vmatprep.mubr.msk.f32.mxu0 %vm322_vm0, %v1082_v49  ;;  %834 = vmatprep.mubr.msk.f32.mxu1 %vm322_vm0, %v1170_v2 }
  0x8e   : > { %905 = vset.pattern.permute.xlu0 %v915_v27 }
  0x8f   : > { %712 = vperm.xlu0 %905, %v708_v26  }
  0x90   : > { %643 = vmatmul.mubr.f32.gmra.mxu0 %v1090_v51  ;;  %663 = vmatmul.mubr.f32.gmra.mxu1 %v1178_v4 }
  0x91   : > { %831 = vmatprep.mubr.msk.f32.mxu0 %vm322_vm0, %v1104_v53  ;;  %835 = vmatprep.mubr.msk.f32.mxu1 %vm322_vm0, %v1192_v6 }
  0x93   : > { %717 = vperm.xlu0 %905, %v709_v0  }
  0x94   : > { %648 = vmatmul.mubr.f32.gmra.mxu0 %v1112_v55  ;;  %668 = vmatmul.mubr.f32.gmra.mxu1 %v1200_v8 }
  0x95   : > { %832 = vmatprep.mubr.msk.f32.mxu0 %vm322_vm0, %v1126_v57  ;;  %836 = vmatprep.mubr.msk.f32.mxu1 %vm322_vm0, %v1214_v10 }
  0x98   : > { %653 = vmatmul.mubr.f32.gmra.mxu0 %v1134_v59  ;;  %673 = vmatmul.mubr.f32.gmra.mxu1 %v1222_v12 }
 0x106   : > { %v413_v28 = vpop.f32.mrf.mxu0  ;;  %v526_v29 = vpop.f32.mrf.mxu1 }
 0x108   : > { %v415_v30 = vpop.f32.mrf.mxu0  ;;  %v528_v31 = vpop.f32.mrf.mxu1 }
 0x10a   : > { %v1307_v58 = vpop.permute.xlu0 %712 }
 0x10c   : > { %v1299_v32 = vpop.f32.mrf.mxu0  ;;  %v1301_v33 = vpop.f32.mrf.mxu1 }
 0x10e   : > { %v1303_v34 = vpop.f32.mrf.mxu0  ;;  %v1305_v35 = vpop.f32.mrf.mxu1 }
 0x10f   : > { %v718_v26 = vpop.permute.xlu0 %717 }
 0x112   : > { %v425_v36 = vpop.f32.mrf.mxu0  ;;  %v538_v37 = vpop.f32.mrf.mxu1 }
 0x113   : > { %v678_v54 = vmax.f32 %v413_v28, %v425_v36  ;;  %v680_v55 = vmax.f32 %v526_v29, %v538_v37 }
 0x114   : > { %v427_v38 = vpop.f32.mrf.mxu0  ;;  %v540_v39 = vpop.f32.mrf.mxu1 }
 0x115   : > { %v679_v59 = vmax.f32 %v415_v30, %v427_v38  ;;  %v681_v60 = vmax.f32 %v528_v31, %v540_v39 }
 0x118   : > { %v431_v40 = vpop.f32.mrf.mxu0  ;;  %v544_v41 = vpop.f32.mrf.mxu1 }
 0x119   : > { %v683_v8 = vmax.f32 %v1299_v32, %v431_v40  ;;  %v685_v9 = vmax.f32 %v1301_v33, %v544_v41 }
 0x11a   : > { %v433_v42 = vpop.f32.mrf.mxu0  ;;  %v546_v43 = vpop.f32.mrf.mxu1 }
 0x11b   : > { %v684_v16 = vmax.f32 %v1303_v34, %v433_v42  ;;  %v686_v17 = vmax.f32 %v1305_v35, %v546_v43 }
 0x11e   : > { %v437_v44 = vpop.f32.mrf.mxu0  ;;  %v550_v45 = vpop.f32.mrf.mxu1 }
 0x120   : > { %v439_v46 = vpop.f32.mrf.mxu0  ;;  %v552_v47 = vpop.f32.mrf.mxu1 }
 0x124   : > { %v443_v48 = vpop.f32.mrf.mxu0  ;;  %v556_v49 = vpop.f32.mrf.mxu1 }
 0x126   : > { %v445_v50 = vpop.f32.mrf.mxu0  ;;  %v558_v51 = vpop.f32.mrf.mxu1 }
 0x12a   : > { %v449_v52 = vpop.f32.mrf.mxu0  ;;  %v562_v53 = vpop.f32.mrf.mxu1 }
 0x12b   : > { %v688_v56 = vmax.f32 %v437_v44, %v449_v52  ;;  %v690_v57 = vmax.f32 %v550_v45, %v562_v53 }
 0x12c   : > { %v451_v61 = vpop.f32.mrf.mxu0  ;;  %v564_v62 = vpop.f32.mrf.mxu1 }
 0x12d   : > { %v698_v63 = vmax.f32 %v678_v54, %v688_v56  ;;  %v700_v1 = vmax.f32 %v680_v55, %v690_v57  ;;  %v689_v2 = vmax.f32 %v439_v46, %v451_v61  ;;  %v691_v3 = vmax.f32 %v552_v47, %v564_v62 }
 0x12f   : > { %v699_v4 = vmax.f32 %v679_v59, %v689_v2  ;;  %v701_v5 = vmax.f32 %v681_v60, %v691_v3  ;;  %v720_v6 = vadd.f32 %v1307_v58, %v698_v63  ;;  %v722_v7 = vadd.f32 %v1307_v58, %v700_v1 }
 0x130   : > { %v455_v10 = vpop.f32.mrf.mxu0  ;;  %v568_v11 = vpop.f32.mrf.mxu1 }
 0x131   : > { %v721_v12 = vadd.f32 %v1307_v58, %v699_v4  ;;  %v723_v13 = vadd.f32 %v1307_v58, %v701_v5  ;;  %v730_v14 = vmax.f32 %v720_v6, 0.0  ;;  %v732_v15 = vmax.f32 %v722_v7, 0.0 }
 0x132   : > { %v693_v18 = vmax.f32 %v443_v48, %v455_v10  ;;  %v695_v19 = vmax.f32 %v556_v49, %v568_v11  ;;  %v457_v20 = vpop.f32.mrf.mxu0  ;;  %v570_v21 = vpop.f32.mrf.mxu1 }
 0x133   : > { %v731_v22 = vmax.f32 %v721_v12, 0.0  ;;  %v733_v23 = vmax.f32 %v723_v13, 0.0  ;;  %740 = vst [vmem:[%s1317_s5] sm:$0xff] %v730_v14  ;;  %742 = vst [vmem:[%s1317_s5 + $0x10] sm:$0xff] %v732_v15  ;;  %v694_v24 = vmax.f32 %v445_v50, %v457_v20  ;;  %v696_v25 = vmax.f32 %v558_v51, %v570_v21 }
 0x134   : > { %v703_v27 = vmax.f32 %v683_v8, %v693_v18  ;;  %v705_v0 = vmax.f32 %v685_v9, %v695_v19 }
 0x135   : > { %741 = vst [vmem:[%s1317_s5 + $0x8] sm:$0xff] %v731_v22  ;;  %743 = vst [vmem:[%s1317_s5 + $0x18] sm:$0xff] %v733_v23  ;;  %v704_v28 = vmax.f32 %v684_v16, %v694_v24  ;;  %v706_v29 = vmax.f32 %v686_v17, %v696_v25 }
 0x136   : > { %v725_v30 = vadd.f32 %v718_v26, %v703_v27  ;;  %v727_v31 = vadd.f32 %v718_v26, %v705_v0 }
 0x137   : > { %v726_v32 = vadd.f32 %v718_v26, %v704_v28  ;;  %v728_v33 = vadd.f32 %v718_v26, %v706_v29 }
 0x138   : > { %v735_v34 = vmax.f32 %v725_v30, 0.0  ;;  %v737_v35 = vmax.f32 %v727_v31, 0.0 }
 0x139   : > { %v736_v36 = vmax.f32 %v726_v32, 0.0  ;;  %v738_v37 = vmax.f32 %v728_v33, 0.0 }
 0x13a   : > { %746 = vst [vmem:[%s1317_s5 + $0x28] sm:$0xff] %v735_v34  ;;  %748 = vst [vmem:[%s1317_s5 + $0x38] sm:$0xff] %v737_v35 }
 0x13b   : > { %747 = vst [vmem:[%s1317_s5 + $0x30] sm:$0xff] %v736_v36  ;;  %749 = vst [vmem:[%s1317_s5 + $0x40] sm:$0xff] %v738_v37 }
 0x14c   : > { %v639_v38 = vpop.f32.mrf.mxu0  ;;  %v659_v39 = vpop.f32.mrf.mxu1 }
 0x14e   : > { %v641_v40 = vpop.f32.mrf.mxu0  ;;  %v661_v41 = vpop.f32.mrf.mxu1 }
 0x150   : > { %v644_v42 = vpop.f32.mrf.mxu0  ;;  %v664_v43 = vpop.f32.mrf.mxu1 }
 0x152   : > { %v646_v44 = vpop.f32.mrf.mxu0  ;;  %v666_v45 = vpop.f32.mrf.mxu1 }
 0x154   : > { %v649_v46 = vpop.f32.mrf.mxu0  ;;  %v669_v47 = vpop.f32.mrf.mxu1 }
 0x155   : > { %v682_v48 = vmax.f32 %v639_v38, %v649_v46  ;;  %v692_v49 = vmax.f32 %v659_v39, %v669_v47 }
 0x156   : > { %v651_v50 = vpop.f32.mrf.mxu0  ;;  %v671_v51 = vpop.f32.mrf.mxu1 }
 0x157   : > { %v702_v52 = vmax.f32 %v682_v48, %v692_v49 }
 0x158   : > { %v654_v53 = vpop.f32.mrf.mxu0  ;;  %v674_v54 = vpop.f32.mrf.mxu1 }
 0x159   : > { %v724_v55 = vadd.f32 %v1307_v58, %v702_v52  ;;  %v687_v56 = vmax.f32 %v644_v42, %v654_v53  ;;  %v697_v57 = vmax.f32 %v664_v43, %v674_v54 }
 0x15a   : > { %v656_v59 = vpop.f32.mrf.mxu0  ;;  %v676_v60 = vpop.f32.mrf.mxu1 }
 0x15b   : > { %v734_v61 = vmax.f32 %v724_v55, 0.0  ;;  %v707_v62 = vmax.f32 %v687_v56, %v697_v57 }
 0x15d   : > { %745 = vst.msk [vmem:[%s1317_s5 + $0x20] sm:$0xff] %vm744_vm1, %v734_v61  ;;  %v729_v63 = vadd.f32 %v718_v26, %v707_v62 }
 0x15f   : > { %v739_v1 = vmax.f32 %v729_v63, 0.0 }
 0x161   : > { %750 = vst.msk [vmem:[%s1317_s5 + $0x48] sm:$0xff] %vm744_vm1, %v739_v1 }
 0x162 PF: > { %s13_s12 = sadd.s32 1, %s912_s12  }
 0x163   : > { %p10_p4 = scmp.ge.s32.totalorder %s13_s12, 4  }
 0x165   :  { %12 = sbr.rel (!%p10_p4) target bundleno = 1 (0x1), region = 62 }

// kernel: conv2d_layer1_forward.5
= control target key start
LH: loop header
LB: loop body
LE: loop exit
PB: predicated region body
PF: predicated region fallthrough
CT: control target
= control target key end

     0   :  { %10 = vsyncpa [#allocation4], 0  ;;  %s831_s0 = inlined_call_operand.vmem [shape: f32[2,16,620], index: 0, kind: input, shape index: {}]   ;;  %s832_s1 = inlined_call_operand.vmem [shape: f32[2,16,620], index: 1, kind: input, shape index: {}]   ;;  %s833_s2 = inlined_call_operand.vmem [shape: f32[16,1], index: 2, kind: input, shape index: {}]   ;;  %s834_s3 = inlined_call_operand.vmem [shape: f32[16,1], index: 3, kind: input, shape index: {}]   ;;  %s835_s4 = inlined_call_operand.vmem [shape: f32[2], index: 4, kind: input, shape index: {}]   ;;  %s836_s5 = inlined_call_operand.hbm [shape: f32[2,2], index: 5, kind: output, shape index: {}]  }
   0x1   :  { %11 = vsyncpa [#allocation3], 0  ;;  %s26_s20 = sshll.u32 %s835_s4, 4  ;;  %s27_s20 = int_to_ptr.vmem [resolvable:$true] %s26_s20 }
   0x2   :  { %s430_s21 = scalar_lea.vmem %s27_s20, 16  ;;  %p435_p1 = scmp.lt.s32.totalorder %s27_s20, %s27_s20 }
   0x3   :  { %p431_p0 = scmp.ne.s32.totalorder %s27_s20, %s430_s21  ;;  %p436_p2 = scmp.lt.s32.totalorder %s430_s21, %s430_s21 }
   0x5   :  { %p437_p3 = por %p436_p2, %p435_p1 }
   0x7   :  { %p438_p4 = pnand %p437_p3, %p431_p0 }
   0x9   :  { %441 = shalt.err (!%p438_p4)
}
   0xa   :  { %s466_s22 = smov [#allocation2]  }
   0xb   :  { %29 = dma.vmem_to_smem %s27_s20, 16, %s466_s22, [#allocation4]  }
   0xc   :  { %462 = dma.done.wait [#allocation4], 16  }
   0xd   :  { %463 = vsyncadd [#allocation4], 4294967280 }
   0xe   :  { %33 = sfence }
   0xf   :  { %v44_v0 = vld [vmem:[%s831_s0 + $0x50] sm:$0xff]  ;;  %v45_v1 = vld [vmem:[%s831_s0 + $0x58] sm:$0xff]  ;;  %v46_v2 = vld [vmem:[%s831_s0 + $0x60] sm:$0xff]  ;;  %vm57_vm0 = vcmask 883712   ;;  %vm380_vm1 = vcmask 1041409   ;;  %vm383_vm2 = vcmask 1024  }
  0x10   :  { %v47_v3 = vld [vmem:[%s831_s0 + $0x68] sm:$0xff]  ;;  %v517_v4 = vld [vmem:[%s831_s0 + $0x70] sm:$0xff]  ;;  %v69_v5 = vadd.f32 %v45_v1, %v44_v0  ;;  %v34_v6 = vld [vmem:[%s831_s0] sm:$0xff]  ;;  %s420_s4 = sld [smem:[#allocation2 + $0x1]]  ;;  %s468_s27 = smov [#allocation5]   ;;  %vm393_vm3 = vcmask 9224  }
  0x11   :  { %v35_v7 = vld [vmem:[%s831_s0 + $0x8] sm:$0xff]  ;;  %v36_v8 = vld [vmem:[%s831_s0 + $0x10] sm:$0xff]  ;;  %v37_v9 = vld [vmem:[%s831_s0 + $0x18] sm:$0xff]  ;;  %v72_v15 = vsel %vm57_vm0, %v517_v4, 0.0  ;;  %s401_s28 = sshll.u32 %s468_s27, 4  ;;  %s402_s28 = int_to_ptr.vmem [resolvable:$true] %s401_s28 }
  0x12   :  { %v70_v10 = vadd.f32 %v69_v5, %v46_v2  ;;  %v38_v11 = vld [vmem:[%s831_s0 + $0x20] sm:$0xff]  ;;  %v54_v12 = vadd.f32 %v35_v7, %v34_v6  ;;  %v537_v13 = vld [vmem:[%s831_s0 + $0x78] sm:$0xff]  ;;  %v549_v16 = vld [vmem:[%s831_s0 + $0x88] sm:$0xff]  ;;  %s442_s29 = scalar_lea.vmem %s402_s28, 32  ;;  %p447_p6 = scmp.lt.s32.totalorder %s402_s28, %s402_s28 }
  0x13   :  { %v542_v14 = vld [vmem:[%s831_s0 + $0x80] sm:$0xff]  ;;  %v554_v17 = vld [vmem:[%s831_s0 + $0x90] sm:$0xff]  ;;  %v559_v18 = vld [vmem:[%s831_s0 + $0x98] sm:$0xff]  ;;  %v58_v25 = vsel %vm57_vm0, %v38_v11, 0.0  ;;  %p443_p5 = scmp.ne.s32.totalorder %s402_s28, %s442_s29  ;;  %p448_p7 = scmp.lt.s32.totalorder %s442_s29, %s442_s29 }
  0x14   :  { %v76_v19 = vadd.f32 %v542_v14, %v537_v13  ;;  %v71_v20 = vadd.f32 %v70_v10, %v47_v3  ;;  %v55_v21 = vadd.f32 %v54_v12, %v36_v8  ;;  %v39_v22 = vld [vmem:[%s831_s0 + $0x28] sm:$0xff]  ;;  %v40_v23 = vld [vmem:[%s831_s0 + $0x30] sm:$0xff]  ;;  %v41_v24 = vld [vmem:[%s831_s0 + $0x38] sm:$0xff]  ;;  %v79_v31 = vsel %vm57_vm0, %v559_v18, 0.0 }
  0x15   :  { %v43_v27 = vld [vmem:[%s831_s0 + $0x48] sm:$0xff]  ;;  %v62_v28 = vadd.f32 %v40_v23, %v39_v22  ;;  %v42_v32 = vld [vmem:[%s831_s0 + $0x40] sm:$0xff]  ;;  %p449_p8 = por %p448_p7, %p447_p6 }
  0x16   :  { %v77_v26 = vadd.f32 %v76_v19, %v549_v16  ;;  %v73_v29 = vadd.f32 %v72_v15, %v71_v20  ;;  %v56_v30 = vadd.f32 %v55_v21, %v37_v9  ;;  %v65_v36 = vsel %vm57_vm0, %v43_v27, 0.0 }
  0x17   :  { %v63_v34 = vadd.f32 %v62_v28, %v41_v24  ;;  %p450_p9 = pnand %p449_p8, %p443_p5 }
  0x18   :  { %v78_v33 = vadd.f32 %v77_v26, %v554_v17  ;;  %74 = vadd.xlane.f32.xlu1 %v73_v29  ;;  %v59_v35 = vadd.f32 %v58_v25, %v56_v30 }
  0x19   :  { %v64_v38 = vadd.f32 %v63_v34, %v42_v32 }
  0x1a   :  { %v80_v37 = vadd.f32 %v79_v31, %v78_v33  ;;  %60 = vadd.xlane.f32.xlu0 %v59_v35 }
  0x1b   :  { %v66_v39 = vadd.f32 %v65_v36, %v64_v38 }
  0x1c   :  { %81 = vadd.xlane.f32.xlu1 %v80_v37 }
  0x1e   :  { %67 = vadd.xlane.f32.xlu0 %v66_v39 }
  0xa1   :  { %v75_v40 = vpop.xlane.xlu1 %74 }
  0xa3   :  { %v61_v41 = vpop.xlane.xlu0 %60 }
  0xa4   :  { %v83_v42 = vadd.f32 %v75_v40, %v61_v41 }
  0xa5   :  { %v82_v43 = vpop.xlane.xlu1 %81 }
  0xa6   :  { %v85_v44 = vmul.f32 0.0008064516, %v83_v42 }
  0xa7   :  { %v68_v45 = vpop.xlane.xlu0 %67 }
  0xa8   :  { %v84_v46 = vadd.f32 %v82_v43, %v68_v45  ;;  %v584_v47 = vsub.f32 %v34_v6, %v85_v44  ;;  %v586_v48 = vsub.f32 %v35_v7, %v85_v44  ;;  %v588_v49 = vsub.f32 %v36_v8, %v85_v44 }
  0xa9   :  { %v590_v50 = vsub.f32 %v37_v9, %v85_v44  ;;  %v592_v51 = vsub.f32 %v38_v11, %v85_v44  ;;  %v594_v52 = vsub.f32 %v44_v0, %v85_v44  ;;  %v596_v53 = vsub.f32 %v45_v1, %v85_v44 }
  0xaa   :  { %v86_v54 = vmul.f32 0.0008064516, %v84_v46  ;;  %v107_v55 = vmul.f32 %v584_v47, %v584_v47  ;;  %v108_v56 = vmul.f32 %v586_v48, %v586_v48  ;;  %v109_v57 = vmul.f32 %v588_v49, %v588_v49 }
  0xab   :  { %v604_v58 = vsub.f32 %v46_v2, %v85_v44  ;;  %v606_v60 = vsub.f32 %v47_v3, %v85_v44  ;;  %v117_v61 = vmul.f32 %v594_v52, %v594_v52  ;;  %v118_v62 = vmul.f32 %v596_v53, %v596_v53 }
  0xac   :  { %v127_v59 = vadd.f32 %v108_v56, %v107_v55  ;;  %v110_v63 = vmul.f32 %v590_v50, %v590_v50  ;;  %v111_v0 = vmul.f32 %v592_v51, %v592_v51  ;;  %v617_v1 = vsub.f32 %v517_v4, %v85_v44  ;;  %v197_v44 = vld [vmem:[%s834_s3] sm:$0xff] }
  0xad   :  { %v619_v2 = vsub.f32 %v39_v22, %v86_v54  ;;  %v119_v3 = vmul.f32 %v604_v58, %v604_v58  ;;  %v141_v6 = vadd.f32 %v118_v62, %v117_v61  ;;  %v623_v7 = vsub.f32 %v40_v23, %v86_v54 }
  0xae   :  { %v128_v5 = vadd.f32 %v127_v59, %v109_v57  ;;  %v625_v8 = vsub.f32 %v41_v24, %v86_v54  ;;  %v627_v9 = vsub.f32 %v42_v32, %v86_v54  ;;  %v629_v10 = vsub.f32 %v43_v27, %v86_v54 }
  0xaf   :  { %v112_v11 = vmul.f32 %v619_v2, %v619_v2  ;;  %v120_v12 = vmul.f32 %v606_v60, %v606_v60  ;;  %v142_v15 = vadd.f32 %v141_v6, %v119_v3  ;;  %v113_v19 = vmul.f32 %v623_v7, %v623_v7 }
  0xb0   :  { %v129_v4 = vadd.f32 %v128_v5, %v110_v63  ;;  %v130_v20 = vsel %vm57_vm0, %v111_v0, 0.0  ;;  %v121_v21 = vmul.f32 %v617_v1, %v617_v1  ;;  %v114_v22 = vmul.f32 %v625_v8, %v625_v8  ;;  %v159_v5 = vld [vmem:[%s833_s2] sm:$0xff] }
  0xb1   :  { %v643_v23 = vsub.f32 %v537_v13, %v86_v54  ;;  %v143_v25 = vadd.f32 %v142_v15, %v120_v12  ;;  %v134_v26 = vadd.f32 %v113_v19, %v112_v11  ;;  %v646_v27 = vsub.f32 %v542_v14, %v86_v54  ;;  %v160_v11 = vld [vmem:[%s833_s2 + $0x8] sm:$0xff] }
  0xb2   :  { %v131_v24 = vadd.f32 %v130_v20, %v129_v4  ;;  %v115_v28 = vmul.f32 %v627_v9, %v627_v9  ;;  %v116_v29 = vmul.f32 %v629_v10, %v629_v10  ;;  %v653_v30 = vsub.f32 %v549_v16, %v86_v54  ;;  %v198_v15 = vld [vmem:[%s834_s3 + $0x8] sm:$0xff] }
  0xb3   :  { %v656_v31 = vsub.f32 %v559_v18, %v86_v54  ;;  %v135_v13 = vadd.f32 %v134_v26, %v114_v22  ;;  %v659_v32 = vsub.f32 %v554_v17, %v86_v54  ;;  %v122_v14 = vmul.f32 %v643_v23, %v643_v23 }
  0xb4   :  { %132 = vadd.xlane.f32.xlu0 %v131_v24  ;;  %v123_v33 = vmul.f32 %v646_v27, %v646_v27  ;;  %v144_v34 = vsel %vm57_vm0, %v121_v21, 0.0  ;;  %v124_v16 = vmul.f32 %v653_v30, %v653_v30  ;;  %v137_v37 = vsel %vm57_vm0, %v116_v29, 0.0  ;;  %v230_v29 = vld [vmem:[%s832_s1 + $0x8] sm:$0xff] }
  0xb5   :  { %v145_v35 = vadd.f32 %v144_v34, %v143_v25  ;;  %v136_v36 = vadd.f32 %v135_v13, %v115_v28  ;;  %v126_v17 = vmul.f32 %v656_v31, %v656_v31  ;;  %v125_v39 = vmul.f32 %v659_v32, %v659_v32  ;;  %v229_v28 = vld [vmem:[%s832_s1] sm:$0xff] }
  0xb6   :  { %v148_v18 = vadd.f32 %v123_v33, %v122_v14  ;;  %v467_v45 = vmov 0   ;;  %v233_v34 = vld [vmem:[%s832_s1 + $0x20] sm:$0xff] }
  0xb7   :  { %v138_v38 = vadd.f32 %v137_v37, %v136_v36  ;;  %v151_v42 = vsel %vm57_vm0, %v126_v17, 0.0  ;;  %425 = vset.pattern.permute.xlu1 %v467_v45  ;;  %424 = vset.pattern.permute.xlu0 %v467_v45 }
  0xb8   :  { %146 = vadd.xlane.f32.xlu0 %v145_v35  ;;  %v149_v40 = vadd.f32 %v148_v18, %v124_v16 }
  0xb9   :  { %139 = vadd.xlane.f32.xlu1 %v138_v38 }
  0xba   :  { %v150_v41 = vadd.f32 %v149_v40, %v125_v39 }
  0xbc   :  { %v152_v43 = vadd.f32 %v151_v42, %v150_v41 }
  0xbe   :  { %153 = vadd.xlane.f32.xlu1 %v152_v43 }
  0xcf   :  { %201 = vperm.xlu1 %425, %v197_v44  }
 0x13d   :  { %v133_v46 = vpop.xlane.xlu0 %132 }
 0x141   :  { %v147_v54 = vpop.xlane.xlu0 %146 }
 0x142   :  { %v155_v55 = vadd.f32 %v147_v54, %v133_v46  ;;  %v140_v56 = vpop.xlane.xlu1 %139 }
 0x144   :  { %v157_v57 = vmul.f32 0.0008064516, %v155_v55 }
 0x146   :  { %v161_v59 = vadd.f32 1e-05, %v157_v57 }
 0x147   :  { %v154_v61 = vpop.xlane.xlu1 %153 }
 0x148   :  { %426 = vrsqrt.f32 %v161_v59  ;;  %v156_v62 = vadd.f32 %v154_v61, %v140_v56 }
 0x14a   :  { %v158_v63 = vmul.f32 0.0008064516, %v156_v62 }
 0x14b   :  { %v202_v19 = vpop.permute.xlu1 %201 }
 0x14c   :  { %v162_v0 = vadd.f32 1e-05, %v158_v63 }
 0x14e   :  { %428 = vrsqrt.f32 %v162_v0 }
 0x155   :  { %v427_v3 = vpop.eup %426 }
 0x156   :  { %v165_v6 = vmul.f32 %v427_v3, %v159_v5  ;;  %v234_v3 = vld [vmem:[%s832_s1 + $0x28] sm:$0xff] }
 0x158   :  { %169 = vperm.xlu0 %424, %v165_v6  }
 0x15b   :  { %v429_v4 = vpop.eup %428 }
 0x15c   :  { %v166_v12 = vmul.f32 %v429_v4, %v160_v11 }
 0x15e   :  { %174 = vperm.xlu1 %425, %v166_v12  }
 0x162   :  { %206 = vperm.xlu1 %425, %v198_v15  }
 0x1d3   :  { %v170_v20 = vpop.permute.xlu0 %169 }
 0x1d4   :  { %v177_v21 = vmul.f32 %v170_v20, %v584_v47  ;;  %v178_v22 = vmul.f32 %v170_v20, %v586_v48  ;;  %v179_v24 = vmul.f32 %v170_v20, %v588_v49  ;;  %v180_v25 = vmul.f32 %v170_v20, %v590_v50  ;;  %v231_v47 = vld [vmem:[%s832_s1 + $0x10] sm:$0xff] }
 0x1d5   :  { %v181_v26 = vmul.f32 %v170_v20, %v592_v51  ;;  %v187_v48 = vmul.f32 %v170_v20, %v594_v52  ;;  %v188_v49 = vmul.f32 %v170_v20, %v596_v53  ;;  %v189_v50 = vmul.f32 %v170_v20, %v604_v58  ;;  %v232_v52 = vld [vmem:[%s832_s1 + $0x18] sm:$0xff] }
 0x1d6   :  { %v703_v13 = vadd.f32 %v202_v19, %v177_v21  ;;  %v705_v51 = vadd.f32 %v202_v19, %v178_v22  ;;  %v707_v14 = vadd.f32 %v202_v19, %v179_v24  ;;  %v709_v33 = vadd.f32 %v202_v19, %v180_v25  ;;  %v238_v22 = vld [vmem:[%s832_s1 + $0x48] sm:$0xff] }
 0x1d7   :  { %v714_v16 = vadd.f32 %v202_v19, %v181_v26  ;;  %v190_v53 = vmul.f32 %v170_v20, %v606_v60  ;;  %v191_v58 = vmul.f32 %v170_v20, %v617_v1  ;;  %v721_v35 = vadd.f32 %v202_v19, %v187_v48 }
 0x1d8   :  { %v239_v36 = vmul.f32 %v229_v28, %v703_v13  ;;  %v240_v18 = vmul.f32 %v230_v29, %v705_v51  ;;  %v241_v37 = vmul.f32 %v231_v47, %v707_v14  ;;  %v220_v39 = vadd.f32 %v202_v19, %v188_v49 }
 0x1d9   :  { %v175_v17 = vpop.permute.xlu1 %174  ;;  %v243_v38 = vmul.f32 %v233_v34, %v714_v16  ;;  %v727_v40 = vadd.f32 %v202_v19, %v189_v50  ;;  %v729_v41 = vadd.f32 %v202_v19, %v190_v53  ;;  %v242_v60 = vmul.f32 %v232_v52, %v709_v33 }
 0x1da   :  { %v259_v42 = vadd.f32 %v240_v18, %v239_v36  ;;  %v732_v1 = vadd.f32 %v202_v19, %v191_v58  ;;  %v249_v43 = vmul.f32 %v229_v28, %v721_v35  ;;  %v250_v45 = vmul.f32 %v230_v29, %v220_v39 }
 0x1db   :  { %v262_v44 = vsel %vm57_vm0, %v243_v38, 0.0  ;;  %v251_v46 = vmul.f32 %v231_v47, %v727_v40  ;;  %v182_v54 = vmul.f32 %v175_v17, %v619_v2  ;;  %v252_v56 = vmul.f32 %v232_v52, %v729_v41  ;;  %v235_v2 = vld [vmem:[%s832_s1 + $0x30] sm:$0xff]  ;;  %v411_v52 = vld [vmem:[%s832_s1 + $0x58] sm:$0xff] }
 0x1dc   :  { %v260_v55 = vadd.f32 %v259_v42, %v241_v37  ;;  %v253_v57 = vmul.f32 %v233_v34, %v732_v1  ;;  %v183_v59 = vmul.f32 %v175_v17, %v623_v7  ;;  %v273_v62 = vadd.f32 %v250_v45, %v249_v43  ;;  %v236_v7 = vld [vmem:[%s832_s1 + $0x38] sm:$0xff]  ;;  %v410_v34 = vld [vmem:[%s832_s1 + $0x50] sm:$0xff] }
 0x1dd   :  { %v207_v61 = vpop.permute.xlu1 %206  ;;  %v184_v63 = vmul.f32 %v175_v17, %v625_v8  ;;  %v185_v0 = vmul.f32 %v175_v17, %v627_v9  ;;  %v186_v5 = vmul.f32 %v175_v17, %v629_v10  ;;  %v237_v8 = vld [vmem:[%s832_s1 + $0x40] sm:$0xff]  ;;  %v192_v9 = vmul.f32 %v175_v17, %v643_v23 }
 0x1de   :  { %v261_v6 = vadd.f32 %v260_v55, %v242_v60  ;;  %v214_v11 = vadd.f32 %v207_v61, %v182_v54  ;;  %v750_v4 = vadd.f32 %v207_v61, %v183_v59  ;;  %v274_v10 = vadd.f32 %v273_v62, %v251_v46  ;;  %v412_v60 = vld [vmem:[%s832_s1 + $0x60] sm:$0xff]  ;;  %v413_v46 = vld [vmem:[%s832_s1 + $0x68] sm:$0xff]  ;;  %v415_v59 = vld [vmem:[%s832_s1 + $0x78] sm:$0xff] }
 0x1df   :  { %v759_v12 = vadd.f32 %v207_v61, %v184_v63  ;;  %v761_v15 = vadd.f32 %v207_v61, %v185_v0  ;;  %v763_v19 = vadd.f32 %v207_v61, %v186_v5  ;;  %v276_v21 = vsel %vm57_vm0, %v253_v57, 0.0  ;;  %v416_v63 = vld [vmem:[%s832_s1 + $0x80] sm:$0xff] }
 0x1e0   :  { %v263_v20 = vadd.f32 %v262_v44, %v261_v6  ;;  %v244_v24 = vmul.f32 %v234_v3, %v214_v11  ;;  %v245_v25 = vmul.f32 %v235_v2, %v750_v4  ;;  %v275_v26 = vadd.f32 %v274_v10, %v252_v56 }
 0x1e1   :  { %v246_v23 = vmul.f32 %v236_v7, %v759_v12  ;;  %v247_v28 = vmul.f32 %v237_v8, %v761_v15  ;;  %v193_v29 = vmul.f32 %v175_v17, %v646_v27  ;;  %v194_v48 = vmul.f32 %v175_v17, %v653_v30 }
 0x1e2   :  { %264 = vadd.xlane.f32.xlu1 %v263_v20  ;;  %v266_v47 = vadd.f32 %v245_v25, %v244_v24  ;;  %v195_v49 = vmul.f32 %v175_v17, %v659_v32  ;;  %v196_v50 = vmul.f32 %v175_v17, %v656_v31  ;;  %v277_v53 = vadd.f32 %v276_v21, %v275_v26  ;;  %v414_v31 = vld [vmem:[%s832_s1 + $0x70] sm:$0xff] }
 0x1e3   :  { %v248_v58 = vmul.f32 %v238_v22, %v763_v19  ;;  %v224_v27 = vadd.f32 %v207_v61, %v192_v9  ;;  %v225_v36 = vadd.f32 %v207_v61, %v193_v29  ;;  %v226_v37 = vadd.f32 %v207_v61, %v194_v48 }
 0x1e4   :  { %v267_v18 = vadd.f32 %v266_v47, %v246_v23  ;;  %v227_v30 = vadd.f32 %v207_v61, %v195_v49  ;;  %v228_v38 = vadd.f32 %v207_v61, %v196_v50  ;;  %v322_v42 = vmul.f32 %v410_v34, %v721_v35 }
 0x1e5   :  { %v254_v32 = vmul.f32 %v234_v3, %v224_v27  ;;  %v255_v17 = vmul.f32 %v235_v2, %v225_v36  ;;  %v323_v43 = vmul.f32 %v411_v52, %v220_v39  ;;  %v269_v54 = vsel %vm57_vm0, %v248_v58, 0.0  ;;  %v417_v2 = vld [vmem:[%s832_s1 + $0x88] sm:$0xff] }
 0x1e6   :  { %278 = vadd.xlane.f32.xlu1 %v277_v53  ;;  %v268_v44 = vadd.f32 %v267_v18, %v247_v28  ;;  %v258_v45 = vmul.f32 %v238_v22, %v228_v38  ;;  %v256_v55 = vmul.f32 %v236_v7, %v226_v37  ;;  %v326_v57 = vmul.f32 %v414_v31, %v732_v1  ;;  %v418_v22 = vld [vmem:[%s832_s1 + $0x90] sm:$0xff] }
 0x1e7   :  { %v280_v56 = vadd.f32 %v255_v17, %v254_v32  ;;  %v324_v35 = vmul.f32 %v412_v60, %v727_v40  ;;  %v346_v39 = vadd.f32 %v323_v43, %v322_v42  ;;  %v312_v62 = vmul.f32 %v410_v34, %v703_v13 }
 0x1e8   :  { %v270_v61 = vadd.f32 %v269_v54, %v268_v44  ;;  %v257_v0 = vmul.f32 %v237_v8, %v227_v30  ;;  %v325_v3 = vmul.f32 %v413_v46, %v729_v41  ;;  %v313_v1 = vmul.f32 %v411_v52, %v705_v51 }
 0x1e9   :  { %v281_v5 = vadd.f32 %v280_v56, %v256_v55  ;;  %v283_v40 = vsel %vm57_vm0, %v258_v45, 0.0  ;;  %v347_v6 = vadd.f32 %v346_v39, %v324_v35  ;;  %v349_v13 = vsel %vm57_vm0, %v326_v57, 0.0 }
 0x1ea   :  { %271 = vadd.xlane.f32.xlu0 %v270_v61  ;;  %v317_v7 = vmul.f32 %v415_v59, %v214_v11  ;;  %v314_v10 = vmul.f32 %v412_v60, %v707_v14  ;;  %v332_v8 = vadd.f32 %v313_v1, %v312_v62  ;;  %v318_v20 = vmul.f32 %v416_v63, %v750_v4  ;;  %v419_v14 = vld [vmem:[%s832_s1 + $0x98] sm:$0xff]  ;;  %s374_s1 = sld [smem:[#allocation2]] }
 0x1eb   :  { %v282_v9 = vadd.f32 %v281_v5, %v257_v0  ;;  %v348_v41 = vadd.f32 %v347_v6, %v325_v3  ;;  %v315_v51 = vmul.f32 %v413_v46, %v709_v33  ;;  %v316_v21 = vmul.f32 %v414_v31, %v714_v16 }
 0x1ec   :  { %v319_v24 = vmul.f32 %v417_v2, %v759_v12  ;;  %v333_v26 = vadd.f32 %v332_v8, %v314_v10  ;;  %v339_v11 = vadd.f32 %v318_v20, %v317_v7  ;;  %v327_v23 = vmul.f32 %v415_v59, %v224_v27 }
 0x1ed   :  { %v284_v25 = vadd.f32 %v283_v40, %v282_v9  ;;  %v350_v4 = vadd.f32 %v349_v13, %v348_v41  ;;  %v328_v28 = vmul.f32 %v416_v63, %v225_v36  ;;  %v320_v16 = vmul.f32 %v418_v22, %v761_v15 }
 0x1ee   :  { %v334_v33 = vadd.f32 %v333_v26, %v315_v51  ;;  %v340_v29 = vadd.f32 %v339_v11, %v319_v24  ;;  %v335_v47 = vsel %vm57_vm0, %v316_v21, 0.0  ;;  %v321_v12 = vmul.f32 %v419_v14, %v763_v19 }
 0x1ef   :  { %285 = vadd.xlane.f32.xlu1 %v284_v25  ;;  %351 = vadd.xlane.f32.xlu0 %v350_v4  ;;  %v329_v48 = vmul.f32 %v417_v2, %v226_v37  ;;  %v353_v49 = vadd.f32 %v328_v28, %v327_v23  ;;  %v330_v53 = vmul.f32 %v418_v22, %v227_v30  ;;  %v386_v24 = vstv %s420_s4 }
 0x1f0   :  { %v336_v50 = vadd.f32 %v335_v47, %v334_v33  ;;  %v341_v34 = vadd.f32 %v340_v29, %v320_v16  ;;  %v342_v58 = vsel %vm57_vm0, %v321_v12, 0.0  ;;  %v331_v27 = vmul.f32 %v419_v14, %v228_v38 }
 0x1f1   :  { %v354_v52 = vadd.f32 %v353_v49, %v329_v48  ;;  %v375_v5 = vstv %s374_s1 }
 0x1f2   :  { %v343_v36 = vadd.f32 %v342_v58, %v341_v34  ;;  %v356_v15 = vsel %vm57_vm0, %v331_v27, 0.0 }
 0x1f3   :  { %337 = vadd.xlane.f32.xlu1 %v336_v50  ;;  %v355_v18 = vadd.f32 %v354_v52, %v330_v53 }
 0x1f5   :  { %v357_v31 = vadd.f32 %v356_v15, %v355_v18 }
 0x1f7   :  { %344 = vadd.xlane.f32.xlu1 %v343_v36 }
 0x1fb   :  { %358 = vadd.xlane.f32.xlu1 %v357_v31 }
 0x26b   :  { %v265_v32 = vpop.xlane.xlu1 %264 }
 0x26f   :  { %v279_v17 = vpop.xlane.xlu1 %278 }
 0x273   :  { %v272_v19 = vpop.xlane.xlu0 %271 }
 0x274   :  { %v287_v37 = vadd.f32 %v272_v19, %v265_v32 }
 0x276   :  { %v288_v60 = vrot.slane %v287_v37, 4 }
 0x278   :  { %v289_v42 = vadd.f32 %v288_v60, %v287_v37  ;;  %v286_v43 = vpop.xlane.xlu1 %285  ;;  %v352_v63 = vpop.xlane.xlu0 %351 }
 0x279   :  { %v294_v44 = vadd.f32 %v286_v43, %v279_v17 }
 0x27a   :  { %v290_v45 = vrot.slane %v289_v42, 2 }
 0x27b   :  { %v295_v30 = vrot.slane %v294_v44, 4 }
 0x27c   :  { %v291_v46 = vadd.f32 %v290_v45, %v289_v42  ;;  %v338_v54 = vpop.xlane.xlu1 %337 }
 0x27d   :  { %v296_v38 = vadd.f32 %v295_v30, %v294_v44 }
 0x27e   :  { %v292_v55 = vrot.slane %v291_v46, 1 }
 0x27f   :  { %v297_v56 = vrot.slane %v296_v38, 2 }
 0x280   :  { %v345_v57 = vpop.xlane.xlu1 %344  ;;  %v293_v35 = vadd.f32 %v292_v55, %v291_v46 }
 0x281   :  { %v298_v59 = vadd.f32 %v297_v56, %v296_v38  ;;  %v360_v61 = vadd.f32 %v345_v57, %v338_v54 }
 0x282   :  { %v376_v13 = vadd.f32 %v375_v5, %v293_v35 }
 0x283   :  { %v299_v39 = vrot.slane %v298_v59, 1  ;;  %v361_v62 = vrot.slane %v360_v61, 4 }
 0x284   :  { %v359_v0 = vpop.xlane.xlu1 %358 }
 0x285   :  { %v300_v3 = vadd.f32 %v299_v39, %v298_v59  ;;  %v362_v1 = vadd.f32 %v361_v62, %v360_v61  ;;  %v367_v2 = vadd.f32 %v359_v0, %v352_v63 }
 0x287   :  { %v363_v40 = vrot.slane %v362_v1, 2  ;;  %v368_v6 = vrot.slane %v367_v2, 4  ;;  %v377_v7 = vadd.f32 %v375_v5, %v300_v3 }
 0x289   :  { %v364_v9 = vadd.f32 %v363_v40, %v362_v1  ;;  %v369_v10 = vadd.f32 %v368_v6, %v367_v2  ;;  %v381_v8 = vsel %vm380_vm1, %v377_v7, %v376_v13 }
 0x28a   :  { %384 = vst.msk [vmem:[#allocation5] sm:$0x3] %vm383_vm2, %v381_v8 }
 0x28b   :  { %v365_v20 = vrot.slane %v364_v9, 1  ;;  %v370_v41 = vrot.slane %v369_v10, 2 }
 0x28d   :  { %v371_v51 = vadd.f32 %v370_v41, %v369_v10  ;;  %v366_v21 = vadd.f32 %v365_v20, %v364_v9 }
 0x28f   :  { %v372_v22 = vrot.slane %v371_v51, 1  ;;  %v387_v26 = vadd.f32 %v386_v24, %v366_v21 }
 0x291   :  { %v373_v25 = vadd.f32 %v372_v22, %v371_v51 }
 0x293   :  { %v388_v14 = vadd.f32 %v386_v24, %v373_v25 }
 0x295   :  { %v391_v11 = vsel %vm380_vm1, %v388_v14, %v387_v26 }
 0x296   :  { %394 = vst.msk [vmem:[#allocation5] sm:$0x3] %vm393_vm3, %v391_v11 }
 0x297   :  { %453 = shalt.err (!%p450_p9)
}
 0x298   :  { %404 = dma.vmem_to_hbm [thread:$0]  %s402_s28, 32, %s836_s5, [#allocation3]  }
 0x299   :  { %464 = dma.done.wait [#allocation3], 32  }
 0x29a   :  { %465 = vsyncadd [#allocation3], 4294967264 }
 0x29b   :  { %408 = vsyncpa [#allocation3], 1 }
 0x29c   :  { %409 = vsyncpa [#allocation4], 1 }

</bundles_post_ra>
